<compile_context>
chip_gen: v7x
topology: tpu7x:2x2x1
jax: 0.10.0
libtpu: 0.0.40
codegen_flags: <defaults>
</compile_context>

<pallas_src>
import jax
import jax.numpy as jnp
from jax.experimental import pallas as pl
from jax.experimental.pallas import tpu as pltpu

# Sizes hard-coded inside MemoryBlock.__init__ (it overrides its ctor args).
N_ATTN_HIDDEN = 256
N_LSTM_HIDDEN = 512
GATES = 4 * N_LSTM_HIDDEN


# ---------------------------------------------------------------------------
# Pallas kernel: one LSTMCell step per sequential grid iteration.
# Grid = (batch_blocks [parallel], seq_len [arbitrary]); state in VMEM scratch.
# ---------------------------------------------------------------------------
def _lstm_seq_kernel(gx_ref, reset_ref, h0_ref, c0_ref, whh_ref,
                     hy_ref, cy_ref, h_sc, c_sc):
    i = pl.program_id(1)                       # recurrent (sequential) axis

    @pl.when(i == 0)
    def _():
        h_sc[...] = h0_ref[...]
        c_sc[...] = c0_ref[...]

    keep = 1.0 - reset_ref[0]                  # (Bb, 1)
    h_prev = h_sc[...] * keep                  # (Bb, H) f32
    c_prev = c_sc[...] * keep

    # Input projection (x @ W_ih^T + b_ih + b_hh) was hoisted out of the loop;
    # only the recurrent projection stays on the serial path.  bf16 operands,
    # f32 accumulation.
    gates = gx_ref[0] + jnp.dot(
        h_prev.astype(jnp.bfloat16), whh_ref[...],
        preferred_element_type=jnp.float32)    # (Bb, 4H) f32

    H = h_sc.shape[1]

    def _sigmoid(v):
        # One EUP op (tanh) instead of exp + reciprocal.
        return 0.5 * jnp.tanh(0.5 * v) + 0.5

    i_g = _sigmoid(gates[:, 0:H])
    f_g = _sigmoid(gates[:, H:2 * H])
    g_g = jnp.tanh(gates[:, 2 * H:3 * H])
    o_g = _sigmoid(gates[:, 3 * H:4 * H])

    c_new = f_g * c_prev + i_g * g_g
    h_new = o_g * jnp.tanh(c_new)

    h_sc[...] = h_new
    c_sc[...] = c_new
    hy_ref[0] = h_new
    cy_ref[0] = c_new


def lstm_sequence(h_seq, reset_seq, h0, c0, wih_t, whh_t, bias):
    """Run nn.LSTMCell over seq_len steps with per-step reset gating.

    h_seq:     (S, B, H)  f32   time-major inputs
    reset_seq: (S, B, 1)  f32   0/1 reset flags per step
    h0, c0:    (B, H)     f32
    wih_t, whh_t: (H, 4H) f32   (already transposed: x @ W^T == x @ w_t)
    bias:      (1, 4H)    f32   (= b_ih + b_hh)
    returns (hys, cys): each (S, B, H) f32
    """
    S, B, H = h_seq.shape
    G = 4 * H

    # ---- Hoisted input projection: one big (S*B, H) @ (H, 4H) matmul. ----
    gates_x = (jnp.dot(h_seq.reshape(S * B, H).astype(jnp.bfloat16),
                       wih_t.astype(jnp.bfloat16),
                       preferred_element_type=jnp.float32)
               + bias).reshape(S, B, G)

    whh_bf16 = whh_t.astype(jnp.bfloat16)

    # Split batch across TensorCores on megacore parts (keep Bb a multiple
    # of 8 sublanes); harmless serial loop on single-TC chips.
    nb = 2 if (B % 16 == 0) else 1
    Bb = B // nb

    grid_spec = pltpu.PrefetchScalarGridSpec(
        num_scalar_prefetch=0,
        grid=(nb, S),
        in_specs=[
            pl.BlockSpec((1, Bb, G), lambda b, i: (i, b, 0)),   # gates_x step
            pl.BlockSpec((1, Bb, 1), lambda b, i: (i, b, 0)),   # reset step
            pl.BlockSpec((Bb, H), lambda b, i: (b, 0)),         # h0
            pl.BlockSpec((Bb, H), lambda b, i: (b, 0)),         # c0
            pl.BlockSpec((H, G), lambda b, i: (0, 0)),          # W_hh^T (bf16)
        ],
        out_specs=[
            pl.BlockSpec((1, Bb, H), lambda b, i: (i, b, 0)),   # hys
            pl.BlockSpec((1, Bb, H), lambda b, i: (i, b, 0)),   # cys
        ],
        scratch_shapes=[
            pltpu.VMEM((Bb, H), jnp.float32),                   # h state
            pltpu.VMEM((Bb, H), jnp.float32),                   # c state
        ],
    )

    return pl.pallas_call(
        _lstm_seq_kernel,
        out_shape=(
            jax.ShapeDtypeStruct((S, B, H), jnp.float32),
            jax.ShapeDtypeStruct((S, B, H), jnp.float32),
        ),
        grid_spec=grid_spec,
        compiler_params=pltpu.CompilerParams(
            # batch halves are independent -> parallel; recurrence -> arbitrary
            dimension_semantics=("parallel", "arbitrary"),
            # <= 64 MiB physical VMEM on v7x; this kernel needs only ~5 MiB.
            vmem_limit_bytes=48 * 1024 * 1024,
        ),
    )(gates_x, reset_seq, h0, c0, whh_bf16)


# ---------------------------------------------------------------------------
# MemoryBlock.forward (glue reshapes in plain JAX, LSTM loop in Pallas).
# Mirrors the torch view/transpose/reshape ops exactly.
# ---------------------------------------------------------------------------
def memory_block_forward(x, state, h_self, h_inter, reset, params):
    seq_len, teams, _ = x.shape
    hxs, cxs = state
    H = N_LSTM_HIDDEN

    hxs = hxs.reshape(-1, teams * 8, H)
    cxs = cxs.reshape(-1, teams * 8, H)

    # h = cat([h_self[:, :, n_attn_hidden:], h_inter], dim=-1)
    h = jnp.concatenate([h_self[:, :, N_ATTN_HIDDEN:], h_inter], axis=-1)
    bs, na, nf = h.shape
    nt = bs // seq_len

    # resets = self.reset.repeat(1, na)
    resets = jnp.tile(reset, (1, na))                       # (bs, na)

    # h.view(nt, seq_len, na, -1).transpose(1,0).reshape(seq_len, nt*na, -1)
    h = (h.reshape(nt, seq_len, na, -1)
          .transpose(1, 0, 2, 3)
          .reshape(seq_len, nt * na, -1))

    # initial states: hxs[::seq_len].reshape(-1, nf)
    h0 = hxs[::seq_len].reshape(-1, nf)
    c0 = cxs[::seq_len].reshape(-1, nf)

    # per-step reset factor: resets[i::seq_len].reshape(nt*na, 1)
    reset_seq = (resets.reshape(nt, seq_len, na)
                 .transpose(1, 0, 2)
                 .reshape(seq_len, nt * na, 1))

    wih_t, whh_t, bias = params
    hys_seq, cys_seq = lstm_sequence(h, reset_seq, h0, c0, wih_t, whh_t, bias)

    # stack(hys[1:]) already == hys_seq (seq_len, nt*na, H); now replay the
    # torch view/transpose/reshape chain exactly (including the final
    # nt-major -> (seq_len, nt, ...) reinterpretation done by .view).
    hys = (hys_seq.reshape(seq_len, nt, na, -1)
           .transpose(1, 0, 2, 3)
           .reshape(bs, na, -1))
    cys = (cys_seq.reshape(seq_len, nt, na, -1)
           .transpose(1, 0, 2, 3)
           .reshape(bs, na, -1))
    hys = hys.reshape(seq_len, nt, -1)
    cys = cys.reshape(seq_len, nt, -1)
    return (hys, (hys, cys))


# ---------------------------------------------------------------------------
# Deterministic parameter / input construction and smoke test.
# ---------------------------------------------------------------------------
def init_lstm_params(key):
    H, G = N_LSTM_HIDDEN, GATES
    k = 1.0 / jnp.sqrt(jnp.float32(H))
    k_wih, k_whh, k_bih, k_bhh = jax.random.split(key, 4)
    w_ih = jax.random.uniform(k_wih, (G, H), jnp.float32, -k, k)   # nn.LSTMCell weight_ih
    w_hh = jax.random.uniform(k_whh, (G, H), jnp.float32, -k, k)   # nn.LSTMCell weight_hh
    b_ih = jax.random.uniform(k_bih, (G,), jnp.float32, -k, k)
    b_hh = jax.random.uniform(k_bhh, (G,), jnp.float32, -k, k)
    # Pre-transpose / fuse bias for the kernel.
    return (w_ih.T, w_hh.T, (b_ih + b_hh).reshape(1, G))


if __name__ == "__main__":
    key = jax.random.PRNGKey(0)
    k_par, k_x, k_hs, k_hi, k_r, k_hx, k_cx = jax.random.split(key, 7)

    # Small shapes consistent with the module's forward:
    seq_len, teams, nt = 4, 2, 2
    na = teams * 8                # 16
    bs = nt * seq_len             # 8
    H = N_LSTM_HIDDEN

    params = init_lstm_params(k_par)

    x = jax.random.normal(k_x, (seq_len, teams, 16), jnp.float32)
    h_self = jax.random.normal(k_hs, (bs, na, 2 * N_ATTN_HIDDEN), jnp.float32)
    h_inter = jax.random.normal(k_hi, (bs, na, N_ATTN_HIDDEN), jnp.float32)
    reset = (jax.random.uniform(k_r, (bs, 1)) < 0.25).astype(jnp.float32)
    hxs = jax.random.normal(k_hx, (bs, na * H), jnp.float32)
    cxs = jax.random.normal(k_cx, (bs, na * H), jnp.float32)

    fwd = jax.jit(memory_block_forward)
    hys, (hys_s, cys_s) = fwd(x, (hxs, cxs), h_self, h_inter, reset, params)
    jax.block_until_ready((hys, hys_s, cys_s))

    assert hys.shape == (seq_len, nt, na * H)
    assert cys_s.shape == (seq_len, nt, na * H)
    assert bool(jnp.all(jnp.isfinite(hys)))
    print("KERNEL_OK")
</pallas_src>

<mosaic_0001>
module attributes {stable_mosaic.version = 11 : i64} {
  func.func @_lstm_seq_kernel(%arg0: i32, %arg1: i32, %arg2: memref<1x16x2048xf32, #tpu.memory_space<vmem>>, %arg3: memref<1x16x1xf32, #tpu.memory_space<vmem>>, %arg4: memref<16x512xf32, #tpu.memory_space<vmem>>, %arg5: memref<16x512xf32, #tpu.memory_space<vmem>>, %arg6: memref<512x2048xbf16, #tpu.memory_space<vmem>>, %arg7: memref<1x16x512xf32, #tpu.memory_space<vmem>>, %arg8: memref<1x16x512xf32, #tpu.memory_space<vmem>>, %arg9: memref<16x512xf32, #tpu.memory_space<vmem>>, %arg10: memref<16x512xf32, #tpu.memory_space<vmem>>) attributes {dimension_semantics = [#tpu.dimension_semantics<parallel>, #tpu.dimension_semantics<arbitrary>], iteration_bounds = array<i64: 2, 4>, scalar_prefetch = 0 : i64, scratch_operands = 2 : i64, tpu.core_type = #tpu.core_type<tc>, window_params = [{transform_indices = @transform_0, window_bounds = array<i64: 1, 16, 2048>}, {transform_indices = @transform_1, window_bounds = array<i64: 1, 16, 1>}, {transform_indices = @transform_2, window_bounds = array<i64: 16, 512>}, {transform_indices = @transform_3, window_bounds = array<i64: 16, 512>}, {pipeline_mode = #tpu.pipeline_mode<synchronous>, transform_indices = @transform_4, window_bounds = array<i64: 512, 2048>}, {transform_indices = @transform_5, window_bounds = array<i64: 1, 16, 512>}, {transform_indices = @transform_6, window_bounds = array<i64: 1, 16, 512>}]} {
    %c0_i32 = arith.constant 0 : i32
    %0 = arith.cmpi eq, %arg1, %c0_i32 : i32
    %1 = arith.extui %0 : i1 to i32
    %c0_i32_0 = arith.constant 0 : i32
    %2 = arith.cmpi ne, %1, %c0_i32_0 : i32
    scf.if %2 {
      %c0_32 = arith.constant 0 : index
      %c0_33 = arith.constant 0 : index
      %58 = vector.load %arg4[%c0_32, %c0_33] : memref<16x512xf32, #tpu.memory_space<vmem>>, vector<16x512xf32>
      %c0_34 = arith.constant 0 : index
      %c0_35 = arith.constant 0 : index
      %59 = vector.load %arg9[%c0_34, %c0_35] : memref<16x512xf32, #tpu.memory_space<vmem>>, vector<16x512xf32>
      tpu.vector_store %arg9[%c0_34, %c0_35], %58 {strides = array<i32>} : memref<16x512xf32, #tpu.memory_space<vmem>>, vector<16x512xf32>,
      %c0_36 = arith.constant 0 : index
      %c0_37 = arith.constant 0 : index
      %60 = vector.load %arg5[%c0_36, %c0_37] : memref<16x512xf32, #tpu.memory_space<vmem>>, vector<16x512xf32>
      %c0_38 = arith.constant 0 : index
      %c0_39 = arith.constant 0 : index
      %61 = vector.load %arg10[%c0_38, %c0_39] : memref<16x512xf32, #tpu.memory_space<vmem>>, vector<16x512xf32>
      tpu.vector_store %arg10[%c0_38, %c0_39], %60 {strides = array<i32>} : memref<16x512xf32, #tpu.memory_space<vmem>>, vector<16x512xf32>,
    } else {
    }
    %c0 = arith.constant 0 : index
    %c0_1 = arith.constant 0 : index
    %c0_2 = arith.constant 0 : index
    %3 = vector.load %arg3[%c0, %c0_1, %c0_2] : memref<1x16x1xf32, #tpu.memory_space<vmem>>, vector<1x16x1xf32>
    %4 = vector.shape_cast %3 : vector<1x16x1xf32> to vector<16x1xf32>
    %cst = arith.constant 1.000000e+00 : f32
    %5 = vector.broadcast %cst : f32 to vector<16x1xf32>
    %6 = arith.subf %5, %4 : vector<16x1xf32>
    %c0_3 = arith.constant 0 : index
    %c0_4 = arith.constant 0 : index
    %7 = vector.load %arg9[%c0_3, %c0_4] : memref<16x512xf32, #tpu.memory_space<vmem>>, vector<16x512xf32>
    %8 = vector.broadcast %6 : vector<16x1xf32> to vector<16x512xf32>
    %9 = arith.mulf %7, %8 : vector<16x512xf32>
    %c0_5 = arith.constant 0 : index
    %c0_6 = arith.constant 0 : index
    %10 = vector.load %arg10[%c0_5, %c0_6] : memref<16x512xf32, #tpu.memory_space<vmem>>, vector<16x512xf32>
    %11 = vector.broadcast %6 : vector<16x1xf32> to vector<16x512xf32>
    %12 = arith.mulf %10, %11 : vector<16x512xf32>
    %c0_7 = arith.constant 0 : index
    %c0_8 = arith.constant 0 : index
    %c0_9 = arith.constant 0 : index
    %13 = vector.load %arg2[%c0_7, %c0_8, %c0_9] : memref<1x16x2048xf32, #tpu.memory_space<vmem>>, vector<1x16x2048xf32>
    %14 = vector.shape_cast %13 : vector<1x16x2048xf32> to vector<16x2048xf32>
    %15 = arith.truncf %9 : vector<16x512xf32> to vector<16x512xbf16>
    %c0_10 = arith.constant 0 : index
    %c0_11 = arith.constant 0 : index
    %16 = vector.load %arg6[%c0_10, %c0_11] : memref<512x2048xbf16, #tpu.memory_space<vmem>>, vector<512x2048xbf16>
    %cst_12 = arith.constant dense<0.000000e+00> : vector<16x2048xf32>
    %17 = tpu.matmul %15, %16, %cst_12 {dimension_numbers = #tpu.dot_dimension_numbers<[1], [0], [0], [1], [0, 0, 1, 1], [], []>} : vector<16x512xbf16>, vector<512x2048xbf16>, vector<16x2048xf32> -> vector<16x2048xf32>
    %18 = arith.addf %14, %17 : vector<16x2048xf32>
    %19 = vector.extract_strided_slice %18 {offsets = [0, 0], sizes = [16, 512], strides = [1, 1]} : vector<16x2048xf32> to vector<16x512xf32>
    %cst_13 = arith.constant 5.000000e-01 : f32
    %20 = vector.broadcast %cst_13 : f32 to vector<16x512xf32>
    %21 = arith.mulf %20, %19 : vector<16x512xf32>
    %22 = math.tanh %21 : vector<16x512xf32>
    %cst_14 = arith.constant 5.000000e-01 : f32
    %23 = vector.broadcast %cst_14 : f32 to vector<16x512xf32>
    %24 = arith.mulf %23, %22 : vector<16x512xf32>
    %cst_15 = arith.constant 5.000000e-01 : f32
    %25 = vector.broadcast %cst_15 : f32 to vector<16x512xf32>
    %26 = arith.addf %24, %25 : vector<16x512xf32>
    %27 = vector.extract_strided_slice %18 {offsets = [0, 512], sizes = [16, 512], strides = [1, 1]} : vector<16x2048xf32> to vector<16x512xf32>
    %cst_16 = arith.constant 5.000000e-01 : f32
    %28 = vector.broadcast %cst_16 : f32 to vector<16x512xf32>
    %29 = arith.mulf %28, %27 : vector<16x512xf32>
    %30 = math.tanh %29 : vector<16x512xf32>
    %cst_17 = arith.constant 5.000000e-01 : f32
    %31 = vector.broadcast %cst_17 : f32 to vector<16x512xf32>
    %32 = arith.mulf %31, %30 : vector<16x512xf32>
    %cst_18 = arith.constant 5.000000e-01 : f32
    %33 = vector.broadcast %cst_18 : f32 to vector<16x512xf32>
    %34 = arith.addf %32, %33 : vector<16x512xf32>
    %35 = vector.extract_strided_slice %18 {offsets = [0, 1024], sizes = [16, 512], strides = [1, 1]} : vector<16x2048xf32> to vector<16x512xf32>
    %36 = math.tanh %35 : vector<16x512xf32>
    %37 = vector.extract_strided_slice %18 {offsets = [0, 1536], sizes = [16, 512], strides = [1, 1]} : vector<16x2048xf32> to vector<16x512xf32>
    %cst_19 = arith.constant 5.000000e-01 : f32
    %38 = vector.broadcast %cst_19 : f32 to vector<16x512xf32>
    %39 = arith.mulf %38, %37 : vector<16x512xf32>
    %40 = math.tanh %39 : vector<16x512xf32>
    %cst_20 = arith.constant 5.000000e-01 : f32
    %41 = vector.broadcast %cst_20 : f32 to vector<16x512xf32>
    %42 = arith.mulf %41, %40 : vector<16x512xf32>
    %cst_21 = arith.constant 5.000000e-01 : f32
    %43 = vector.broadcast %cst_21 : f32 to vector<16x512xf32>
    %44 = arith.addf %42, %43 : vector<16x512xf32>
    %45 = arith.mulf %34, %12 : vector<16x512xf32>
    %46 = arith.mulf %26, %36 : vector<16x512xf32>
    %47 = arith.addf %45, %46 : vector<16x512xf32>
    %48 = math.tanh %47 : vector<16x512xf32>
    %49 = arith.mulf %44, %48 : vector<16x512xf32>
    %c0_22 = arith.constant 0 : index
    %c0_23 = arith.constant 0 : index
    %50 = vector.load %arg9[%c0_22, %c0_23] : memref<16x512xf32, #tpu.memory_space<vmem>>, vector<16x512xf32>
    tpu.vector_store %arg9[%c0_22, %c0_23], %49 {strides = array<i32>} : memref<16x512xf32, #tpu.memory_space<vmem>>, vector<16x512xf32>,
    %c0_24 = arith.constant 0 : index
    %c0_25 = arith.constant 0 : index
    %51 = vector.load %arg10[%c0_24, %c0_25] : memref<16x512xf32, #tpu.memory_space<vmem>>, vector<16x512xf32>
    tpu.vector_store %arg10[%c0_24, %c0_25], %47 {strides = array<i32>} : memref<16x512xf32, #tpu.memory_space<vmem>>, vector<16x512xf32>,
    %c0_26 = arith.constant 0 : index
    %c0_27 = arith.constant 0 : index
    %c0_28 = arith.constant 0 : index
    %52 = vector.load %arg7[%c0_26, %c0_27, %c0_28] : memref<1x16x512xf32, #tpu.memory_space<vmem>>, vector<1x16x512xf32>
    %53 = vector.shape_cast %52 : vector<1x16x512xf32> to vector<16x512xf32>
    %54 = vector.shape_cast %49 : vector<16x512xf32> to vector<1x16x512xf32>
    tpu.vector_store %arg7[%c0_26, %c0_27, %c0_28], %54 {strides = array<i32>} : memref<1x16x512xf32, #tpu.memory_space<vmem>>, vector<1x16x512xf32>,
    %c0_29 = arith.constant 0 : index
    %c0_30 = arith.constant 0 : index
    %c0_31 = arith.constant 0 : index
    %55 = vector.load %arg8[%c0_29, %c0_30, %c0_31] : memref<1x16x512xf32, #tpu.memory_space<vmem>>, vector<1x16x512xf32>
    %56 = vector.shape_cast %55 : vector<1x16x512xf32> to vector<16x512xf32>
    %57 = vector.shape_cast %47 : vector<16x512xf32> to vector<1x16x512xf32>
    tpu.vector_store %arg8[%c0_29, %c0_30, %c0_31], %57 {strides = array<i32>} : memref<1x16x512xf32, #tpu.memory_space<vmem>>, vector<1x16x512xf32>,
    return
  }
  func.func @transform_0(%arg0: i32, %arg1: i32) -> (i32, i32, i32) {
    %c0_i32 = arith.constant 0 : i32
    %c0_i32_0 = arith.constant 0 : i32
    return %arg1, %arg0, %c0_i32 : i32, i32, i32
  }
  func.func @transform_1(%arg0: i32, %arg1: i32) -> (i32, i32, i32) {
    %c0_i32 = arith.constant 0 : i32
    %c0_i32_0 = arith.constant 0 : i32
    return %arg1, %arg0, %c0_i32 : i32, i32, i32
  }
  func.func @transform_2(%arg0: i32, %arg1: i32) -> (i32, i32) {
    %c0_i32 = arith.constant 0 : i32
    %c0_i32_0 = arith.constant 0 : i32
    return %arg0, %c0_i32 : i32, i32
  }
  func.func @transform_3(%arg0: i32, %arg1: i32) -> (i32, i32) {
    %c0_i32 = arith.constant 0 : i32
    %c0_i32_0 = arith.constant 0 : i32
    return %arg0, %c0_i32 : i32, i32
  }
  func.func @transform_4(%arg0: i32, %arg1: i32) -> (i32, i32) {
    %c0_i32 = arith.constant 0 : i32
    %c0_i32_0 = arith.constant 0 : i32
    %c0_i32_1 = arith.constant 0 : i32
    return %c0_i32, %c0_i32_0 : i32, i32
  }
  func.func @transform_5(%arg0: i32, %arg1: i32) -> (i32, i32, i32) {
    %c0_i32 = arith.constant 0 : i32
    %c0_i32_0 = arith.constant 0 : i32
    return %arg1, %arg0, %c0_i32 : i32, i32, i32
  }
  func.func @transform_6(%arg0: i32, %arg1: i32) -> (i32, i32, i32) {
    %c0_i32 = arith.constant 0 : i32
    %c0_i32_0 = arith.constant 0 : i32
    return %arg1, %arg0, %c0_i32 : i32, i32, i32
  }
}

</mosaic_0001>

<bundles_post_ra>
// kernel: memory_block_forward.1
= control target key start
LH: loop header
LB: loop body
LE: loop exit
PB: predicated region body
PF: predicated region fallthrough
CT: control target
= control target key end

     0   :  { %s5464_s21 = smov 0   ;;  %s5466_s22 = smov 0   ;;  %s7303_s0 = inlined_call_operand.vmem [shape: f32[4,32,2048], index: 0, kind: input, shape index: {}]   ;;  %s7304_s1 = inlined_call_operand.vmem [shape: f32[4,32,1], index: 1, kind: input, shape index: {}]   ;;  %s7305_s2 = inlined_call_operand.vmem [shape: f32[32,512], index: 2, kind: input, shape index: {}]   ;;  %s7306_s3 = inlined_call_operand.vmem [shape: f32[32,512], index: 3, kind: input, shape index: {}]   ;;  %s7307_s4 = inlined_call_operand.vmem [shape: bf16[512,2048], index: 4, kind: input, shape index: {}]   ;;  %s7308_s5 = inlined_call_operand.vmem [shape: f32[4,32,512], index: 5, kind: output, shape index: {0}]   ;;  %s7309_s6 = inlined_call_operand.vmem [shape: f32[4,32,512], index: 6, kind: output, shape index: {1}]  }
   0x1   :  { %7310 = sst [smem:[#allocation6_spill]] %s7303_s0  ;;  %s5468_s23 = smov 0  }
   0x2   :  { %s5470_s24 = smov 0   ;;  %s5472_s25 = smov 0  }
   0x3 LB: > { %s26_s26 = sadd.s32 1, %s5418_s23  ;;  %s29_s27 = sadd.s32 1, %s5422_s24  ;;  %s5426_s25 = sphi %s5472_s25, %s17_s25   ;;  %s5422_s24 = sphi %s5470_s24, %s7319_s24   ;;  %s5418_s23 = sphi %s5468_s23, %s7318_s23   ;;  %s5414_s22 = sphi %s5466_s22, %s7317_s22   ;;  %s5410_s21 = sphi %s5464_s21, %s7316_s21  }
   0x4   : > { %p27_p0 = scmp.ge.s32.totalorder %s26_s26, 4  ;;  %p4695_p1 = scmp.ge.s32.totalorder %s5426_s25, 1 }
   0x5   : > { %p280_p2 = scmp.lt.s32.totalorder %s5426_s25, 9 }
   0x6   : > { %s7321_s26 = smov (%p27_p0, %s26_s26), 0  ;;  %s7323_s27 = smov (!%p27_p0, %s29_s27), %s5422_s24 }
   0x7   : > { %7311 = sst [smem:[#allocation4_spill]] %s7321_s26  ;;  %p281_p3 = pnand %p4695_p1, %p280_p2 }
   0x8   : > { %p31_p4 = scmp.ge.s32.totalorder %s7323_s27, 2  ;;  %s4696_s28 = sshll.u32 (!%p281_p3), %s5414_s22, 1 }
   0x9   : > { %284 = sbr.rel (%p281_p3) target bundleno = 863 (0x35f), region = 40  ;;  %p352_p5 = scmp.lt.s32.totalorder (!%p281_p3), %s5410_s21, 3 }
   0xa   : > { %s7325_s27 = smov (%p31_p4, %s7323_s27), 0  ;;  %p354_p6 = scmp.lt.s32.totalorder (!%p281_p3), %s4696_s28, 3 }
   0xb   : > { %7312 = sst [smem:[#allocation5_spill]] %s7325_s27  ;;  %s7313_s0 = sld [smem:[#allocation6_spill]] (!%p281_p3) }
   0xc   : > { %p4717_p7 = scmp.ne.s32.totalorder (!%p281_p3), %s5410_s21, 0 }
  0x10   : > { %s353_s29 = scalar_select %p352_p5, %s5410_s21, 3 }
  0x11   : > { %s7327_s28 = smov (!%p354_p6, %s4696_s28), 3 }
  0x12   : > { %s4698_s30 = sshll.u32 %s353_s29, 6  ;;  %s4701_s7 = sshll.u32 %s353_s29, 2 }
  0x13   : > { %s4697_s8 = sshll.u32 %s7327_s28, 4  ;;  %s368_s9 = sadd.s32 %s4701_s7, %s7327_s28 }
  0x14   : > { %s358_s10 = sadd.s32 %s4698_s30, %s4697_s8  ;;  %s4702_s11 = sshll.u32 %s368_s9, 3 }
  0x15   : > { %s4699_s12 = sshll.u32 %s358_s10, 3  ;;  %s5501_s15 = scalar_lea.vmem %s7304_s1, %s4702_s11 }
  0x16   : > { %s5506_s18 = scalar_lea.vmem %s7313_s0, %s4699_s12  ;;  %s5232_s19 = sshll.u32 %s7327_s28, 5 }
  0x17   : > { %s377_s27 = scalar_lea.vmem %s7305_s2, %s5232_s19  ;;  %s5514_s30 = scalar_lea.vmem %s7306_s3, %s5232_s19 }
  0x18   : > { %s4710_s8 = sshll.u32 %s7327_s28, 2  ;;  %s4711_s9 = sshll.u32 %s353_s29, 4  ;;  %v412_v0 = vld [vmem:[%s377_s27] sm:$0xff] (!%p4717_p7)  ;;  %v413_v1 = vld [vmem:[%s377_s27 + $0x8] sm:$0xff] (!%p4717_p7)  ;;  %v414_v2 = vld [vmem:[%s377_s27 + $0x10] sm:$0xff] (!%p4717_p7) }
  0x19   : > { %s393_s10 = sadd.s32 %s4711_s9, %s4710_s8  ;;  %411 = sbr.rel (%p4717_p7) target bundleno = 33 (0x21), region = 44  ;;  %420 = vst [vmem:[#allocation2] sm:$0xff] (!%p4717_p7), %v412_v0  ;;  %421 = vst [vmem:[#allocation2 + $0x8] sm:$0xff] (!%p4717_p7), %v413_v1  ;;  %v415_v3 = vld [vmem:[%s377_s27 + $0x18] sm:$0xff] (!%p4717_p7)  ;;  %v416_v4 = vld [vmem:[%s377_s27 + $0x20] sm:$0xff] (!%p4717_p7) }
  0x1a   : > { %s4712_s11 = sshll.u32 %s393_s10, 3  ;;  %422 = vst [vmem:[#allocation2 + $0x10] sm:$0xff] (!%p4717_p7), %v414_v2  ;;  %v417_v5 = vld [vmem:[%s377_s27 + $0x28] sm:$0xff] (!%p4717_p7)  ;;  %423 = vst [vmem:[#allocation2 + $0x18] sm:$0xff] (!%p4717_p7), %v415_v3  ;;  %v418_v6 = vld [vmem:[%s377_s27 + $0x30] sm:$0xff] (!%p4717_p7) }
  0x1b   : > { %s5519_s16 = scalar_lea.vmem %s7308_s5, %s4712_s11  ;;  %s5524_s0 = scalar_lea.vmem %s7309_s6, %s4712_s11  ;;  %424 = vst [vmem:[#allocation2 + $0x20] sm:$0xff] (!%p4717_p7), %v416_v4  ;;  %425 = vst [vmem:[#allocation2 + $0x28] sm:$0xff] (!%p4717_p7), %v417_v5  ;;  %v419_v7 = vld [vmem:[%s377_s27 + $0x38] sm:$0xff] (!%p4717_p7)  ;;  %v428_v8 = vld [vmem:[%s5514_s30] sm:$0xff] (!%p4717_p7) }
  0x1c   : > { %426 = vst [vmem:[#allocation2 + $0x30] sm:$0xff] (!%p4717_p7), %v418_v6  ;;  %427 = vst [vmem:[#allocation2 + $0x38] sm:$0xff] (!%p4717_p7), %v419_v7  ;;  %v429_v9 = vld [vmem:[%s5514_s30 + $0x8] sm:$0xff] (!%p4717_p7)  ;;  %v430_v10 = vld [vmem:[%s5514_s30 + $0x10] sm:$0xff] (!%p4717_p7) }
  0x1d   : > { %436 = vst [vmem:[#allocation3] sm:$0xff] (!%p4717_p7), %v428_v8  ;;  %v431_v11 = vld [vmem:[%s5514_s30 + $0x18] sm:$0xff] (!%p4717_p7)  ;;  %437 = vst [vmem:[#allocation3 + $0x8] sm:$0xff] (!%p4717_p7), %v429_v9  ;;  %v432_v12 = vld [vmem:[%s5514_s30 + $0x20] sm:$0xff] (!%p4717_p7) }
  0x1e   : > { %438 = vst [vmem:[#allocation3 + $0x10] sm:$0xff] (!%p4717_p7), %v430_v10  ;;  %439 = vst [vmem:[#allocation3 + $0x18] sm:$0xff] (!%p4717_p7), %v431_v11  ;;  %v433_v13 = vld [vmem:[%s5514_s30 + $0x28] sm:$0xff] (!%p4717_p7)  ;;  %v434_v14 = vld [vmem:[%s5514_s30 + $0x30] sm:$0xff] (!%p4717_p7) }
  0x1f   : > { %440 = vst [vmem:[#allocation3 + $0x20] sm:$0xff] (!%p4717_p7), %v432_v12  ;;  %441 = vst [vmem:[#allocation3 + $0x28] sm:$0xff] (!%p4717_p7), %v433_v13  ;;  %v435_v15 = vld [vmem:[%s5514_s30 + $0x38] sm:$0xff] (!%p4717_p7) }
  0x20   : > { %442 = vst [vmem:[#allocation3 + $0x30] sm:$0xff] %v434_v14  ;;  %443 = vst [vmem:[#allocation3 + $0x38] sm:$0xff] %v435_v15 }
  0x21 PF: > { %v444_v16 = vld [vmem:[%s5501_s15] sm:$0xff]  ;;  %v445_v17 = vld [vmem:[%s5501_s15 + $0x8] sm:$0xff]  ;;  %v5428_v19 = vmov 0  }
  0x22   : > { %v526_v18 = vld [vmem:[%s7307_s4] sm:$0xff]  ;;  %5307 = vset.pattern.permute.xlu0 %v5428_v19  ;;  %v446_v20 = vsub.f32 1.0, %v444_v16  ;;  %v527_v22 = vld [vmem:[%s7307_s4 + $0x8] sm:$0xff]  ;;  %v447_v31 = vsub.f32 1.0, %v445_v17 }
  0x23   : > { %v534_v21 = vld [vmem:[%s7307_s4 + $0x40] sm:$0xff]  ;;  %v535_v23 = vld [vmem:[%s7307_s4 + $0x48] sm:$0xff] }
  0x24   : > { %v4719_v24 = vcombine.high %v526_v18, %v534_v21  ;;  %v4721_v25 = vcombine.high %v527_v22, %v535_v23  ;;  %v4718_v26 = vcombine.low %v526_v18, %v534_v21  ;;  %v4720_v27 = vcombine.low %v527_v22, %v535_v23  ;;  %v542_v28 = vld [vmem:[%s7307_s4 + $0x80] sm:$0xff]  ;;  %v543_v30 = vld [vmem:[%s7307_s4 + $0x88] sm:$0xff]  ;;  %458 = vperm.xlu0 %5307, %v446_v20  }
  0x25   : > { %v550_v29 = vld [vmem:[%s7307_s4 + $0xc0] sm:$0xff]  ;;  %v551_v33 = vld [vmem:[%s7307_s4 + $0xc8] sm:$0xff] }
  0x26   : > { %v4735_v32 = vcombine.high %v542_v28, %v550_v29  ;;  %v558_v34 = vld [vmem:[%s7307_s4 + $0x100] sm:$0xff]  ;;  %3598 = vmatprep.subr.bf16.mxu0 %v4719_v24  ;;  %3684 = vmatprep.subr.bf16.mxu1 %v4721_v25  ;;  %v4737_v36 = vcombine.high %v543_v30, %v551_v33  ;;  %v559_v37 = vld [vmem:[%s7307_s4 + $0x108] sm:$0xff]  ;;  %v4734_v39 = vcombine.low %v542_v28, %v550_v29 }
  0x27   : > { %v566_v35 = vld [vmem:[%s7307_s4 + $0x140] sm:$0xff]  ;;  %v567_v38 = vld [vmem:[%s7307_s4 + $0x148] sm:$0xff]  ;;  %3599 = vmatpush1.bf16.msra.mxu0 %v4718_v26  ;;  %3685 = vmatpush1.bf16.msra.mxu1 %v4720_v27  ;;  %v4736_v40 = vcombine.low %v543_v30, %v551_v33 }
  0x28   : > { %3600 = vmatprep.subr.bf16.mxu0 %v4735_v32  ;;  %3686 = vmatprep.subr.bf16.mxu1 %v4737_v36  ;;  %v4751_v41 = vcombine.high %v558_v34, %v566_v35  ;;  %v4753_v42 = vcombine.high %v559_v37, %v567_v38  ;;  %v574_v43 = vld [vmem:[%s7307_s4 + $0x180] sm:$0xff]  ;;  %v575_v45 = vld [vmem:[%s7307_s4 + $0x188] sm:$0xff]  ;;  %v4750_v47 = vcombine.low %v558_v34, %v566_v35 }
  0x29   : > { %463 = vperm.xlu0 %5307, %v447_v31   ;;  %v582_v44 = vld [vmem:[%s7307_s4 + $0x1c0] sm:$0xff]  ;;  %v583_v46 = vld [vmem:[%s7307_s4 + $0x1c8] sm:$0xff]  ;;  %v4752_v48 = vcombine.low %v559_v37, %v567_v38 }
  0x2a   : > { %v4767_v49 = vcombine.high %v574_v43, %v582_v44  ;;  %v4769_v50 = vcombine.high %v575_v45, %v583_v46  ;;  %v590_v51 = vld [vmem:[%s7307_s4 + $0x200] sm:$0xff]  ;;  %v591_v53 = vld [vmem:[%s7307_s4 + $0x208] sm:$0xff]  ;;  %v4766_v55 = vcombine.low %v574_v43, %v582_v44  ;;  %v4768_v56 = vcombine.low %v575_v45, %v583_v46 }
  0x2b   : > { %3601 = vmatpush1.bf16.msra.mxu0 %v4734_v39  ;;  %3687 = vmatpush1.bf16.msra.mxu1 %v4736_v40  ;;  %v598_v52 = vld [vmem:[%s7307_s4 + $0x240] sm:$0xff]  ;;  %v599_v54 = vld [vmem:[%s7307_s4 + $0x248] sm:$0xff] }
  0x2c   : > { %3602 = vmatprep.subr.bf16.mxu0 %v4751_v41  ;;  %3688 = vmatprep.subr.bf16.mxu1 %v4753_v42  ;;  %v4783_v57 = vcombine.high %v590_v51, %v598_v52  ;;  %v4785_v58 = vcombine.high %v591_v53, %v599_v54  ;;  %v606_v59 = vld [vmem:[%s7307_s4 + $0x280] sm:$0xff]  ;;  %v607_v61 = vld [vmem:[%s7307_s4 + $0x288] sm:$0xff]  ;;  %v4782_v63 = vcombine.low %v590_v51, %v598_v52 }
  0x2d   : > { %v614_v60 = vld [vmem:[%s7307_s4 + $0x2c0] sm:$0xff]  ;;  %v615_v62 = vld [vmem:[%s7307_s4 + $0x2c8] sm:$0xff]  ;;  %v4784_v0 = vcombine.low %v591_v53, %v599_v54 }
  0x2e   : > { %v4799_v1 = vcombine.high %v606_v59, %v614_v60  ;;  %v4801_v2 = vcombine.high %v607_v61, %v615_v62  ;;  %v622_v3 = vld [vmem:[%s7307_s4 + $0x300] sm:$0xff]  ;;  %v623_v5 = vld [vmem:[%s7307_s4 + $0x308] sm:$0xff]  ;;  %v4798_v7 = vcombine.low %v606_v59, %v614_v60  ;;  %v4800_v8 = vcombine.low %v607_v61, %v615_v62 }
  0x2f   : > { %3603 = vmatpush1.bf16.msra.mxu0 %v4750_v47  ;;  %3689 = vmatpush1.bf16.msra.mxu1 %v4752_v48  ;;  %v630_v4 = vld [vmem:[%s7307_s4 + $0x340] sm:$0xff]  ;;  %v631_v6 = vld [vmem:[%s7307_s4 + $0x348] sm:$0xff] }
  0x30   : > { %3604 = vmatprep.subr.bf16.mxu0 %v4767_v49  ;;  %3690 = vmatprep.subr.bf16.mxu1 %v4769_v50  ;;  %v4815_v9 = vcombine.high %v622_v3, %v630_v4  ;;  %v4817_v10 = vcombine.high %v623_v5, %v631_v6  ;;  %v638_v11 = vld [vmem:[%s7307_s4 + $0x380] sm:$0xff]  ;;  %v639_v13 = vld [vmem:[%s7307_s4 + $0x388] sm:$0xff]  ;;  %v4814_v16 = vcombine.low %v622_v3, %v630_v4 }
  0x31   : > { %v646_v12 = vld [vmem:[%s7307_s4 + $0x3c0] sm:$0xff]  ;;  %v647_v14 = vld [vmem:[%s7307_s4 + $0x3c8] sm:$0xff]  ;;  %v4816_v17 = vcombine.low %v623_v5, %v631_v6 }
  0x32   : > { %v5636_v15 = vld [vmem:[%s7307_s4 + $0x800] sm:$0xff]  ;;  %v4831_v18 = vcombine.high %v638_v11, %v646_v12  ;;  %v5646_v20 = vld [vmem:[%s7307_s4 + $0x808] sm:$0xff]  ;;  %v4833_v22 = vcombine.high %v639_v13, %v647_v14  ;;  %v4830_v29 = vcombine.low %v638_v11, %v646_v12  ;;  %v4832_v30 = vcombine.low %v639_v13, %v647_v14 }
  0x33   : > { %3605 = vmatpush1.bf16.msra.mxu0 %v4766_v55  ;;  %3691 = vmatpush1.bf16.msra.mxu1 %v4768_v56  ;;  %v5641_v19 = vld [vmem:[%s7307_s4 + $0x840] sm:$0xff]  ;;  %v5651_v21 = vld [vmem:[%s7307_s4 + $0x848] sm:$0xff] }
  0x34   : > { %3606 = vmatprep.subr.bf16.mxu0 %v4783_v57  ;;  %3692 = vmatprep.subr.bf16.mxu1 %v4785_v58  ;;  %v654_v23 = vld [vmem:[%s7307_s4 + $0x400] sm:$0xff]  ;;  %v4974_v24 = vcombine.low %v5636_v15, %v5641_v19  ;;  %v4976_v25 = vcombine.low %v5646_v20, %v5651_v21  ;;  %v655_v27 = vld [vmem:[%s7307_s4 + $0x408] sm:$0xff] }
  0x35   : > { %v662_v26 = vld [vmem:[%s7307_s4 + $0x440] sm:$0xff]  ;;  %v663_v28 = vld [vmem:[%s7307_s4 + $0x448] sm:$0xff] }
  0x36   : > { %v4847_v31 = vcombine.high %v654_v23, %v662_v26  ;;  %v4849_v32 = vcombine.high %v655_v27, %v663_v28  ;;  %v670_v33 = vld [vmem:[%s7307_s4 + $0x480] sm:$0xff]  ;;  %v671_v35 = vld [vmem:[%s7307_s4 + $0x488] sm:$0xff]  ;;  %v4846_v37 = vcombine.low %v654_v23, %v662_v26  ;;  %v4848_v38 = vcombine.low %v655_v27, %v663_v28 }
  0x37   : > { %3607 = vmatpush1.bf16.msra.mxu0 %v4782_v63  ;;  %3693 = vmatpush1.bf16.msra.mxu1 %v4784_v0  ;;  %v678_v34 = vld [vmem:[%s7307_s4 + $0x4c0] sm:$0xff]  ;;  %v679_v36 = vld [vmem:[%s7307_s4 + $0x4c8] sm:$0xff] }
  0x38   : > { %3608 = vmatprep.subr.bf16.mxu0 %v4799_v1  ;;  %3694 = vmatprep.subr.bf16.mxu1 %v4801_v2  ;;  %v4863_v39 = vcombine.high %v670_v33, %v678_v34  ;;  %v4865_v40 = vcombine.high %v671_v35, %v679_v36  ;;  %v686_v41 = vld [vmem:[%s7307_s4 + $0x500] sm:$0xff]  ;;  %v687_v43 = vld [vmem:[%s7307_s4 + $0x508] sm:$0xff]  ;;  %v4862_v45 = vcombine.low %v670_v33, %v678_v34 }
  0x39   : > { %v694_v42 = vld [vmem:[%s7307_s4 + $0x540] sm:$0xff]  ;;  %v695_v44 = vld [vmem:[%s7307_s4 + $0x548] sm:$0xff]  ;;  %v4864_v46 = vcombine.low %v671_v35, %v679_v36  ;;  %v4975_v33 = vcombine.high %v5636_v15, %v5641_v19  ;;  %v4977_v34 = vcombine.high %v5646_v20, %v5651_v21 }
  0x3a   : > { %v4879_v47 = vcombine.high %v686_v41, %v694_v42  ;;  %v4881_v48 = vcombine.high %v687_v43, %v695_v44  ;;  %v702_v49 = vld [vmem:[%s7307_s4 + $0x580] sm:$0xff]  ;;  %v703_v51 = vld [vmem:[%s7307_s4 + $0x588] sm:$0xff]  ;;  %v4878_v53 = vcombine.low %v686_v41, %v694_v42  ;;  %v4880_v54 = vcombine.low %v687_v43, %v695_v44  ;;  %v454_v41 = vld [vmem:[#allocation2 + $0x30] sm:$0xff] }
  0x3b   : > { %3609 = vmatpush1.bf16.msra.mxu0 %v4798_v7  ;;  %3695 = vmatpush1.bf16.msra.mxu1 %v4800_v8  ;;  %v710_v50 = vld [vmem:[%s7307_s4 + $0x5c0] sm:$0xff]  ;;  %v711_v52 = vld [vmem:[%s7307_s4 + $0x5c8] sm:$0xff]  ;;  %v455_v42 = vld [vmem:[#allocation2 + $0x38] sm:$0xff] }
  0x3c   : > { %3610 = vmatprep.subr.bf16.mxu0 %v4815_v9  ;;  %3696 = vmatprep.subr.bf16.mxu1 %v4817_v10  ;;  %v4895_v55 = vcombine.high %v702_v49, %v710_v50  ;;  %v4897_v56 = vcombine.high %v703_v51, %v711_v52  ;;  %v718_v57 = vld [vmem:[%s7307_s4 + $0x600] sm:$0xff]  ;;  %v719_v59 = vld [vmem:[%s7307_s4 + $0x608] sm:$0xff]  ;;  %v4894_v61 = vcombine.low %v702_v49, %v710_v50 }
  0x3d   : > { %v726_v58 = vld [vmem:[%s7307_s4 + $0x640] sm:$0xff]  ;;  %v727_v60 = vld [vmem:[%s7307_s4 + $0x648] sm:$0xff]  ;;  %v4896_v62 = vcombine.low %v703_v51, %v711_v52 }
  0x3e   : > { %v4911_v63 = vcombine.high %v718_v57, %v726_v58  ;;  %v4913_v0 = vcombine.high %v719_v59, %v727_v60  ;;  %v734_v1 = vld [vmem:[%s7307_s4 + $0x680] sm:$0xff]  ;;  %v735_v3 = vld [vmem:[%s7307_s4 + $0x688] sm:$0xff]  ;;  %v4910_v5 = vcombine.low %v718_v57, %v726_v58  ;;  %v4912_v6 = vcombine.low %v719_v59, %v727_v60 }
  0x3f   : > { %3611 = vmatpush1.bf16.msra.mxu0 %v4814_v16  ;;  %3697 = vmatpush1.bf16.msra.mxu1 %v4816_v17  ;;  %v742_v2 = vld [vmem:[%s7307_s4 + $0x6c0] sm:$0xff]  ;;  %v743_v4 = vld [vmem:[%s7307_s4 + $0x6c8] sm:$0xff] }
  0x40   : > { %3612 = vmatprep.subr.bf16.mxu0 %v4831_v18  ;;  %3698 = vmatprep.subr.bf16.mxu1 %v4833_v22  ;;  %v4927_v7 = vcombine.high %v734_v1, %v742_v2  ;;  %v4929_v8 = vcombine.high %v735_v3, %v743_v4  ;;  %v750_v9 = vld [vmem:[%s7307_s4 + $0x700] sm:$0xff]  ;;  %v751_v11 = vld [vmem:[%s7307_s4 + $0x708] sm:$0xff]  ;;  %v4926_v13 = vcombine.low %v734_v1, %v742_v2 }
  0x41   : > { %v758_v10 = vld [vmem:[%s7307_s4 + $0x740] sm:$0xff]  ;;  %v759_v12 = vld [vmem:[%s7307_s4 + $0x748] sm:$0xff]  ;;  %v4928_v14 = vcombine.low %v735_v3, %v743_v4 }
  0x42   : > { %v4943_v16 = vcombine.high %v750_v9, %v758_v10  ;;  %v4945_v17 = vcombine.high %v751_v11, %v759_v12  ;;  %v766_v18 = vld [vmem:[%s7307_s4 + $0x780] sm:$0xff]  ;;  %v767_v23 = vld [vmem:[%s7307_s4 + $0x788] sm:$0xff]  ;;  %v4942_v27 = vcombine.low %v750_v9, %v758_v10  ;;  %v4944_v28 = vcombine.low %v751_v11, %v759_v12 }
  0x43   : > { %3613 = vmatpush1.bf16.msra.mxu0 %v4830_v29  ;;  %3699 = vmatpush1.bf16.msra.mxu1 %v4832_v30  ;;  %v774_v22 = vld [vmem:[%s7307_s4 + $0x7c0] sm:$0xff]  ;;  %v775_v26 = vld [vmem:[%s7307_s4 + $0x7c8] sm:$0xff] }
  0x44   : > { %3614 = vmatprep.subr.bf16.mxu0 %v4847_v31  ;;  %3700 = vmatprep.subr.bf16.mxu1 %v4849_v32  ;;  %v4959_v29 = vcombine.high %v766_v18, %v774_v22  ;;  %v4961_v30 = vcombine.high %v767_v23, %v775_v26  ;;  %v4958_v31 = vcombine.low %v766_v18, %v774_v22  ;;  %v448_v36 = vld [vmem:[#allocation2] sm:$0xff]  ;;  %v823_v1 = vld [vmem:[%s7307_s4 + $0x948] sm:$0xff] }
  0x45   : > { %v4960_v32 = vcombine.low %v767_v23, %v775_v26  ;;  %v798_v51 = vld [vmem:[%s7307_s4 + $0x880] sm:$0xff]  ;;  %v831_v19 = vld [vmem:[%s7307_s4 + $0x988] sm:$0xff] }
  0x46   : > { %v814_v60 = vld [vmem:[%s7307_s4 + $0x900] sm:$0xff]  ;;  %v839_v20 = vld [vmem:[%s7307_s4 + $0x9c8] sm:$0xff] }
  0x47   : > { %3615 = vmatpush1.bf16.msra.mxu0 %v4846_v37  ;;  %3701 = vmatpush1.bf16.msra.mxu1 %v4848_v38  ;;  %v449_v37 = vld [vmem:[#allocation2 + $0x8] sm:$0xff]  ;;  %v450_v38 = vld [vmem:[#allocation2 + $0x10] sm:$0xff]  ;;  %v838_v15 = vld [vmem:[%s7307_s4 + $0x9c0] sm:$0xff] }
  0x48   : > { %3616 = vmatprep.subr.bf16.mxu0 %v4863_v39  ;;  %3702 = vmatprep.subr.bf16.mxu1 %v4865_v40  ;;  %v452_v39 = vld [vmem:[#allocation2 + $0x20] sm:$0xff]  ;;  %v453_v40 = vld [vmem:[#allocation2 + $0x28] sm:$0xff] }
  0x49   : > { %v846_v9 = vld [vmem:[%s7307_s4 + $0xa00] sm:$0xff]  ;;  %v847_v11 = vld [vmem:[%s7307_s4 + $0xa08] sm:$0xff] }
  0x4a   : > { %v854_v10 = vld [vmem:[%s7307_s4 + $0xa40] sm:$0xff]  ;;  %v855_v12 = vld [vmem:[%s7307_s4 + $0xa48] sm:$0xff] }
  0x4b   : > { %3617 = vmatpush1.bf16.msra.mxu0 %v4862_v45  ;;  %3703 = vmatpush1.bf16.msra.mxu1 %v4864_v46  ;;  %v451_v46 = vld [vmem:[#allocation2 + $0x18] sm:$0xff]  ;;  %v862_v18 = vld [vmem:[%s7307_s4 + $0xa80] sm:$0xff]  ;;  %v863_v23 = vld [vmem:[%s7307_s4 + $0xa88] sm:$0xff] }
  0x4c   : > { %3618 = vmatprep.subr.bf16.mxu0 %v4879_v47  ;;  %3704 = vmatprep.subr.bf16.mxu1 %v4881_v48  ;;  %v870_v22 = vld [vmem:[%s7307_s4 + $0xac0] sm:$0xff]  ;;  %v871_v26 = vld [vmem:[%s7307_s4 + $0xac8] sm:$0xff] }
  0x4f   : > { %3619 = vmatpush1.bf16.msra.mxu0 %v4878_v53  ;;  %3705 = vmatpush1.bf16.msra.mxu1 %v4880_v54  ;;  %v806_v53 = vld [vmem:[%s7307_s4 + $0x8c0] sm:$0xff]  ;;  %v799_v54 = vld [vmem:[%s7307_s4 + $0x888] sm:$0xff] }
  0x50   : > { %3620 = vmatprep.subr.bf16.mxu0 %v4895_v55  ;;  %3706 = vmatprep.subr.bf16.mxu1 %v4897_v56  ;;  %v807_v55 = vld [vmem:[%s7307_s4 + $0x8c8] sm:$0xff]  ;;  %v4990_v3 = vcombine.low %v798_v51, %v806_v53 }
  0x51   : > { %v4992_v4 = vcombine.low %v799_v54, %v807_v55 }
  0x53   : > { %3621 = vmatpush1.bf16.msra.mxu0 %v4894_v61  ;;  %3707 = vmatpush1.bf16.msra.mxu1 %v4896_v62  ;;  %v4991_v61 = vcombine.high %v798_v51, %v806_v53  ;;  %v4993_v62 = vcombine.high %v799_v54, %v807_v55  ;;  %v911_v51 = vld [vmem:[%s7307_s4 + $0xc08] sm:$0xff] }
  0x54   : > { %3622 = vmatprep.subr.bf16.mxu0 %v4911_v63  ;;  %3708 = vmatprep.subr.bf16.mxu1 %v4913_v0  ;;  %v822_v63 = vld [vmem:[%s7307_s4 + $0x940] sm:$0xff]  ;;  %v815_v0 = vld [vmem:[%s7307_s4 + $0x908] sm:$0xff] }
  0x55   : > { %v5006_v21 = vcombine.low %v814_v60, %v822_v63 }
  0x57   : > { %3623 = vmatpush1.bf16.msra.mxu0 %v4910_v5  ;;  %3709 = vmatpush1.bf16.msra.mxu1 %v4912_v6  ;;  %v5007_v5 = vcombine.high %v814_v60, %v822_v63  ;;  %v5009_v6 = vcombine.high %v815_v0, %v823_v1  ;;  %v926_v60 = vld [vmem:[%s7307_s4 + $0xc80] sm:$0xff]  ;;  %v935_v63 = vld [vmem:[%s7307_s4 + $0xcc8] sm:$0xff] }
  0x58   : > { %3624 = vmatprep.subr.bf16.mxu0 %v4927_v7  ;;  %3710 = vmatprep.subr.bf16.mxu1 %v4929_v8  ;;  %v830_v7 = vld [vmem:[%s7307_s4 + $0x980] sm:$0xff]  ;;  %v5025_v8 = vcombine.high %v831_v19, %v839_v20 }
  0x5b   : > { %3625 = vmatpush1.bf16.msra.mxu0 %v4926_v13  ;;  %3711 = vmatpush1.bf16.msra.mxu1 %v4928_v14  ;;  %v5022_v13 = vcombine.low %v830_v7, %v838_v15  ;;  %v5024_v14 = vcombine.low %v831_v19, %v839_v20 }
  0x5c   : > { %3626 = vmatprep.subr.bf16.mxu0 %v4943_v16  ;;  %3712 = vmatprep.subr.bf16.mxu1 %v4945_v17  ;;  %v5039_v16 = vcombine.high %v846_v9, %v854_v10  ;;  %v5041_v17 = vcombine.high %v847_v11, %v855_v12 }
  0x5f   : > { %3627 = vmatpush1.bf16.msra.mxu0 %v4942_v27  ;;  %3713 = vmatpush1.bf16.msra.mxu1 %v4944_v28  ;;  %v5038_v27 = vcombine.low %v846_v9, %v854_v10  ;;  %v5040_v28 = vcombine.low %v847_v11, %v855_v12  ;;  %v959_v9 = vld [vmem:[%s7307_s4 + $0xd88] sm:$0xff] }
  0x60   : > { %3628 = vmatprep.subr.bf16.mxu0 %v4959_v29  ;;  %3714 = vmatprep.subr.bf16.mxu1 %v4961_v30  ;;  %v5055_v29 = vcombine.high %v862_v18, %v870_v22  ;;  %v5057_v30 = vcombine.high %v863_v23, %v871_v26  ;;  %v967_v10 = vld [vmem:[%s7307_s4 + $0xdc8] sm:$0xff] }
  0x63   : > { %3629 = vmatpush1.bf16.msra.mxu0 %v4958_v31  ;;  %3715 = vmatpush1.bf16.msra.mxu1 %v4960_v32  ;;  %v878_v31 = vld [vmem:[%s7307_s4 + $0xb00] sm:$0xff] }
  0x64   : > { %3641 = vmatprep.subr.bf16.mxu0 %v4975_v33  ;;  %3727 = vmatprep.subr.bf16.mxu1 %v4977_v34  ;;  %v886_v32 = vld [vmem:[%s7307_s4 + $0xb40] sm:$0xff]  ;;  %v879_v33 = vld [vmem:[%s7307_s4 + $0xb08] sm:$0xff] }
  0x65   : > { %v887_v34 = vld [vmem:[%s7307_s4 + $0xb48] sm:$0xff] }
  0xa3   : > { %v5757_v35 = vpop.permute.xlu0 %458 }
  0xa4   : > { %v466_v43 = vmul.f32 %v5757_v35, %v448_v36  ;;  %v467_v44 = vmul.f32 %v5757_v35, %v449_v37  ;;  %v468_v47 = vmul.f32 %v5757_v35, %v450_v38  ;;  %v469_v59 = vmul.f32 %v5757_v35, %v451_v46 }
  0xa5   : > { %v5054_v36 = vcombine.low %v862_v18, %v870_v22  ;;  %v5056_v37 = vcombine.low %v863_v23, %v871_v26  ;;  %v5071_v38 = vcombine.high %v878_v31, %v886_v32  ;;  %v5072_v46 = vcombine.low %v879_v33, %v887_v34  ;;  %v975_v18 = vld [vmem:[%s7307_s4 + $0xe08] sm:$0xff] }
  0xa6   : > { %v983_v22 = vld [vmem:[%s7307_s4 + $0xe48] sm:$0xff]  ;;  %v5152_v26 = vcombine.low %v959_v9, %v967_v10 }
  0xa8   : > { %v5761_v45 = vpop.permute.xlu0 %463 }
  0xa9   : > { %v470_v48 = vmul.f32 %v5761_v45, %v452_v39  ;;  %v471_v49 = vmul.f32 %v5761_v45, %v453_v40  ;;  %v472_v50 = vmul.f32 %v5761_v45, %v454_v41  ;;  %v473_v52 = vmul.f32 %v5761_v45, %v455_v42  ;;  %v894_v40 = vld [vmem:[%s7307_s4 + $0xb80] sm:$0xff]  ;;  %v895_v42 = vld [vmem:[%s7307_s4 + $0xb88] sm:$0xff] }
  0xaa   : > { %v5073_v39 = vcombine.high %v879_v33, %v887_v34  ;;  %v902_v41 = vld [vmem:[%s7307_s4 + $0xbc0] sm:$0xff]  ;;  %v5168_v34 = vcombine.low %v975_v18, %v983_v22 }
  0xab   : > { %v5780_v56 = vpack.c.bf16 %v470_v48, %v466_v43  ;;  %v5782_v57 = vpack.c.bf16 %v471_v49, %v467_v44  ;;  %v5784_v58 = vpack.c.bf16 %v472_v50, %v468_v47  ;;  %v5801_v2 = vpack.c.bf16 %v473_v52, %v469_v59  ;;  %v903_v43 = vld [vmem:[%s7307_s4 + $0xbc8] sm:$0xff]  ;;  %v910_v49 = vld [vmem:[%s7307_s4 + $0xc00] sm:$0xff] }
  0xac   : > { %v5070_v44 = vcombine.low %v878_v31, %v886_v32  ;;  %v5087_v47 = vcombine.high %v894_v40, %v902_v41  ;;  %v5089_v48 = vcombine.high %v895_v42, %v903_v43  ;;  %v918_v50 = vld [vmem:[%s7307_s4 + $0xc40] sm:$0xff]  ;;  %v919_v52 = vld [vmem:[%s7307_s4 + $0xc48] sm:$0xff]  ;;  %v5086_v53 = vcombine.low %v894_v40, %v902_v41 }
  0xad   : > { %3630 = vmatprep.mubr.bf16.mxu0 %v5782_v57  ;;  %3716 = vmatprep.mubr.bf16.mxu1 %v5782_v57  ;;  %v5088_v54 = vcombine.low %v895_v42, %v903_v43  ;;  %v5103_v55 = vcombine.high %v910_v49, %v918_v50  ;;  %v5105_v59 = vcombine.high %v911_v51, %v919_v52  ;;  %v991_v31 = vld [vmem:[%s7307_s4 + $0xe88] sm:$0xff] }
  0xae   : > { %3631 = vmatmul.mubr.bf16.vlgmr.msra.gmra.mrb[0].mxu0 %v5780_v56  ;;  %3717 = vmatmul.mubr.bf16.vlgmr.msra.gmra.mrb[0].mxu1 %v5780_v56  ;;  %v999_v32 = vld [vmem:[%s7307_s4 + $0xec8] sm:$0xff] }
  0xaf   : > { %3642 = vmatpush1.bf16.msra.mxu0 %v4974_v24  ;;  %3728 = vmatpush1.bf16.msra.mxu1 %v4976_v25  ;;  %v5008_v24 = vcombine.low %v815_v0, %v823_v1  ;;  %v5023_v25 = vcombine.high %v830_v7, %v838_v15  ;;  %v5102_v0 = vcombine.low %v910_v49, %v918_v50  ;;  %v943_v7 = vld [vmem:[%s7307_s4 + $0xd08] sm:$0xff] }
  0xb0   : > { %3673 = vmatprep.mubr.bf16.mxu0 %v5801_v2  ;;  %3759 = vmatprep.mubr.bf16.mxu1 %v5801_v2  ;;  %v5104_v1 = vcombine.low %v911_v51, %v919_v52  ;;  %v951_v15 = vld [vmem:[%s7307_s4 + $0xd48] sm:$0xff]  ;;  %v5184_v43 = vcombine.low %v991_v31, %v999_v32 }
  0xb1   : > { %3643 = vmatprep.subr.bf16.mxu0 %v4991_v61  ;;  %3729 = vmatprep.subr.bf16.mxu1 %v4993_v62  ;;  %v934_v61 = vld [vmem:[%s7307_s4 + $0xcc0] sm:$0xff]  ;;  %v927_v62 = vld [vmem:[%s7307_s4 + $0xc88] sm:$0xff]  ;;  %v5136_v12 = vcombine.low %v943_v7, %v951_v15 }
  0xb2   : > { %v5118_v19 = vcombine.low %v926_v60, %v934_v61  ;;  %v5120_v20 = vcombine.low %v927_v62, %v935_v63  ;;  %v1007_v40 = vld [vmem:[%s7307_s4 + $0xf08] sm:$0xff] }
  0xb3   : > { %3644 = vmatpush1.bf16.msra.mxu0 %v4990_v3  ;;  %3730 = vmatpush1.bf16.msra.mxu1 %v4992_v4  ;;  %v5119_v3 = vcombine.high %v926_v60, %v934_v61  ;;  %v5121_v4 = vcombine.high %v927_v62, %v935_v63  ;;  %v1015_v41 = vld [vmem:[%s7307_s4 + $0xf48] sm:$0xff]  ;;  %v529_v60 = vld [vmem:[%s7307_s4 + $0x18] sm:$0xff] }
  0xb4   : > { %3645 = vmatprep.subr.bf16.mxu0 %v5007_v5  ;;  %3731 = vmatprep.subr.bf16.mxu1 %v5009_v6  ;;  %v942_v5 = vld [vmem:[%s7307_s4 + $0xd00] sm:$0xff]  ;;  %v1023_v49 = vld [vmem:[%s7307_s4 + $0xf88] sm:$0xff]  ;;  %v5200_v52 = vcombine.low %v1007_v40, %v1015_v41  ;;  %v537_v61 = vld [vmem:[%s7307_s4 + $0x58] sm:$0xff] }
  0xb5   : > { %v950_v6 = vld [vmem:[%s7307_s4 + $0xd40] sm:$0xff]  ;;  %v1031_v50 = vld [vmem:[%s7307_s4 + $0xfc8] sm:$0xff] }
  0xb6   : > { %v5134_v11 = vcombine.low %v942_v5, %v950_v6  ;;  %v5216_v63 = vcombine.low %v1023_v49, %v1031_v50 }
  0xb7   : > { %3646 = vmatpush1.bf16.msra.mxu0 %v5006_v21  ;;  %3732 = vmatpush1.bf16.msra.mxu1 %v5008_v24  ;;  %v5135_v21 = vcombine.high %v942_v5, %v950_v6  ;;  %v5137_v24 = vcombine.high %v943_v7, %v951_v15  ;;  %v545_v5 = vld [vmem:[%s7307_s4 + $0x98] sm:$0xff]  ;;  %v4724_v15 = vcombine.low %v529_v60, %v537_v61 }
  0xb8   : > { %3647 = vmatprep.subr.bf16.mxu0 %v5023_v25  ;;  %3733 = vmatprep.subr.bf16.mxu1 %v5025_v8  ;;  %v958_v25 = vld [vmem:[%s7307_s4 + $0xd80] sm:$0xff]  ;;  %v553_v6 = vld [vmem:[%s7307_s4 + $0xd8] sm:$0xff] }
  0xb9   : > { %v966_v8 = vld [vmem:[%s7307_s4 + $0xdc0] sm:$0xff] }
  0xba   : > { %v5150_v23 = vcombine.low %v958_v25, %v966_v8 }
  0xbb   : > { %3648 = vmatpush1.bf16.msra.mxu0 %v5022_v13  ;;  %3734 = vmatpush1.bf16.msra.mxu1 %v5024_v14  ;;  %v5151_v13 = vcombine.high %v958_v25, %v966_v8  ;;  %v5153_v14 = vcombine.high %v959_v9, %v967_v10  ;;  %v561_v25 = vld [vmem:[%s7307_s4 + $0x118] sm:$0xff]  ;;  %v4740_v10 = vcombine.low %v545_v5, %v553_v6 }
  0xbc   : > { %3649 = vmatprep.subr.bf16.mxu0 %v5039_v16  ;;  %3735 = vmatprep.subr.bf16.mxu1 %v5041_v17  ;;  %v974_v16 = vld [vmem:[%s7307_s4 + $0xe00] sm:$0xff]  ;;  %v569_v8 = vld [vmem:[%s7307_s4 + $0x158] sm:$0xff] }
  0xbd   : > { %v982_v17 = vld [vmem:[%s7307_s4 + $0xe40] sm:$0xff] }
  0xbe   : > { %v5166_v33 = vcombine.low %v974_v16, %v982_v17 }
  0xbf   : > { %3650 = vmatpush1.bf16.msra.mxu0 %v5038_v27  ;;  %3736 = vmatpush1.bf16.msra.mxu1 %v5040_v28  ;;  %v5167_v27 = vcombine.high %v974_v16, %v982_v17  ;;  %v5169_v28 = vcombine.high %v975_v18, %v983_v22  ;;  %v577_v16 = vld [vmem:[%s7307_s4 + $0x198] sm:$0xff]  ;;  %v4756_v22 = vcombine.low %v561_v25, %v569_v8 }
  0xc0   : > { %3651 = vmatprep.subr.bf16.mxu0 %v5055_v29  ;;  %3737 = vmatprep.subr.bf16.mxu1 %v5057_v30  ;;  %v990_v29 = vld [vmem:[%s7307_s4 + $0xe80] sm:$0xff]  ;;  %v585_v17 = vld [vmem:[%s7307_s4 + $0x1d8] sm:$0xff] }
  0xc1   : > { %v998_v30 = vld [vmem:[%s7307_s4 + $0xec0] sm:$0xff] }
  0xc2   : > { %v5182_v42 = vcombine.low %v990_v29, %v998_v30 }
  0xc3   : > { %3652 = vmatpush1.bf16.msra.mxu0 %v5054_v36  ;;  %3738 = vmatpush1.bf16.msra.mxu1 %v5056_v37  ;;  %v5183_v36 = vcombine.high %v990_v29, %v998_v30  ;;  %v5185_v37 = vcombine.high %v991_v31, %v999_v32  ;;  %v593_v29 = vld [vmem:[%s7307_s4 + $0x218] sm:$0xff]  ;;  %v4772_v32 = vcombine.low %v577_v16, %v585_v17 }
  0xc4   : > { %3653 = vmatprep.subr.bf16.mxu0 %v5071_v38  ;;  %3739 = vmatprep.subr.bf16.mxu1 %v5073_v39  ;;  %v1006_v38 = vld [vmem:[%s7307_s4 + $0xf00] sm:$0xff]  ;;  %v601_v30 = vld [vmem:[%s7307_s4 + $0x258] sm:$0xff] }
  0xc5   : > { %v1014_v39 = vld [vmem:[%s7307_s4 + $0xf40] sm:$0xff] }
  0xc6   : > { %v5198_v51 = vcombine.low %v1006_v38, %v1014_v39 }
  0xc7   : > { %3654 = vmatpush1.bf16.msra.mxu0 %v5070_v44  ;;  %3740 = vmatpush1.bf16.msra.mxu1 %v5072_v46  ;;  %v5199_v44 = vcombine.high %v1006_v38, %v1014_v39  ;;  %v5201_v46 = vcombine.high %v1007_v40, %v1015_v41  ;;  %v609_v38 = vld [vmem:[%s7307_s4 + $0x298] sm:$0xff]  ;;  %v4788_v41 = vcombine.low %v593_v29, %v601_v30 }
  0xc8   : > { %3655 = vmatprep.subr.bf16.mxu0 %v5087_v47  ;;  %3741 = vmatprep.subr.bf16.mxu1 %v5089_v48  ;;  %v1022_v47 = vld [vmem:[%s7307_s4 + $0xf80] sm:$0xff]  ;;  %v617_v39 = vld [vmem:[%s7307_s4 + $0x2d8] sm:$0xff] }
  0xc9   : > { %v1030_v48 = vld [vmem:[%s7307_s4 + $0xfc0] sm:$0xff] }
  0xca   : > { %v5214_v62 = vcombine.low %v1022_v47, %v1030_v48 }
  0xcb   : > { %3656 = vmatpush1.bf16.msra.mxu0 %v5086_v53  ;;  %3742 = vmatpush1.bf16.msra.mxu1 %v5088_v54  ;;  %v5215_v53 = vcombine.high %v1022_v47, %v1030_v48  ;;  %v5217_v54 = vcombine.high %v1023_v49, %v1031_v50  ;;  %v625_v47 = vld [vmem:[%s7307_s4 + $0x318] sm:$0xff]  ;;  %v4804_v50 = vcombine.low %v609_v38, %v617_v39 }
  0xcc   : > { %3657 = vmatprep.subr.bf16.mxu0 %v5103_v55  ;;  %3743 = vmatprep.subr.bf16.mxu1 %v5105_v59  ;;  %v528_v55 = vld [vmem:[%s7307_s4 + $0x10] sm:$0xff]  ;;  %v633_v48 = vld [vmem:[%s7307_s4 + $0x358] sm:$0xff] }
  0xcd   : > { %v536_v59 = vld [vmem:[%s7307_s4 + $0x50] sm:$0xff] }
  0xce   : > { %v4722_v7 = vcombine.low %v528_v55, %v536_v59 }
  0xcf   : > { %3658 = vmatpush1.bf16.msra.mxu0 %v5102_v0  ;;  %3744 = vmatpush1.bf16.msra.mxu1 %v5104_v1  ;;  %v4723_v0 = vcombine.high %v528_v55, %v536_v59  ;;  %v4725_v1 = vcombine.high %v529_v60, %v537_v61  ;;  %v641_v55 = vld [vmem:[%s7307_s4 + $0x398] sm:$0xff]  ;;  %v4820_v61 = vcombine.low %v625_v47, %v633_v48 }
  0xd0   : > { %3659 = vmatprep.subr.bf16.mxu0 %v5119_v3  ;;  %3745 = vmatprep.subr.bf16.mxu1 %v5121_v4  ;;  %v544_v3 = vld [vmem:[%s7307_s4 + $0x90] sm:$0xff]  ;;  %v649_v59 = vld [vmem:[%s7307_s4 + $0x3d8] sm:$0xff] }
  0xd1   : > { %v552_v4 = vld [vmem:[%s7307_s4 + $0xd0] sm:$0xff] }
  0xd2   : > { %v4738_v9 = vcombine.low %v544_v3, %v552_v4 }
  0xd3   : > { %3660 = vmatpush1.bf16.msra.mxu0 %v5118_v19  ;;  %3746 = vmatpush1.bf16.msra.mxu1 %v5120_v20  ;;  %v4739_v19 = vcombine.high %v544_v3, %v552_v4  ;;  %v4741_v20 = vcombine.high %v545_v5, %v553_v6  ;;  %v657_v3 = vld [vmem:[%s7307_s4 + $0x418] sm:$0xff]  ;;  %v4836_v6 = vcombine.low %v641_v55, %v649_v59 }
  0xd4   : > { %3661 = vmatprep.subr.bf16.mxu0 %v5135_v21  ;;  %3747 = vmatprep.subr.bf16.mxu1 %v5137_v24  ;;  %v560_v21 = vld [vmem:[%s7307_s4 + $0x110] sm:$0xff]  ;;  %v665_v4 = vld [vmem:[%s7307_s4 + $0x458] sm:$0xff] }
  0xd5   : > { %v568_v24 = vld [vmem:[%s7307_s4 + $0x150] sm:$0xff] }
  0xd6   : > { %v4754_v18 = vcombine.low %v560_v21, %v568_v24 }
  0xd7   : > { %3662 = vmatpush1.bf16.msra.mxu0 %v5134_v11  ;;  %3748 = vmatpush1.bf16.msra.mxu1 %v5136_v12  ;;  %v4755_v11 = vcombine.high %v560_v21, %v568_v24  ;;  %v4757_v12 = vcombine.high %v561_v25, %v569_v8  ;;  %v673_v21 = vld [vmem:[%s7307_s4 + $0x498] sm:$0xff]  ;;  %v4852_v8 = vcombine.low %v657_v3, %v665_v4 }
  0xd8   : > { %3663 = vmatprep.subr.bf16.mxu0 %v5151_v13  ;;  %3749 = vmatprep.subr.bf16.mxu1 %v5153_v14  ;;  %v576_v13 = vld [vmem:[%s7307_s4 + $0x190] sm:$0xff]  ;;  %v681_v24 = vld [vmem:[%s7307_s4 + $0x4d8] sm:$0xff] }
  0xd9   : > { %v584_v14 = vld [vmem:[%s7307_s4 + $0x1d0] sm:$0xff] }
  0xda   : > { %v4770_v31 = vcombine.low %v576_v13, %v584_v14 }
  0xdb   : > { %3664 = vmatpush1.bf16.msra.mxu0 %v5150_v23  ;;  %3750 = vmatpush1.bf16.msra.mxu1 %v5152_v26  ;;  %v4771_v23 = vcombine.high %v576_v13, %v584_v14  ;;  %v4773_v26 = vcombine.high %v577_v16, %v585_v17  ;;  %v689_v13 = vld [vmem:[%s7307_s4 + $0x518] sm:$0xff]  ;;  %v4868_v17 = vcombine.low %v673_v21, %v681_v24 }
  0xdc   : > { %3665 = vmatprep.subr.bf16.mxu0 %v5167_v27  ;;  %3751 = vmatprep.subr.bf16.mxu1 %v5169_v28  ;;  %v592_v27 = vld [vmem:[%s7307_s4 + $0x210] sm:$0xff]  ;;  %v697_v14 = vld [vmem:[%s7307_s4 + $0x558] sm:$0xff] }
  0xdd   : > { %v600_v28 = vld [vmem:[%s7307_s4 + $0x250] sm:$0xff] }
  0xde   : > { %v4786_v40 = vcombine.low %v592_v27, %v600_v28 }
  0xdf   : > { %3666 = vmatpush1.bf16.msra.mxu0 %v5166_v33  ;;  %3752 = vmatpush1.bf16.msra.mxu1 %v5168_v34  ;;  %v4787_v33 = vcombine.high %v592_v27, %v600_v28  ;;  %v4789_v34 = vcombine.high %v593_v29, %v601_v30  ;;  %v705_v27 = vld [vmem:[%s7307_s4 + $0x598] sm:$0xff]  ;;  %v4884_v30 = vcombine.low %v689_v13, %v697_v14 }
  0xe0   : > { %3667 = vmatprep.subr.bf16.mxu0 %v5183_v36  ;;  %3753 = vmatprep.subr.bf16.mxu1 %v5185_v37  ;;  %v608_v36 = vld [vmem:[%s7307_s4 + $0x290] sm:$0xff]  ;;  %v713_v28 = vld [vmem:[%s7307_s4 + $0x5d8] sm:$0xff] }
  0xe1   : > { %v616_v37 = vld [vmem:[%s7307_s4 + $0x2d0] sm:$0xff] }
  0xe2   : > { %v4802_v49 = vcombine.low %v608_v36, %v616_v37 }
  0xe3   : > { %3668 = vmatpush1.bf16.msra.mxu0 %v5182_v42  ;;  %3754 = vmatpush1.bf16.msra.mxu1 %v5184_v43  ;;  %v4803_v42 = vcombine.high %v608_v36, %v616_v37  ;;  %v4805_v43 = vcombine.high %v609_v38, %v617_v39  ;;  %v721_v36 = vld [vmem:[%s7307_s4 + $0x618] sm:$0xff]  ;;  %v4900_v39 = vcombine.low %v705_v27, %v713_v28 }
  0xe4   : > { %3669 = vmatprep.subr.bf16.mxu0 %v5199_v44  ;;  %3755 = vmatprep.subr.bf16.mxu1 %v5201_v46  ;;  %v624_v44 = vld [vmem:[%s7307_s4 + $0x310] sm:$0xff]  ;;  %v729_v37 = vld [vmem:[%s7307_s4 + $0x658] sm:$0xff] }
  0xe5   : > { %v632_v46 = vld [vmem:[%s7307_s4 + $0x350] sm:$0xff] }
  0xe6   : > { %v4818_v60 = vcombine.low %v624_v44, %v632_v46 }
  0xe7   : > { %3670 = vmatpush1.bf16.msra.mxu0 %v5198_v51  ;;  %3756 = vmatpush1.bf16.msra.mxu1 %v5200_v52  ;;  %v4819_v51 = vcombine.high %v624_v44, %v632_v46  ;;  %v4821_v52 = vcombine.high %v625_v47, %v633_v48  ;;  %v737_v44 = vld [vmem:[%s7307_s4 + $0x698] sm:$0xff]  ;;  %v4916_v48 = vcombine.low %v721_v36, %v729_v37 }
  0xe8   : > { %3671 = vmatprep.subr.bf16.mxu0 %v5215_v53  ;;  %3757 = vmatprep.subr.bf16.mxu1 %v5217_v54  ;;  %v640_v53 = vld [vmem:[%s7307_s4 + $0x390] sm:$0xff]  ;;  %v745_v46 = vld [vmem:[%s7307_s4 + $0x6d8] sm:$0xff] }
  0xe9   : > { %v648_v54 = vld [vmem:[%s7307_s4 + $0x3d0] sm:$0xff] }
  0xea   : > { %v4834_v5 = vcombine.low %v640_v53, %v648_v54 }
  0xeb   : > { %3672 = vmatpush1.bf16.msra.mxu0 %v5214_v62  ;;  %3758 = vmatpush1.bf16.msra.mxu1 %v5216_v63  ;;  %v4835_v62 = vcombine.high %v640_v53, %v648_v54  ;;  %v4837_v63 = vcombine.high %v641_v55, %v649_v59  ;;  %v753_v53 = vld [vmem:[%s7307_s4 + $0x718] sm:$0xff]  ;;  %v4932_v59 = vcombine.low %v737_v44, %v745_v46 }
  0xec   : > { %3770 = vmatprep.subr.bf16.mxu0 %v4723_v0  ;;  %3856 = vmatprep.subr.bf16.mxu1 %v4725_v1  ;;  %v656_v0 = vld [vmem:[%s7307_s4 + $0x410] sm:$0xff]  ;;  %v761_v54 = vld [vmem:[%s7307_s4 + $0x758] sm:$0xff] }
  0xed   : > { %v664_v1 = vld [vmem:[%s7307_s4 + $0x450] sm:$0xff] }
  0xee   : > { %3674 = vmatmul.mubr.bf16.vlgmr.msra.gmra.mrb[0].mxu0 %v5784_v58  ;;  %3760 = vmatmul.mubr.bf16.vlgmr.msra.gmra.mrb[0].mxu1 %v5784_v58  ;;  %v4850_v25 = vcombine.low %v656_v0, %v664_v1 }
  0xef   : > { %3771 = vmatpush1.bf16.msra.mxu0 %v4722_v7  ;;  %3802 = vmatprep.mubr.bf16.mxu0 %v5782_v57  ;;  %v4851_v7 = vcombine.high %v656_v0, %v664_v1  ;;  %v769_v0 = vld [vmem:[%s7307_s4 + $0x798] sm:$0xff] }
  0xf0   : > { %3857 = vmatpush1.bf16.msra.mxu1 %v4724_v15  ;;  %3888 = vmatprep.mubr.bf16.mxu1 %v5782_v57  ;;  %v4853_v15 = vcombine.high %v657_v3, %v665_v4  ;;  %v777_v1 = vld [vmem:[%s7307_s4 + $0x7d8] sm:$0xff]  ;;  %v4948_v4 = vcombine.low %v753_v53, %v761_v54 }
  0xf1   : > { %3772 = vmatprep.subr.bf16.mxu0 %v4739_v19  ;;  %3858 = vmatprep.subr.bf16.mxu1 %v4741_v20  ;;  %v672_v19 = vld [vmem:[%s7307_s4 + $0x490] sm:$0xff] }
  0xf2   : > { %v680_v20 = vld [vmem:[%s7307_s4 + $0x4d0] sm:$0xff] }
  0xf3   : > { %3773 = vmatpush1.bf16.msra.mxu0 %v4738_v9  ;;  %v4867_v9 = vcombine.high %v672_v19, %v680_v20  ;;  %v4866_v16 = vcombine.low %v672_v19, %v680_v20  ;;  %v785_v19 = vld [vmem:[%s7307_s4 + $0x818] sm:$0xff] }
  0xf4   : > { %3859 = vmatpush1.bf16.msra.mxu1 %v4740_v10  ;;  %3774 = vmatprep.subr.bf16.mxu0 %v4755_v11  ;;  %v4869_v10 = vcombine.high %v673_v21, %v681_v24  ;;  %v688_v11 = vld [vmem:[%s7307_s4 + $0x510] sm:$0xff]  ;;  %v793_v20 = vld [vmem:[%s7307_s4 + $0x858] sm:$0xff]  ;;  %v4964_v24 = vcombine.low %v769_v0, %v777_v1 }
  0xf5   : > { %3860 = vmatprep.subr.bf16.mxu1 %v4757_v12  ;;  %v696_v12 = vld [vmem:[%s7307_s4 + $0x550] sm:$0xff] }
  0xf6   : > { %v4882_v29 = vcombine.low %v688_v11, %v696_v12 }
  0xf7   : > { %3775 = vmatpush1.bf16.msra.mxu0 %v4754_v18  ;;  %v4883_v18 = vcombine.high %v688_v11, %v696_v12  ;;  %v801_v12 = vld [vmem:[%s7307_s4 + $0x898] sm:$0xff] }
  0xf8   : > { %3861 = vmatpush1.bf16.msra.mxu1 %v4756_v22  ;;  %3776 = vmatprep.subr.bf16.mxu0 %v4771_v23  ;;  %v4885_v22 = vcombine.high %v689_v13, %v697_v14  ;;  %v704_v23 = vld [vmem:[%s7307_s4 + $0x590] sm:$0xff]  ;;  %v809_v13 = vld [vmem:[%s7307_s4 + $0x8d8] sm:$0xff]  ;;  %v4980_v14 = vcombine.low %v785_v19, %v793_v20 }
  0xf9   : > { %3862 = vmatprep.subr.bf16.mxu1 %v4773_v26  ;;  %v712_v26 = vld [vmem:[%s7307_s4 + $0x5d0] sm:$0xff] }
  0xfa   : > { %v4898_v38 = vcombine.low %v704_v23, %v712_v26 }
  0xfb   : > { %3777 = vmatpush1.bf16.msra.mxu0 %v4770_v31  ;;  %v4899_v31 = vcombine.high %v704_v23, %v712_v26  ;;  %v817_v23 = vld [vmem:[%s7307_s4 + $0x918] sm:$0xff] }
  0xfc   : > { %3863 = vmatpush1.bf16.msra.mxu1 %v4772_v32  ;;  %3778 = vmatprep.subr.bf16.mxu0 %v4787_v33  ;;  %v4901_v32 = vcombine.high %v705_v27, %v713_v28  ;;  %v720_v33 = vld [vmem:[%s7307_s4 + $0x610] sm:$0xff]  ;;  %v825_v26 = vld [vmem:[%s7307_s4 + $0x958] sm:$0xff]  ;;  %v4996_v28 = vcombine.low %v801_v12, %v809_v13 }
  0xfd   : > { %3864 = vmatprep.subr.bf16.mxu1 %v4789_v34  ;;  %v728_v34 = vld [vmem:[%s7307_s4 + $0x650] sm:$0xff] }
  0xfe   : > { %v4914_v47 = vcombine.low %v720_v33, %v728_v34 }
  0xff   : > { %3779 = vmatpush1.bf16.msra.mxu0 %v4786_v40  ;;  %v4915_v40 = vcombine.high %v720_v33, %v728_v34  ;;  %v833_v33 = vld [vmem:[%s7307_s4 + $0x998] sm:$0xff] }
 0x100   : > { %3865 = vmatpush1.bf16.msra.mxu1 %v4788_v41  ;;  %3780 = vmatprep.subr.bf16.mxu0 %v4803_v42  ;;  %v4917_v41 = vcombine.high %v721_v36, %v729_v37  ;;  %v736_v42 = vld [vmem:[%s7307_s4 + $0x690] sm:$0xff]  ;;  %v841_v34 = vld [vmem:[%s7307_s4 + $0x9d8] sm:$0xff]  ;;  %v5012_v37 = vcombine.low %v817_v23, %v825_v26 }
 0x101   : > { %3866 = vmatprep.subr.bf16.mxu1 %v4805_v43  ;;  %v744_v43 = vld [vmem:[%s7307_s4 + $0x6d0] sm:$0xff] }
 0x102   : > { %v4930_v55 = vcombine.low %v736_v42, %v744_v43 }
 0x103   : > { %3781 = vmatpush1.bf16.msra.mxu0 %v4802_v49  ;;  %v4931_v49 = vcombine.high %v736_v42, %v744_v43  ;;  %v849_v42 = vld [vmem:[%s7307_s4 + $0xa18] sm:$0xff] }
 0x104   : > { %3867 = vmatpush1.bf16.msra.mxu1 %v4804_v50  ;;  %3782 = vmatprep.subr.bf16.mxu0 %v4819_v51  ;;  %v4933_v50 = vcombine.high %v737_v44, %v745_v46  ;;  %v752_v51 = vld [vmem:[%s7307_s4 + $0x710] sm:$0xff]  ;;  %v857_v43 = vld [vmem:[%s7307_s4 + $0xa58] sm:$0xff]  ;;  %v5028_v46 = vcombine.low %v833_v33, %v841_v34 }
 0x105   : > { %3868 = vmatprep.subr.bf16.mxu1 %v4821_v52  ;;  %v760_v52 = vld [vmem:[%s7307_s4 + $0x750] sm:$0xff] }
 0x106   : > { %v4946_v3 = vcombine.low %v752_v51, %v760_v52 }
 0x107   : > { %3783 = vmatpush1.bf16.msra.mxu0 %v4818_v60  ;;  %v4947_v60 = vcombine.high %v752_v51, %v760_v52  ;;  %v865_v51 = vld [vmem:[%s7307_s4 + $0xa98] sm:$0xff] }
 0x108   : > { %3869 = vmatpush1.bf16.msra.mxu1 %v4820_v61  ;;  %3784 = vmatprep.subr.bf16.mxu0 %v4835_v62  ;;  %v4949_v61 = vcombine.high %v753_v53, %v761_v54  ;;  %v768_v62 = vld [vmem:[%s7307_s4 + $0x790] sm:$0xff]  ;;  %v873_v52 = vld [vmem:[%s7307_s4 + $0xad8] sm:$0xff]  ;;  %v5044_v54 = vcombine.low %v849_v42, %v857_v43 }
 0x109   : > { %3870 = vmatprep.subr.bf16.mxu1 %v4837_v63  ;;  %v776_v63 = vld [vmem:[%s7307_s4 + $0x7d0] sm:$0xff] }
 0x10a   : > { %v4962_v21 = vcombine.low %v768_v62, %v776_v63 }
 0x10b   : > { %3785 = vmatpush1.bf16.msra.mxu0 %v4834_v5  ;;  %v4963_v5 = vcombine.high %v768_v62, %v776_v63  ;;  %v881_v62 = vld [vmem:[%s7307_s4 + $0xb18] sm:$0xff] }
 0x10c   : > { %3871 = vmatpush1.bf16.msra.mxu1 %v4836_v6  ;;  %3786 = vmatprep.subr.bf16.mxu0 %v4851_v7  ;;  %v4965_v6 = vcombine.high %v769_v0, %v777_v1  ;;  %v784_v7 = vld [vmem:[%s7307_s4 + $0x810] sm:$0xff]  ;;  %v889_v63 = vld [vmem:[%s7307_s4 + $0xb58] sm:$0xff]  ;;  %v5060_v1 = vcombine.low %v865_v51, %v873_v52 }
 0x10d   : > { %3872 = vmatprep.subr.bf16.mxu1 %v4853_v15  ;;  %v792_v15 = vld [vmem:[%s7307_s4 + $0x850] sm:$0xff] }
 0x10e   : > { %v4978_v11 = vcombine.low %v784_v7, %v792_v15 }
 0x10f   : > { %3787 = vmatpush1.bf16.msra.mxu0 %v4850_v25  ;;  %v4979_v25 = vcombine.high %v784_v7, %v792_v15  ;;  %v897_v7 = vld [vmem:[%s7307_s4 + $0xb98] sm:$0xff] }
 0x110   : > { %3873 = vmatpush1.bf16.msra.mxu1 %v4852_v8  ;;  %3788 = vmatprep.subr.bf16.mxu0 %v4867_v9  ;;  %v4981_v8 = vcombine.high %v785_v19, %v793_v20  ;;  %v800_v9 = vld [vmem:[%s7307_s4 + $0x890] sm:$0xff]  ;;  %v905_v15 = vld [vmem:[%s7307_s4 + $0xbd8] sm:$0xff]  ;;  %v5076_v20 = vcombine.low %v881_v62, %v889_v63 }
 0x111   : > { %3874 = vmatprep.subr.bf16.mxu1 %v4869_v10  ;;  %v808_v10 = vld [vmem:[%s7307_s4 + $0x8d0] sm:$0xff] }
 0x112   : > { %v4994_v27 = vcombine.low %v800_v9, %v808_v10 }
 0x113   : > { %3789 = vmatpush1.bf16.msra.mxu0 %v4866_v16  ;;  %v4995_v16 = vcombine.high %v800_v9, %v808_v10  ;;  %v913_v9 = vld [vmem:[%s7307_s4 + $0xc18] sm:$0xff] }
 0x114   : > { %3875 = vmatpush1.bf16.msra.mxu1 %v4868_v17  ;;  %3790 = vmatprep.subr.bf16.mxu0 %v4883_v18  ;;  %v816_v17 = vld [vmem:[%s7307_s4 + $0x910] sm:$0xff]  ;;  %v921_v10 = vld [vmem:[%s7307_s4 + $0xc58] sm:$0xff] }
 0x115   : > { %3876 = vmatprep.subr.bf16.mxu1 %v4885_v22  ;;  %v824_v18 = vld [vmem:[%s7307_s4 + $0x950] sm:$0xff]  ;;  %v4997_v22 = vcombine.high %v801_v12, %v809_v13  ;;  %v5092_v12 = vcombine.low %v897_v7, %v905_v15 }
 0x116   : > { %v5010_v36 = vcombine.low %v816_v17, %v824_v18 }
 0x117   : > { %3791 = vmatpush1.bf16.msra.mxu0 %v4882_v29  ;;  %v5011_v29 = vcombine.high %v816_v17, %v824_v18  ;;  %v936_v17 = vld [vmem:[%s7307_s4 + $0xcd0] sm:$0xff]  ;;  %v929_v18 = vld [vmem:[%s7307_s4 + $0xc98] sm:$0xff] }
 0x118   : > { %3877 = vmatpush1.bf16.msra.mxu1 %v4884_v30  ;;  %3792 = vmatprep.subr.bf16.mxu0 %v4899_v31  ;;  %v5013_v30 = vcombine.high %v817_v23, %v825_v26  ;;  %v832_v31 = vld [vmem:[%s7307_s4 + $0x990] sm:$0xff]  ;;  %v5108_v26 = vcombine.low %v913_v9, %v921_v10 }
 0x119   : > { %3878 = vmatprep.subr.bf16.mxu1 %v4901_v32  ;;  %v840_v32 = vld [vmem:[%s7307_s4 + $0x9d0] sm:$0xff] }
 0x11a   : > { %v5026_v44 = vcombine.low %v832_v31, %v840_v32 }
 0x11b   : > { %3793 = vmatpush1.bf16.msra.mxu0 %v4898_v38  ;;  %v5027_v38 = vcombine.high %v832_v31, %v840_v32  ;;  %v945_v31 = vld [vmem:[%s7307_s4 + $0xd18] sm:$0xff] }
 0x11c   : > { %3879 = vmatpush1.bf16.msra.mxu1 %v4900_v39  ;;  %3794 = vmatprep.subr.bf16.mxu0 %v4915_v40  ;;  %v5029_v39 = vcombine.high %v833_v33, %v841_v34  ;;  %v848_v40 = vld [vmem:[%s7307_s4 + $0xa10] sm:$0xff]  ;;  %v953_v32 = vld [vmem:[%s7307_s4 + $0xd58] sm:$0xff] }
 0x11d   : > { %3880 = vmatprep.subr.bf16.mxu1 %v4917_v41  ;;  %v856_v41 = vld [vmem:[%s7307_s4 + $0xa50] sm:$0xff] }
 0x11e   : > { %v5042_v53 = vcombine.low %v848_v40, %v856_v41 }
 0x11f   : > { %3795 = vmatpush1.bf16.msra.mxu0 %v4914_v47  ;;  %v5043_v47 = vcombine.high %v848_v40, %v856_v41  ;;  %v961_v40 = vld [vmem:[%s7307_s4 + $0xd98] sm:$0xff] }
 0x120   : > { %3881 = vmatpush1.bf16.msra.mxu1 %v4916_v48  ;;  %3796 = vmatprep.subr.bf16.mxu0 %v4931_v49  ;;  %v5045_v48 = vcombine.high %v849_v42, %v857_v43  ;;  %v864_v49 = vld [vmem:[%s7307_s4 + $0xa90] sm:$0xff]  ;;  %v969_v41 = vld [vmem:[%s7307_s4 + $0xdd8] sm:$0xff]  ;;  %v5140_v43 = vcombine.low %v945_v31, %v953_v32 }
 0x121   : > { %3882 = vmatprep.subr.bf16.mxu1 %v4933_v50  ;;  %v872_v50 = vld [vmem:[%s7307_s4 + $0xad0] sm:$0xff] }
 0x122   : > { %v5058_v0 = vcombine.low %v864_v49, %v872_v50 }
 0x123   : > { %3797 = vmatpush1.bf16.msra.mxu0 %v4930_v55  ;;  %v5059_v55 = vcombine.high %v864_v49, %v872_v50  ;;  %v977_v49 = vld [vmem:[%s7307_s4 + $0xe18] sm:$0xff] }
 0x124   : > { %3883 = vmatpush1.bf16.msra.mxu1 %v4932_v59  ;;  %3798 = vmatprep.subr.bf16.mxu0 %v4947_v60  ;;  %v5061_v59 = vcombine.high %v865_v51, %v873_v52  ;;  %v880_v60 = vld [vmem:[%s7307_s4 + $0xb10] sm:$0xff]  ;;  %v985_v50 = vld [vmem:[%s7307_s4 + $0xe58] sm:$0xff]  ;;  %v5156_v52 = vcombine.low %v961_v40, %v969_v41 }
 0x125   : > { %3884 = vmatprep.subr.bf16.mxu1 %v4949_v61  ;;  %v888_v61 = vld [vmem:[%s7307_s4 + $0xb50] sm:$0xff] }
 0x126   : > { %v5074_v19 = vcombine.low %v880_v60, %v888_v61 }
 0x127   : > { %3799 = vmatpush1.bf16.msra.mxu0 %v4946_v3  ;;  %v5075_v3 = vcombine.high %v880_v60, %v888_v61  ;;  %v993_v60 = vld [vmem:[%s7307_s4 + $0xe98] sm:$0xff] }
 0x128   : > { %3885 = vmatpush1.bf16.msra.mxu1 %v4948_v4  ;;  %3800 = vmatprep.subr.bf16.mxu0 %v4963_v5  ;;  %v5077_v4 = vcombine.high %v881_v62, %v889_v63  ;;  %v896_v5 = vld [vmem:[%s7307_s4 + $0xb90] sm:$0xff]  ;;  %v1001_v61 = vld [vmem:[%s7307_s4 + $0xed8] sm:$0xff]  ;;  %v5172_v63 = vcombine.low %v977_v49, %v985_v50 }
 0x129   : > { %3886 = vmatprep.subr.bf16.mxu1 %v4965_v6  ;;  %v904_v6 = vld [vmem:[%s7307_s4 + $0xbd0] sm:$0xff] }
 0x12b   : > { %3801 = vmatpush1.bf16.msra.mxu0 %v4962_v21  ;;  %v5091_v21 = vcombine.high %v896_v5, %v904_v6 }
 0x12c   : > { %3887 = vmatpush1.bf16.msra.mxu1 %v4964_v24  ;;  %3813 = vmatprep.subr.bf16.mxu0 %v4979_v25  ;;  %v5093_v24 = vcombine.high %v897_v7, %v905_v15  ;;  %v912_v25 = vld [vmem:[%s7307_s4 + $0xc10] sm:$0xff]  ;;  %v5188_v15 = vcombine.low %v993_v60, %v1001_v61 }
 0x12d   : > { %3899 = vmatprep.subr.bf16.mxu1 %v4981_v8  ;;  %v920_v8 = vld [vmem:[%s7307_s4 + $0xc50] sm:$0xff] }
 0x12e   : > { %3803 = vmatmul.mubr.bf16.vlgmr.msra.gmra.mrb[4].mxu0 %v5780_v56  ;;  %v5107_v13 = vcombine.high %v912_v25, %v920_v8  ;;  %v5106_v23 = vcombine.low %v912_v25, %v920_v8  ;;  %v1025_v25 = vld [vmem:[%s7307_s4 + $0xf98] sm:$0xff] }
 0x12f   : > { %3889 = vmatmul.mubr.bf16.vlgmr.msra.gmra.mrb[4].mxu1 %v5780_v56  ;;  %3814 = vmatpush1.bf16.msra.mxu0 %v4978_v11  ;;  %v5090_v11 = vcombine.low %v896_v5, %v904_v6  ;;  %v1009_v5 = vld [vmem:[%s7307_s4 + $0xf18] sm:$0xff] }
 0x130   : > { %3845 = vmatprep.mubr.bf16.mxu0 %v5801_v2  ;;  %3900 = vmatpush1.bf16.msra.mxu1 %v4980_v14  ;;  %v5109_v14 = vcombine.high %v913_v9, %v921_v10  ;;  %v1017_v6 = vld [vmem:[%s7307_s4 + $0xf58] sm:$0xff] }
 0x131   : > { %3931 = vmatprep.mubr.bf16.mxu1 %v5801_v2  ;;  %3815 = vmatprep.subr.bf16.mxu0 %v4995_v16  ;;  %v928_v16 = vld [vmem:[%s7307_s4 + $0xc90] sm:$0xff]  ;;  %v1033_v8 = vld [vmem:[%s7307_s4 + $0xfd8] sm:$0xff]  ;;  %v5204_v10 = vcombine.low %v1009_v5, %v1017_v6 }
 0x132   : > { %3901 = vmatprep.subr.bf16.mxu1 %v4997_v22  ;;  %v937_v22 = vld [vmem:[%s7307_s4 + $0xcd8] sm:$0xff]  ;;  %v5122_v33 = vcombine.low %v928_v16, %v936_v17 }
 0x133   : > { %3816 = vmatpush1.bf16.msra.mxu0 %v4994_v27  ;;  %v5123_v27 = vcombine.high %v928_v16, %v936_v17  ;;  %v5124_v34 = vcombine.low %v929_v18, %v937_v22  ;;  %v531_v16 = vld [vmem:[%s7307_s4 + $0x28] sm:$0xff] }
 0x134   : > { %3902 = vmatpush1.bf16.msra.mxu1 %v4996_v28  ;;  %3817 = vmatprep.subr.bf16.mxu0 %v5011_v29  ;;  %v5125_v28 = vcombine.high %v929_v18, %v937_v22  ;;  %v944_v29 = vld [vmem:[%s7307_s4 + $0xd10] sm:$0xff]  ;;  %v539_v17 = vld [vmem:[%s7307_s4 + $0x68] sm:$0xff]  ;;  %v5220_v22 = vcombine.low %v1025_v25, %v1033_v8 }
 0x135   : > { %3903 = vmatprep.subr.bf16.mxu1 %v5013_v30  ;;  %v952_v30 = vld [vmem:[%s7307_s4 + $0xd50] sm:$0xff] }
 0x136   : > { %v5138_v42 = vcombine.low %v944_v29, %v952_v30 }
 0x137   : > { %3818 = vmatpush1.bf16.msra.mxu0 %v5010_v36  ;;  %v5139_v36 = vcombine.high %v944_v29, %v952_v30  ;;  %v547_v30 = vld [vmem:[%s7307_s4 + $0xa8] sm:$0xff] }
 0x138   : > { %3904 = vmatpush1.bf16.msra.mxu1 %v5012_v37  ;;  %3819 = vmatprep.subr.bf16.mxu0 %v5027_v38  ;;  %v5141_v37 = vcombine.high %v945_v31, %v953_v32  ;;  %v960_v38 = vld [vmem:[%s7307_s4 + $0xd90] sm:$0xff]  ;;  %v555_v31 = vld [vmem:[%s7307_s4 + $0xe8] sm:$0xff]  ;;  %v4728_v32 = vcombine.low %v531_v16, %v539_v17 }
 0x139   : > { %3905 = vmatprep.subr.bf16.mxu1 %v5029_v39  ;;  %v968_v39 = vld [vmem:[%s7307_s4 + $0xdd0] sm:$0xff] }
 0x13a   : > { %v5154_v51 = vcombine.low %v960_v38, %v968_v39 }
 0x13b   : > { %3820 = vmatpush1.bf16.msra.mxu0 %v5026_v44  ;;  %v5155_v44 = vcombine.high %v960_v38, %v968_v39  ;;  %v563_v38 = vld [vmem:[%s7307_s4 + $0x128] sm:$0xff] }
 0x13c   : > { %3906 = vmatpush1.bf16.msra.mxu1 %v5028_v46  ;;  %3821 = vmatprep.subr.bf16.mxu0 %v5043_v47  ;;  %v5157_v46 = vcombine.high %v961_v40, %v969_v41  ;;  %v976_v47 = vld [vmem:[%s7307_s4 + $0xe10] sm:$0xff]  ;;  %v571_v39 = vld [vmem:[%s7307_s4 + $0x168] sm:$0xff]  ;;  %v4744_v41 = vcombine.low %v547_v30, %v555_v31 }
 0x13d   : > { %3907 = vmatprep.subr.bf16.mxu1 %v5045_v48  ;;  %v984_v48 = vld [vmem:[%s7307_s4 + $0xe50] sm:$0xff] }
 0x13e   : > { %v5170_v62 = vcombine.low %v976_v47, %v984_v48 }
 0x13f   : > { %3822 = vmatpush1.bf16.msra.mxu0 %v5042_v53  ;;  %v5171_v53 = vcombine.high %v976_v47, %v984_v48  ;;  %v579_v47 = vld [vmem:[%s7307_s4 + $0x1a8] sm:$0xff] }
 0x140   : > { %3908 = vmatpush1.bf16.msra.mxu1 %v5044_v54  ;;  %3823 = vmatprep.subr.bf16.mxu0 %v5059_v55  ;;  %v5173_v54 = vcombine.high %v977_v49, %v985_v50  ;;  %v992_v55 = vld [vmem:[%s7307_s4 + $0xe90] sm:$0xff]  ;;  %v587_v48 = vld [vmem:[%s7307_s4 + $0x1e8] sm:$0xff]  ;;  %v4760_v50 = vcombine.low %v563_v38, %v571_v39 }
 0x141   : > { %3909 = vmatprep.subr.bf16.mxu1 %v5061_v59  ;;  %v1000_v59 = vld [vmem:[%s7307_s4 + $0xed0] sm:$0xff] }
 0x142   : > { %v5186_v7 = vcombine.low %v992_v55, %v1000_v59 }
 0x143   : > { %3824 = vmatpush1.bf16.msra.mxu0 %v5058_v0  ;;  %v5187_v0 = vcombine.high %v992_v55, %v1000_v59  ;;  %v595_v55 = vld [vmem:[%s7307_s4 + $0x228] sm:$0xff] }
 0x144   : > { %3910 = vmatpush1.bf16.msra.mxu1 %v5060_v1  ;;  %3825 = vmatprep.subr.bf16.mxu0 %v5075_v3  ;;  %v5189_v1 = vcombine.high %v993_v60, %v1001_v61  ;;  %v1008_v3 = vld [vmem:[%s7307_s4 + $0xf10] sm:$0xff]  ;;  %v603_v59 = vld [vmem:[%s7307_s4 + $0x268] sm:$0xff]  ;;  %v4776_v61 = vcombine.low %v579_v47, %v587_v48 }
 0x145   : > { %3911 = vmatprep.subr.bf16.mxu1 %v5077_v4  ;;  %v1016_v4 = vld [vmem:[%s7307_s4 + $0xf50] sm:$0xff] }
 0x146   : > { %v5202_v9 = vcombine.low %v1008_v3, %v1016_v4 }
 0x147   : > { %3826 = vmatpush1.bf16.msra.mxu0 %v5074_v19  ;;  %v5203_v19 = vcombine.high %v1008_v3, %v1016_v4  ;;  %v611_v3 = vld [vmem:[%s7307_s4 + $0x2a8] sm:$0xff] }
 0x148   : > { %3912 = vmatpush1.bf16.msra.mxu1 %v5076_v20  ;;  %3827 = vmatprep.subr.bf16.mxu0 %v5091_v21  ;;  %v5205_v20 = vcombine.high %v1009_v5, %v1017_v6  ;;  %v1024_v21 = vld [vmem:[%s7307_s4 + $0xf90] sm:$0xff]  ;;  %v619_v4 = vld [vmem:[%s7307_s4 + $0x2e8] sm:$0xff]  ;;  %v4792_v6 = vcombine.low %v595_v55, %v603_v59 }
 0x149   : > { %3913 = vmatprep.subr.bf16.mxu1 %v5093_v24  ;;  %v1032_v24 = vld [vmem:[%s7307_s4 + $0xfd0] sm:$0xff] }
 0x14a   : > { %v5218_v18 = vcombine.low %v1024_v21, %v1032_v24 }
 0x14b   : > { %3828 = vmatpush1.bf16.msra.mxu0 %v5090_v11  ;;  %v5219_v11 = vcombine.high %v1024_v21, %v1032_v24  ;;  %v627_v21 = vld [vmem:[%s7307_s4 + $0x328] sm:$0xff] }
 0x14c   : > { %3914 = vmatpush1.bf16.msra.mxu1 %v5092_v12  ;;  %3829 = vmatprep.subr.bf16.mxu0 %v5107_v13  ;;  %v5221_v12 = vcombine.high %v1025_v25, %v1033_v8  ;;  %v530_v13 = vld [vmem:[%s7307_s4 + $0x20] sm:$0xff]  ;;  %v635_v24 = vld [vmem:[%s7307_s4 + $0x368] sm:$0xff]  ;;  %v4808_v8 = vcombine.low %v611_v3, %v619_v4 }
 0x14d   : > { %3915 = vmatprep.subr.bf16.mxu1 %v5109_v14  ;;  %v538_v14 = vld [vmem:[%s7307_s4 + $0x60] sm:$0xff] }
 0x14e   : > { %v4726_v29 = vcombine.low %v530_v13, %v538_v14 }
 0x14f   : > { %3830 = vmatpush1.bf16.msra.mxu0 %v5106_v23  ;;  %v4727_v23 = vcombine.high %v530_v13, %v538_v14  ;;  %v643_v13 = vld [vmem:[%s7307_s4 + $0x3a8] sm:$0xff] }
 0x150   : > { %3916 = vmatpush1.bf16.msra.mxu1 %v5108_v26  ;;  %3831 = vmatprep.subr.bf16.mxu0 %v5123_v27  ;;  %v4729_v26 = vcombine.high %v531_v16, %v539_v17  ;;  %v546_v27 = vld [vmem:[%s7307_s4 + $0xa0] sm:$0xff]  ;;  %v651_v14 = vld [vmem:[%s7307_s4 + $0x3e8] sm:$0xff]  ;;  %v4824_v17 = vcombine.low %v627_v21, %v635_v24 }
 0x151   : > { %3917 = vmatprep.subr.bf16.mxu1 %v5125_v28  ;;  %v554_v28 = vld [vmem:[%s7307_s4 + $0xe0] sm:$0xff] }
 0x152   : > { %v4742_v40 = vcombine.low %v546_v27, %v554_v28 }
 0x153   : > { %3832 = vmatpush1.bf16.msra.mxu0 %v5122_v33  ;;  %v4743_v33 = vcombine.high %v546_v27, %v554_v28  ;;  %v659_v27 = vld [vmem:[%s7307_s4 + $0x428] sm:$0xff] }
 0x154   : > { %3918 = vmatpush1.bf16.msra.mxu1 %v5124_v34  ;;  %3833 = vmatprep.subr.bf16.mxu0 %v5139_v36  ;;  %v562_v34 = vld [vmem:[%s7307_s4 + $0x120] sm:$0xff]  ;;  %v667_v28 = vld [vmem:[%s7307_s4 + $0x468] sm:$0xff] }
 0x155   : > { %3919 = vmatprep.subr.bf16.mxu1 %v5141_v37  ;;  %v570_v36 = vld [vmem:[%s7307_s4 + $0x160] sm:$0xff]  ;;  %v4745_v37 = vcombine.high %v547_v30, %v555_v31  ;;  %v4840_v30 = vcombine.low %v643_v13, %v651_v14 }
 0x156   : > { %v4758_v49 = vcombine.low %v562_v34, %v570_v36 }
 0x157   : > { %3834 = vmatpush1.bf16.msra.mxu0 %v5138_v42  ;;  %v4759_v42 = vcombine.high %v562_v34, %v570_v36  ;;  %v682_v34 = vld [vmem:[%s7307_s4 + $0x4e0] sm:$0xff]  ;;  %v675_v36 = vld [vmem:[%s7307_s4 + $0x4a8] sm:$0xff] }
 0x158   : > { %3920 = vmatpush1.bf16.msra.mxu1 %v5140_v43  ;;  %3835 = vmatprep.subr.bf16.mxu0 %v5155_v44  ;;  %v4761_v43 = vcombine.high %v563_v38, %v571_v39  ;;  %v578_v44 = vld [vmem:[%s7307_s4 + $0x1a0] sm:$0xff]  ;;  %v4856_v39 = vcombine.low %v659_v27, %v667_v28 }
 0x159   : > { %3921 = vmatprep.subr.bf16.mxu1 %v5157_v46  ;;  %v586_v46 = vld [vmem:[%s7307_s4 + $0x1e0] sm:$0xff] }
 0x15a   : > { %v4774_v60 = vcombine.low %v578_v44, %v586_v46 }
 0x15b   : > { %3836 = vmatpush1.bf16.msra.mxu0 %v5154_v51  ;;  %v4775_v51 = vcombine.high %v578_v44, %v586_v46  ;;  %v691_v44 = vld [vmem:[%s7307_s4 + $0x528] sm:$0xff] }
 0x15c   : > { %3922 = vmatpush1.bf16.msra.mxu1 %v5156_v52  ;;  %3837 = vmatprep.subr.bf16.mxu0 %v5171_v53  ;;  %v4777_v52 = vcombine.high %v579_v47, %v587_v48  ;;  %v594_v53 = vld [vmem:[%s7307_s4 + $0x220] sm:$0xff]  ;;  %v699_v46 = vld [vmem:[%s7307_s4 + $0x568] sm:$0xff] }
 0x15d   : > { %3923 = vmatprep.subr.bf16.mxu1 %v5173_v54  ;;  %v602_v54 = vld [vmem:[%s7307_s4 + $0x260] sm:$0xff] }
 0x15e   : > { %v4790_v5 = vcombine.low %v594_v53, %v602_v54 }
 0x15f   : > { %3838 = vmatpush1.bf16.msra.mxu0 %v5170_v62  ;;  %v4791_v62 = vcombine.high %v594_v53, %v602_v54  ;;  %v707_v53 = vld [vmem:[%s7307_s4 + $0x5a8] sm:$0xff] }
 0x160   : > { %3924 = vmatpush1.bf16.msra.mxu1 %v5172_v63  ;;  %3839 = vmatprep.subr.bf16.mxu0 %v5187_v0  ;;  %v4793_v63 = vcombine.high %v595_v55, %v603_v59  ;;  %v610_v0 = vld [vmem:[%s7307_s4 + $0x2a0] sm:$0xff]  ;;  %v715_v54 = vld [vmem:[%s7307_s4 + $0x5e8] sm:$0xff]  ;;  %v4888_v59 = vcombine.low %v691_v44, %v699_v46 }
 0x161   : > { %3925 = vmatprep.subr.bf16.mxu1 %v5189_v1  ;;  %v618_v1 = vld [vmem:[%s7307_s4 + $0x2e0] sm:$0xff] }
 0x162   : > { %v4806_v25 = vcombine.low %v610_v0, %v618_v1 }
 0x163   : > { %3840 = vmatpush1.bf16.msra.mxu0 %v5186_v7  ;;  %v4807_v7 = vcombine.high %v610_v0, %v618_v1  ;;  %v723_v0 = vld [vmem:[%s7307_s4 + $0x628] sm:$0xff] }
 0x164   : > { %3926 = vmatpush1.bf16.msra.mxu1 %v5188_v15  ;;  %3841 = vmatprep.subr.bf16.mxu0 %v5203_v19  ;;  %v4809_v15 = vcombine.high %v611_v3, %v619_v4  ;;  %v626_v19 = vld [vmem:[%s7307_s4 + $0x320] sm:$0xff]  ;;  %v731_v1 = vld [vmem:[%s7307_s4 + $0x668] sm:$0xff]  ;;  %v4904_v4 = vcombine.low %v707_v53, %v715_v54 }
 0x165   : > { %3927 = vmatprep.subr.bf16.mxu1 %v5205_v20  ;;  %v634_v20 = vld [vmem:[%s7307_s4 + $0x360] sm:$0xff] }
 0x166   : > { %v4822_v16 = vcombine.low %v626_v19, %v634_v20 }
 0x167   : > { %3842 = vmatpush1.bf16.msra.mxu0 %v5202_v9  ;;  %v4823_v9 = vcombine.high %v626_v19, %v634_v20  ;;  %v739_v19 = vld [vmem:[%s7307_s4 + $0x6a8] sm:$0xff] }
 0x168   : > { %3928 = vmatpush1.bf16.msra.mxu1 %v5204_v10  ;;  %3843 = vmatprep.subr.bf16.mxu0 %v5219_v11  ;;  %v4825_v10 = vcombine.high %v627_v21, %v635_v24  ;;  %v642_v11 = vld [vmem:[%s7307_s4 + $0x3a0] sm:$0xff]  ;;  %v747_v20 = vld [vmem:[%s7307_s4 + $0x6e8] sm:$0xff]  ;;  %v4920_v24 = vcombine.low %v723_v0, %v731_v1 }
 0x169   : > { %3929 = vmatprep.subr.bf16.mxu1 %v5221_v12  ;;  %v650_v12 = vld [vmem:[%s7307_s4 + $0x3e0] sm:$0xff] }
 0x16b   : > { %3844 = vmatpush1.bf16.msra.mxu0 %v5218_v18  ;;  %v4839_v18 = vcombine.high %v642_v11, %v650_v12 }
 0x16c   : > { %3930 = vmatpush1.bf16.msra.mxu1 %v5220_v22  ;;  %3942 = vmatprep.subr.bf16.mxu0 %v4727_v23  ;;  %v4841_v22 = vcombine.high %v643_v13, %v651_v14  ;;  %v658_v23 = vld [vmem:[%s7307_s4 + $0x420] sm:$0xff]  ;;  %v4936_v14 = vcombine.low %v739_v19, %v747_v20 }
 0x16d   : > { %4028 = vmatprep.subr.bf16.mxu1 %v4729_v26  ;;  %v666_v26 = vld [vmem:[%s7307_s4 + $0x460] sm:$0xff] }
 0x16e   : > { %3846 = vmatmul.mubr.bf16.vlgmr.msra.gmra.mrb[4].mxu0 %v5784_v58  ;;  %v4855_v31 = vcombine.high %v658_v23, %v666_v26  ;;  %v4854_v38 = vcombine.low %v658_v23, %v666_v26  ;;  %v771_v23 = vld [vmem:[%s7307_s4 + $0x7a8] sm:$0xff] }
 0x16f   : > { %3932 = vmatmul.mubr.bf16.vlgmr.msra.gmra.mrb[4].mxu1 %v5784_v58  ;;  %3943 = vmatpush1.bf16.msra.mxu0 %v4726_v29  ;;  %v4838_v29 = vcombine.low %v642_v11, %v650_v12  ;;  %v755_v11 = vld [vmem:[%s7307_s4 + $0x728] sm:$0xff] }
 0x170   : > { %3974 = vmatprep.mubr.bf16.mxu0 %v5782_v57  ;;  %4029 = vmatpush1.bf16.msra.mxu1 %v4728_v32  ;;  %v4857_v32 = vcombine.high %v659_v27, %v667_v28  ;;  %v763_v12 = vld [vmem:[%s7307_s4 + $0x768] sm:$0xff] }
 0x171   : > { %4060 = vmatprep.mubr.bf16.mxu1 %v5782_v57  ;;  %3944 = vmatprep.subr.bf16.mxu0 %v4743_v33  ;;  %v674_v33 = vld [vmem:[%s7307_s4 + $0x4a0] sm:$0xff]  ;;  %v779_v26 = vld [vmem:[%s7307_s4 + $0x7e8] sm:$0xff]  ;;  %v4952_v28 = vcombine.low %v755_v11, %v763_v12 }
 0x172   : > { %4030 = vmatprep.subr.bf16.mxu1 %v4745_v37  ;;  %v683_v37 = vld [vmem:[%s7307_s4 + $0x4e8] sm:$0xff]  ;;  %v4870_v47 = vcombine.low %v674_v33, %v682_v34 }
 0x173   : > { %3945 = vmatpush1.bf16.msra.mxu0 %v4742_v40  ;;  %v4871_v40 = vcombine.high %v674_v33, %v682_v34  ;;  %v4872_v48 = vcombine.low %v675_v36, %v683_v37  ;;  %v787_v33 = vld [vmem:[%s7307_s4 + $0x828] sm:$0xff] }
 0x174   : > { %4031 = vmatpush1.bf16.msra.mxu1 %v4744_v41  ;;  %3946 = vmatprep.subr.bf16.mxu0 %v4759_v42  ;;  %v4873_v41 = vcombine.high %v675_v36, %v683_v37  ;;  %v690_v42 = vld [vmem:[%s7307_s4 + $0x520] sm:$0xff]  ;;  %v795_v34 = vld [vmem:[%s7307_s4 + $0x868] sm:$0xff]  ;;  %v4968_v37 = vcombine.low %v771_v23, %v779_v26 }
 0x175   : > { %4032 = vmatprep.subr.bf16.mxu1 %v4761_v43  ;;  %v698_v43 = vld [vmem:[%s7307_s4 + $0x560] sm:$0xff] }
 0x176   : > { %v4886_v55 = vcombine.low %v690_v42, %v698_v43 }
 0x177   : > { %3947 = vmatpush1.bf16.msra.mxu0 %v4758_v49  ;;  %v4887_v49 = vcombine.high %v690_v42, %v698_v43  ;;  %v803_v43 = vld [vmem:[%s7307_s4 + $0x8a8] sm:$0xff] }
 0x178   : > { %4033 = vmatpush1.bf16.msra.mxu1 %v4760_v50  ;;  %3948 = vmatprep.subr.bf16.mxu0 %v4775_v51  ;;  %v4889_v50 = vcombine.high %v691_v44, %v699_v46  ;;  %v706_v51 = vld [vmem:[%s7307_s4 + $0x5a0] sm:$0xff]  ;;  %v811_v44 = vld [vmem:[%s7307_s4 + $0x8e8] sm:$0xff]  ;;  %v4984_v46 = vcombine.low %v787_v33, %v795_v34 }
 0x179   : > { %4034 = vmatprep.subr.bf16.mxu1 %v4777_v52  ;;  %v714_v52 = vld [vmem:[%s7307_s4 + $0x5e0] sm:$0xff] }
 0x17a   : > { %v4902_v3 = vcombine.low %v706_v51, %v714_v52 }
 0x17b   : > { %3949 = vmatpush1.bf16.msra.mxu0 %v4774_v60  ;;  %v4903_v60 = vcombine.high %v706_v51, %v714_v52  ;;  %v819_v51 = vld [vmem:[%s7307_s4 + $0x928] sm:$0xff] }
 0x17c   : > { %4035 = vmatpush1.bf16.msra.mxu1 %v4776_v61  ;;  %3950 = vmatprep.subr.bf16.mxu0 %v4791_v62  ;;  %v4905_v61 = vcombine.high %v707_v53, %v715_v54  ;;  %v722_v62 = vld [vmem:[%s7307_s4 + $0x620] sm:$0xff]  ;;  %v827_v52 = vld [vmem:[%s7307_s4 + $0x968] sm:$0xff]  ;;  %v5000_v54 = vcombine.low %v803_v43, %v811_v44 }
 0x17d   : > { %4036 = vmatprep.subr.bf16.mxu1 %v4793_v63  ;;  %v730_v63 = vld [vmem:[%s7307_s4 + $0x660] sm:$0xff] }
 0x17e   : > { %v4918_v21 = vcombine.low %v722_v62, %v730_v63 }
 0x17f   : > { %3951 = vmatpush1.bf16.msra.mxu0 %v4790_v5  ;;  %v4919_v5 = vcombine.high %v722_v62, %v730_v63  ;;  %v835_v62 = vld [vmem:[%s7307_s4 + $0x9a8] sm:$0xff] }
 0x180   : > { %4037 = vmatpush1.bf16.msra.mxu1 %v4792_v6  ;;  %3952 = vmatprep.subr.bf16.mxu0 %v4807_v7  ;;  %v4921_v6 = vcombine.high %v723_v0, %v731_v1  ;;  %v738_v7 = vld [vmem:[%s7307_s4 + $0x6a0] sm:$0xff]  ;;  %v843_v63 = vld [vmem:[%s7307_s4 + $0x9e8] sm:$0xff]  ;;  %v5016_v1 = vcombine.low %v819_v51, %v827_v52 }
 0x181   : > { %4038 = vmatprep.subr.bf16.mxu1 %v4809_v15  ;;  %v746_v15 = vld [vmem:[%s7307_s4 + $0x6e0] sm:$0xff] }
 0x182   : > { %v4934_v13 = vcombine.low %v738_v7, %v746_v15 }
 0x183   : > { %3953 = vmatpush1.bf16.msra.mxu0 %v4806_v25  ;;  %v4935_v25 = vcombine.high %v738_v7, %v746_v15  ;;  %v851_v7 = vld [vmem:[%s7307_s4 + $0xa28] sm:$0xff] }
 0x184   : > { %4039 = vmatpush1.bf16.msra.mxu1 %v4808_v8  ;;  %3954 = vmatprep.subr.bf16.mxu0 %v4823_v9  ;;  %v4937_v8 = vcombine.high %v739_v19, %v747_v20  ;;  %v754_v9 = vld [vmem:[%s7307_s4 + $0x720] sm:$0xff]  ;;  %v859_v15 = vld [vmem:[%s7307_s4 + $0xa68] sm:$0xff]  ;;  %v5032_v20 = vcombine.low %v835_v62, %v843_v63 }
 0x185   : > { %4040 = vmatprep.subr.bf16.mxu1 %v4825_v10  ;;  %v762_v10 = vld [vmem:[%s7307_s4 + $0x760] sm:$0xff] }
 0x186   : > { %v4950_v27 = vcombine.low %v754_v9, %v762_v10 }
 0x187   : > { %3955 = vmatpush1.bf16.msra.mxu0 %v4822_v16  ;;  %v4951_v16 = vcombine.high %v754_v9, %v762_v10  ;;  %v867_v9 = vld [vmem:[%s7307_s4 + $0xaa8] sm:$0xff] }
 0x188   : > { %4041 = vmatpush1.bf16.msra.mxu1 %v4824_v17  ;;  %3956 = vmatprep.subr.bf16.mxu0 %v4839_v18  ;;  %v4953_v17 = vcombine.high %v755_v11, %v763_v12  ;;  %v770_v18 = vld [vmem:[%s7307_s4 + $0x7a0] sm:$0xff]  ;;  %v875_v10 = vld [vmem:[%s7307_s4 + $0xae8] sm:$0xff]  ;;  %v5048_v12 = vcombine.low %v851_v7, %v859_v15 }
 0x189   : > { %4042 = vmatprep.subr.bf16.mxu1 %v4841_v22  ;;  %v778_v22 = vld [vmem:[%s7307_s4 + $0x7e0] sm:$0xff] }
 0x18a   : > { %v4966_v36 = vcombine.low %v770_v18, %v778_v22 }
 0x18b   : > { %3957 = vmatpush1.bf16.msra.mxu0 %v4838_v29  ;;  %v4967_v29 = vcombine.high %v770_v18, %v778_v22  ;;  %v883_v18 = vld [vmem:[%s7307_s4 + $0xb28] sm:$0xff] }
 0x18c   : > { %4043 = vmatpush1.bf16.msra.mxu1 %v4840_v30  ;;  %3958 = vmatprep.subr.bf16.mxu0 %v4855_v31  ;;  %v4969_v30 = vcombine.high %v771_v23, %v779_v26  ;;  %v786_v31 = vld [vmem:[%s7307_s4 + $0x820] sm:$0xff]  ;;  %v891_v22 = vld [vmem:[%s7307_s4 + $0xb68] sm:$0xff]  ;;  %v5064_v26 = vcombine.low %v867_v9, %v875_v10 }
 0x18d   : > { %4044 = vmatprep.subr.bf16.mxu1 %v4857_v32  ;;  %v794_v32 = vld [vmem:[%s7307_s4 + $0x860] sm:$0xff] }
 0x18e   : > { %v4982_v42 = vcombine.low %v786_v31, %v794_v32 }
 0x18f   : > { %3959 = vmatpush1.bf16.msra.mxu0 %v4854_v38  ;;  %v4983_v38 = vcombine.high %v786_v31, %v794_v32  ;;  %v898_v31 = vld [vmem:[%s7307_s4 + $0xba0] sm:$0xff] }
 0x190   : > { %4045 = vmatpush1.bf16.msra.mxu1 %v4856_v39  ;;  %3960 = vmatprep.subr.bf16.mxu0 %v4871_v40  ;;  %v4985_v39 = vcombine.high %v787_v33, %v795_v34  ;;  %v802_v40 = vld [vmem:[%s7307_s4 + $0x8a0] sm:$0xff] }
 0x191   : > { %4046 = vmatprep.subr.bf16.mxu1 %v4873_v41  ;;  %v810_v41 = vld [vmem:[%s7307_s4 + $0x8e0] sm:$0xff] }
 0x192   : > { %v4998_v53 = vcombine.low %v802_v40, %v810_v41  ;;  %v906_v32 = vld [vmem:[%s7307_s4 + $0xbe0] sm:$0xff] }
 0x193   : > { %3961 = vmatpush1.bf16.msra.mxu0 %v4870_v47  ;;  %v4999_v47 = vcombine.high %v802_v40, %v810_v41 }
 0x194   : > { %4047 = vmatpush1.bf16.msra.mxu1 %v4872_v48  ;;  %3962 = vmatprep.subr.bf16.mxu0 %v4887_v49  ;;  %v818_v48 = vld [vmem:[%s7307_s4 + $0x920] sm:$0xff] }
 0x195   : > { %4048 = vmatprep.subr.bf16.mxu1 %v4889_v50  ;;  %v826_v49 = vld [vmem:[%s7307_s4 + $0x960] sm:$0xff]  ;;  %v5001_v50 = vcombine.high %v803_v43, %v811_v44  ;;  %v5080_v43 = vcombine.low %v883_v18, %v891_v22  ;;  %v5095_v44 = vcombine.high %v898_v31, %v906_v32 }
 0x196   : > { %v5014_v0 = vcombine.low %v818_v48, %v826_v49 }
 0x197   : > { %3963 = vmatpush1.bf16.msra.mxu0 %v4886_v55  ;;  %v5015_v55 = vcombine.high %v818_v48, %v826_v49  ;;  %v922_v48 = vld [vmem:[%s7307_s4 + $0xc60] sm:$0xff]  ;;  %v915_v49 = vld [vmem:[%s7307_s4 + $0xc28] sm:$0xff] }
 0x198   : > { %4049 = vmatpush1.bf16.msra.mxu1 %v4888_v59  ;;  %3964 = vmatprep.subr.bf16.mxu0 %v4903_v60  ;;  %v5017_v59 = vcombine.high %v819_v51, %v827_v52  ;;  %v834_v60 = vld [vmem:[%s7307_s4 + $0x9a0] sm:$0xff]  ;;  %v5094_v51 = vcombine.low %v898_v31, %v906_v32  ;;  %v995_v31 = vld [vmem:[%s7307_s4 + $0xea8] sm:$0xff] }
 0x199   : > { %4050 = vmatprep.subr.bf16.mxu1 %v4905_v61  ;;  %v842_v61 = vld [vmem:[%s7307_s4 + $0x9e0] sm:$0xff]  ;;  %v1003_v32 = vld [vmem:[%s7307_s4 + $0xee8] sm:$0xff] }
 0x19a   : > { %v5030_v19 = vcombine.low %v834_v60, %v842_v61 }
 0x19b   : > { %3965 = vmatpush1.bf16.msra.mxu0 %v4902_v3  ;;  %v5031_v3 = vcombine.high %v834_v60, %v842_v61  ;;  %v931_v60 = vld [vmem:[%s7307_s4 + $0xca8] sm:$0xff] }
 0x19c   : > { %4051 = vmatpush1.bf16.msra.mxu1 %v4904_v4  ;;  %3966 = vmatprep.subr.bf16.mxu0 %v4919_v5  ;;  %v5033_v4 = vcombine.high %v835_v62, %v843_v63  ;;  %v850_v5 = vld [vmem:[%s7307_s4 + $0xa20] sm:$0xff]  ;;  %v939_v61 = vld [vmem:[%s7307_s4 + $0xce8] sm:$0xff] }
 0x19d   : > { %4052 = vmatprep.subr.bf16.mxu1 %v4921_v6  ;;  %v858_v6 = vld [vmem:[%s7307_s4 + $0xa60] sm:$0xff] }
 0x19e   : > { %v5046_v11 = vcombine.low %v850_v5, %v858_v6 }
 0x19f   : > { %3967 = vmatpush1.bf16.msra.mxu0 %v4918_v21  ;;  %v5047_v21 = vcombine.high %v850_v5, %v858_v6  ;;  %v947_v5 = vld [vmem:[%s7307_s4 + $0xd28] sm:$0xff] }
 0x1a0   : > { %4053 = vmatpush1.bf16.msra.mxu1 %v4920_v24  ;;  %3968 = vmatprep.subr.bf16.mxu0 %v4935_v25  ;;  %v5049_v24 = vcombine.high %v851_v7, %v859_v15  ;;  %v866_v25 = vld [vmem:[%s7307_s4 + $0xaa0] sm:$0xff]  ;;  %v955_v6 = vld [vmem:[%s7307_s4 + $0xd68] sm:$0xff]  ;;  %v5128_v15 = vcombine.low %v931_v60, %v939_v61 }
 0x1a1   : > { %4054 = vmatprep.subr.bf16.mxu1 %v4937_v8  ;;  %v874_v8 = vld [vmem:[%s7307_s4 + $0xae0] sm:$0xff] }
 0x1a2   : > { %v5062_v23 = vcombine.low %v866_v25, %v874_v8 }
 0x1a3   : > { %3969 = vmatpush1.bf16.msra.mxu0 %v4934_v13  ;;  %v5063_v13 = vcombine.high %v866_v25, %v874_v8  ;;  %v963_v25 = vld [vmem:[%s7307_s4 + $0xda8] sm:$0xff] }
 0x1a4   : > { %4055 = vmatpush1.bf16.msra.mxu1 %v4936_v14  ;;  %3970 = vmatprep.subr.bf16.mxu0 %v4951_v16  ;;  %v5065_v14 = vcombine.high %v867_v9, %v875_v10  ;;  %v882_v16 = vld [vmem:[%s7307_s4 + $0xb20] sm:$0xff]  ;;  %v971_v8 = vld [vmem:[%s7307_s4 + $0xde8] sm:$0xff]  ;;  %v5144_v10 = vcombine.low %v947_v5, %v955_v6 }
 0x1a5   : > { %4056 = vmatprep.subr.bf16.mxu1 %v4953_v17  ;;  %v890_v17 = vld [vmem:[%s7307_s4 + $0xb60] sm:$0xff] }
 0x1a6   : > { %v5078_v40 = vcombine.low %v882_v16, %v890_v17 }
 0x1a7   : > { %3971 = vmatpush1.bf16.msra.mxu0 %v4950_v27  ;;  %v5079_v27 = vcombine.high %v882_v16, %v890_v17  ;;  %v979_v16 = vld [vmem:[%s7307_s4 + $0xe28] sm:$0xff] }
 0x1a8   : > { %4057 = vmatpush1.bf16.msra.mxu1 %v4952_v28  ;;  %3972 = vmatprep.subr.bf16.mxu0 %v4967_v29  ;;  %v987_v17 = vld [vmem:[%s7307_s4 + $0xe68] sm:$0xff] }
 0x1a9   : > { %4058 = vmatprep.subr.bf16.mxu1 %v4969_v30  ;;  %v5081_v30 = vcombine.high %v883_v18, %v891_v22  ;;  %v5160_v22 = vcombine.low %v963_v25, %v971_v8 }
 0x1ab   : > { %3973 = vmatpush1.bf16.msra.mxu0 %v4966_v36  ;;  %v899_v36 = vld [vmem:[%s7307_s4 + $0xba8] sm:$0xff] }
 0x1ac   : > { %4059 = vmatpush1.bf16.msra.mxu1 %v4968_v37  ;;  %3985 = vmatprep.subr.bf16.mxu0 %v4983_v38  ;;  %v907_v37 = vld [vmem:[%s7307_s4 + $0xbe8] sm:$0xff] }
 0x1ad   : > { %4071 = vmatprep.subr.bf16.mxu1 %v4985_v39  ;;  %v5096_v52 = vcombine.low %v899_v36, %v907_v37 }
 0x1ae   : > { %3975 = vmatmul.mubr.bf16.vlgmr.msra.gmra.mrb[8].mxu0 %v5780_v56 }
 0x1af   : > { %4061 = vmatmul.mubr.bf16.vlgmr.msra.gmra.mrb[8].mxu1 %v5780_v56  ;;  %3986 = vmatpush1.bf16.msra.mxu0 %v4982_v42 }
 0x1b0   : > { %4017 = vmatprep.mubr.bf16.mxu0 %v5801_v2  ;;  %4072 = vmatpush1.bf16.msra.mxu1 %v4984_v46  ;;  %v5097_v46 = vcombine.high %v899_v36, %v907_v37  ;;  %v5176_v37 = vcombine.low %v979_v16, %v987_v17 }
 0x1b1   : > { %4103 = vmatprep.mubr.bf16.mxu1 %v5801_v2  ;;  %3987 = vmatprep.subr.bf16.mxu0 %v4999_v47  ;;  %v914_v47 = vld [vmem:[%s7307_s4 + $0xc20] sm:$0xff] }
 0x1b2   : > { %4073 = vmatprep.subr.bf16.mxu1 %v5001_v50  ;;  %v923_v50 = vld [vmem:[%s7307_s4 + $0xc68] sm:$0xff]  ;;  %v5110_v62 = vcombine.low %v914_v47, %v922_v48 }
 0x1b3   : > { %3988 = vmatpush1.bf16.msra.mxu0 %v4998_v53  ;;  %v5111_v53 = vcombine.high %v914_v47, %v922_v48  ;;  %v5112_v63 = vcombine.low %v915_v49, %v923_v50  ;;  %v1011_v47 = vld [vmem:[%s7307_s4 + $0xf28] sm:$0xff] }
 0x1b4   : > { %4074 = vmatpush1.bf16.msra.mxu1 %v5000_v54  ;;  %3989 = vmatprep.subr.bf16.mxu0 %v5015_v55  ;;  %v5113_v54 = vcombine.high %v915_v49, %v923_v50  ;;  %v930_v55 = vld [vmem:[%s7307_s4 + $0xca0] sm:$0xff]  ;;  %v1019_v48 = vld [vmem:[%s7307_s4 + $0xf68] sm:$0xff]  ;;  %v5192_v50 = vcombine.low %v995_v31, %v1003_v32 }
 0x1b5   : > { %4075 = vmatprep.subr.bf16.mxu1 %v5017_v59  ;;  %v938_v59 = vld [vmem:[%s7307_s4 + $0xce0] sm:$0xff] }
 0x1b6   : > { %v5126_v7 = vcombine.low %v930_v55, %v938_v59 }
 0x1b7   : > { %3990 = vmatpush1.bf16.msra.mxu0 %v5014_v0  ;;  %v5127_v0 = vcombine.high %v930_v55, %v938_v59  ;;  %v1027_v55 = vld [vmem:[%s7307_s4 + $0xfa8] sm:$0xff] }
 0x1b8   : > { %4076 = vmatpush1.bf16.msra.mxu1 %v5016_v1  ;;  %3991 = vmatprep.subr.bf16.mxu0 %v5031_v3  ;;  %v5129_v1 = vcombine.high %v931_v60, %v939_v61  ;;  %v946_v3 = vld [vmem:[%s7307_s4 + $0xd20] sm:$0xff]  ;;  %v1035_v59 = vld [vmem:[%s7307_s4 + $0xfe8] sm:$0xff]  ;;  %v5208_v61 = vcombine.low %v1011_v47, %v1019_v48 }
 0x1b9   : > { %4077 = vmatprep.subr.bf16.mxu1 %v5033_v4  ;;  %v954_v4 = vld [vmem:[%s7307_s4 + $0xd60] sm:$0xff] }
 0x1ba   : > { %v5142_v9 = vcombine.low %v946_v3, %v954_v4 }
 0x1bb   : > { %3992 = vmatpush1.bf16.msra.mxu0 %v5030_v19  ;;  %v5143_v19 = vcombine.high %v946_v3, %v954_v4  ;;  %v533_v3 = vld [vmem:[%s7307_s4 + $0x38] sm:$0xff] }
 0x1bc   : > { %4078 = vmatpush1.bf16.msra.mxu1 %v5032_v20  ;;  %3993 = vmatprep.subr.bf16.mxu0 %v5047_v21  ;;  %v5145_v20 = vcombine.high %v947_v5, %v955_v6  ;;  %v962_v21 = vld [vmem:[%s7307_s4 + $0xda0] sm:$0xff]  ;;  %v541_v4 = vld [vmem:[%s7307_s4 + $0x78] sm:$0xff]  ;;  %v5224_v6 = vcombine.low %v1027_v55, %v1035_v59 }
 0x1bd   : > { %4079 = vmatprep.subr.bf16.mxu1 %v5049_v24  ;;  %v970_v24 = vld [vmem:[%s7307_s4 + $0xde0] sm:$0xff] }
 0x1be   : > { %v5158_v18 = vcombine.low %v962_v21, %v970_v24 }
 0x1bf   : > { %3994 = vmatpush1.bf16.msra.mxu0 %v5046_v11  ;;  %v5159_v11 = vcombine.high %v962_v21, %v970_v24  ;;  %v549_v24 = vld [vmem:[%s7307_s4 + $0xb8] sm:$0xff] }
 0x1c0   : > { %4080 = vmatpush1.bf16.msra.mxu1 %v5048_v12  ;;  %3995 = vmatprep.subr.bf16.mxu0 %v5063_v13  ;;  %v5161_v12 = vcombine.high %v963_v25, %v971_v8  ;;  %v978_v13 = vld [vmem:[%s7307_s4 + $0xe20] sm:$0xff]  ;;  %v557_v25 = vld [vmem:[%s7307_s4 + $0xf8] sm:$0xff]  ;;  %v4732_v8 = vcombine.low %v533_v3, %v541_v4 }
 0x1c1   : > { %v6645_v28 = vpop.f32.mrb[0].mxu0  ;;  %v6647_v29 = vpop.f32.mrb[0].mxu1  ;;  %4081 = vmatprep.subr.bf16.mxu1 %v5065_v14  ;;  %v986_v14 = vld [vmem:[%s7307_s4 + $0xe60] sm:$0xff] }
 0x1c2   : > { %v6655_v33 = vpop.f32.mrb[1].mxu0  ;;  %v6657_v34 = vpop.f32.mrb[1].mxu1  ;;  %v5174_v36 = vcombine.low %v978_v13, %v986_v14 }
 0x1c3   : > { %v6665_v38 = vpop.f32.mrb[2].mxu0  ;;  %v6667_v39 = vpop.f32.mrb[2].mxu1  ;;  %3996 = vmatpush1.bf16.msra.mxu0 %v5062_v23  ;;  %v5175_v23 = vcombine.high %v978_v13, %v986_v14  ;;  %v565_v13 = vld [vmem:[%s7307_s4 + $0x138] sm:$0xff] }
 0x1c4   : > { %4082 = vmatpush1.bf16.msra.mxu1 %v5064_v26  ;;  %v6669_v41 = vpop.f32.mrb[3].mxu0  ;;  %v6671_v42 = vpop.f32.mrb[3].mxu1  ;;  %3997 = vmatprep.subr.bf16.mxu0 %v5079_v27  ;;  %v5177_v26 = vcombine.high %v979_v16, %v987_v17  ;;  %v994_v27 = vld [vmem:[%s7307_s4 + $0xea0] sm:$0xff]  ;;  %v573_v14 = vld [vmem:[%s7307_s4 + $0x178] sm:$0xff]  ;;  %v4748_v17 = vcombine.low %v549_v24, %v557_v25 }
 0x1c5   : > { %4083 = vmatprep.subr.bf16.mxu1 %v5081_v30  ;;  %v1002_v30 = vld [vmem:[%s7307_s4 + $0xee0] sm:$0xff] }
 0x1c6   : > { %v5190_v49 = vcombine.low %v994_v27, %v1002_v30 }
 0x1c7   : > { %3998 = vmatpush1.bf16.msra.mxu0 %v5078_v40  ;;  %v5191_v40 = vcombine.high %v994_v27, %v1002_v30  ;;  %v581_v27 = vld [vmem:[%s7307_s4 + $0x1b8] sm:$0xff] }
 0x1c8   : > { %4084 = vmatpush1.bf16.msra.mxu1 %v5080_v43  ;;  %3999 = vmatprep.subr.bf16.mxu0 %v5095_v44  ;;  %v5193_v43 = vcombine.high %v995_v31, %v1003_v32  ;;  %v1010_v44 = vld [vmem:[%s7307_s4 + $0xf20] sm:$0xff]  ;;  %v589_v30 = vld [vmem:[%s7307_s4 + $0x1f8] sm:$0xff]  ;;  %v4764_v31 = vcombine.low %v565_v13, %v573_v14 }
 0x1c9   : > { %4085 = vmatprep.subr.bf16.mxu1 %v5097_v46  ;;  %v1018_v46 = vld [vmem:[%s7307_s4 + $0xf60] sm:$0xff] }
 0x1ca   : > { %v5206_v60 = vcombine.low %v1010_v44, %v1018_v46 }
 0x1cb   : > { %4000 = vmatpush1.bf16.msra.mxu0 %v5094_v51  ;;  %v5207_v51 = vcombine.high %v1010_v44, %v1018_v46  ;;  %v605_v44 = vld [vmem:[%s7307_s4 + $0x278] sm:$0xff] }
 0x1cc   : > { %4086 = vmatpush1.bf16.msra.mxu1 %v5096_v52  ;;  %4001 = vmatprep.subr.bf16.mxu0 %v5111_v53  ;;  %v5209_v52 = vcombine.high %v1011_v47, %v1019_v48  ;;  %v1026_v53 = vld [vmem:[%s7307_s4 + $0xfa0] sm:$0xff]  ;;  %v4780_v47 = vcombine.low %v581_v27, %v589_v30 }
 0x1cd   : > { %4087 = vmatprep.subr.bf16.mxu1 %v5113_v54  ;;  %v1034_v54 = vld [vmem:[%s7307_s4 + $0xfe0] sm:$0xff] }
 0x1ce   : > { %v5222_v5 = vcombine.low %v1026_v53, %v1034_v54 }
 0x1cf   : > { %4002 = vmatpush1.bf16.msra.mxu0 %v5110_v62  ;;  %v5223_v62 = vcombine.high %v1026_v53, %v1034_v54  ;;  %v621_v53 = vld [vmem:[%s7307_s4 + $0x2f8] sm:$0xff] }
 0x1d0   : > { %4088 = vmatpush1.bf16.msra.mxu1 %v5112_v63  ;;  %4003 = vmatprep.subr.bf16.mxu0 %v5127_v0  ;;  %v5225_v63 = vcombine.high %v1027_v55, %v1035_v59  ;;  %v532_v0 = vld [vmem:[%s7307_s4 + $0x30] sm:$0xff] }
 0x1d1   : > { %4089 = vmatprep.subr.bf16.mxu1 %v5129_v1  ;;  %v540_v1 = vld [vmem:[%s7307_s4 + $0x70] sm:$0xff] }
 0x1d2   : > { %v4730_v21 = vcombine.low %v532_v0, %v540_v1 }
 0x1d3   : > { %4004 = vmatpush1.bf16.msra.mxu0 %v5126_v7  ;;  %v4731_v7 = vcombine.high %v532_v0, %v540_v1  ;;  %v637_v0 = vld [vmem:[%s7307_s4 + $0x378] sm:$0xff] }
 0x1d4   : > { %4090 = vmatpush1.bf16.msra.mxu1 %v5128_v15  ;;  %4005 = vmatprep.subr.bf16.mxu0 %v5143_v19  ;;  %v4733_v15 = vcombine.high %v533_v3, %v541_v4  ;;  %v548_v19 = vld [vmem:[%s7307_s4 + $0xb0] sm:$0xff] }
 0x1d5   : > { %4091 = vmatprep.subr.bf16.mxu1 %v5145_v20  ;;  %v556_v20 = vld [vmem:[%s7307_s4 + $0xf0] sm:$0xff] }
 0x1d6   : > { %v4746_v16 = vcombine.low %v548_v19, %v556_v20 }
 0x1d7   : > { %4006 = vmatpush1.bf16.msra.mxu0 %v5142_v9  ;;  %v4747_v9 = vcombine.high %v548_v19, %v556_v20  ;;  %v653_v19 = vld [vmem:[%s7307_s4 + $0x3f8] sm:$0xff] }
 0x1d8   : > { %4092 = vmatpush1.bf16.msra.mxu1 %v5144_v10  ;;  %4007 = vmatprep.subr.bf16.mxu0 %v5159_v11  ;;  %v564_v10 = vld [vmem:[%s7307_s4 + $0x130] sm:$0xff] }
 0x1d9   : > { %4093 = vmatprep.subr.bf16.mxu1 %v5161_v12  ;;  %v572_v11 = vld [vmem:[%s7307_s4 + $0x170] sm:$0xff]  ;;  %v4749_v12 = vcombine.high %v549_v24, %v557_v25 }
 0x1db   : > { %4008 = vmatpush1.bf16.msra.mxu0 %v5158_v18  ;;  %v4763_v18 = vcombine.high %v564_v10, %v572_v11 }
 0x1dc   : > { %4094 = vmatpush1.bf16.msra.mxu1 %v5160_v22  ;;  %4009 = vmatprep.subr.bf16.mxu0 %v5175_v23  ;;  %v4765_v22 = vcombine.high %v565_v13, %v573_v14  ;;  %v580_v23 = vld [vmem:[%s7307_s4 + $0x1b0] sm:$0xff] }
 0x1dd   : > { %4095 = vmatprep.subr.bf16.mxu1 %v5177_v26  ;;  %v588_v26 = vld [vmem:[%s7307_s4 + $0x1f0] sm:$0xff] }
 0x1de   : > { %v4779_v32 = vcombine.high %v580_v23, %v588_v26  ;;  %v4778_v46 = vcombine.low %v580_v23, %v588_v26  ;;  %v685_v23 = vld [vmem:[%s7307_s4 + $0x4f8] sm:$0xff] }
 0x1df   : > { %4010 = vmatpush1.bf16.msra.mxu0 %v5174_v36  ;;  %v4781_v36 = vcombine.high %v581_v27, %v589_v30 }
 0x1e0   : > { %4096 = vmatpush1.bf16.msra.mxu1 %v5176_v37  ;;  %4011 = vmatprep.subr.bf16.mxu0 %v5191_v40  ;;  %v596_v37 = vld [vmem:[%s7307_s4 + $0x230] sm:$0xff] }
 0x1e1   : > { %4097 = vmatprep.subr.bf16.mxu1 %v5193_v43  ;;  %v604_v40 = vld [vmem:[%s7307_s4 + $0x270] sm:$0xff]  ;;  %v597_v43 = vld [vmem:[%s7307_s4 + $0x238] sm:$0xff] }
 0x1e2   : > { %v4795_v48 = vcombine.high %v596_v37, %v604_v40  ;;  %v4794_v54 = vcombine.low %v596_v37, %v604_v40  ;;  %v4796_v55 = vcombine.low %v597_v43, %v605_v44  ;;  %v701_v37 = vld [vmem:[%s7307_s4 + $0x578] sm:$0xff] }
 0x1e3   : > { %4012 = vmatpush1.bf16.msra.mxu0 %v5190_v49  ;;  %v4797_v49 = vcombine.high %v597_v43, %v605_v44 }
 0x1e4   : > { %4098 = vmatpush1.bf16.msra.mxu1 %v5192_v50  ;;  %4013 = vmatprep.subr.bf16.mxu0 %v5207_v51  ;;  %v612_v50 = vld [vmem:[%s7307_s4 + $0x2b0] sm:$0xff] }
 0x1e5   : > { %4099 = vmatprep.subr.bf16.mxu1 %v5209_v52  ;;  %v620_v51 = vld [vmem:[%s7307_s4 + $0x2f0] sm:$0xff]  ;;  %v613_v52 = vld [vmem:[%s7307_s4 + $0x2b8] sm:$0xff] }
 0x1e6   : > { %v4811_v59 = vcombine.high %v612_v50, %v620_v51  ;;  %v4810_v1 = vcombine.low %v612_v50, %v620_v51  ;;  %v4812_v3 = vcombine.low %v613_v52, %v621_v53  ;;  %v717_v50 = vld [vmem:[%s7307_s4 + $0x5f8] sm:$0xff] }
 0x1e7   : > { %4014 = vmatpush1.bf16.msra.mxu0 %v5206_v60  ;;  %v4813_v60 = vcombine.high %v613_v52, %v621_v53 }
 0x1e8   : > { %4100 = vmatpush1.bf16.msra.mxu1 %v5208_v61  ;;  %4015 = vmatprep.subr.bf16.mxu0 %v5223_v62  ;;  %v628_v61 = vld [vmem:[%s7307_s4 + $0x330] sm:$0xff] }
 0x1e9   : > { %4101 = vmatprep.subr.bf16.mxu1 %v5225_v63  ;;  %v636_v62 = vld [vmem:[%s7307_s4 + $0x370] sm:$0xff]  ;;  %v629_v63 = vld [vmem:[%s7307_s4 + $0x338] sm:$0xff] }
 0x1ea   : > { %v4827_v4 = vcombine.high %v628_v61, %v636_v62  ;;  %v4826_v20 = vcombine.low %v628_v61, %v636_v62  ;;  %v733_v61 = vld [vmem:[%s7307_s4 + $0x678] sm:$0xff] }
 0x1eb   : > { %4016 = vmatpush1.bf16.msra.mxu0 %v5222_v5  ;;  %v4829_v5 = vcombine.high %v629_v63, %v637_v0 }
 0x1ec   : > { %4102 = vmatpush1.bf16.msra.mxu1 %v5224_v6  ;;  %4114 = vmatprep.subr.bf16.mxu0 %v4731_v7  ;;  %v644_v6 = vld [vmem:[%s7307_s4 + $0x3b0] sm:$0xff] }
 0x1ed   : > { %4200 = vmatprep.subr.bf16.mxu1 %v4733_v15  ;;  %v652_v7 = vld [vmem:[%s7307_s4 + $0x3f0] sm:$0xff]  ;;  %v645_v15 = vld [vmem:[%s7307_s4 + $0x3b8] sm:$0xff] }
 0x1ee   : > { %4018 = vmatmul.mubr.bf16.vlgmr.msra.gmra.mrb[8].mxu0 %v5784_v58  ;;  %v4843_v24 = vcombine.high %v644_v6, %v652_v7  ;;  %v4845_v25 = vcombine.high %v645_v15, %v653_v19  ;;  %v4844_v13 = vcombine.low %v645_v15, %v653_v19 }
 0x1ef   : > { %4104 = vmatmul.mubr.bf16.vlgmr.msra.gmra.mrb[8].mxu1 %v5784_v58  ;;  %4115 = vmatpush1.bf16.msra.mxu0 %v4730_v21  ;;  %v4828_v21 = vcombine.low %v629_v63, %v637_v0 }
 0x1f0   : > { %4146 = vmatprep.mubr.bf16.mxu0 %v5782_v57  ;;  %4201 = vmatpush1.bf16.msra.mxu1 %v4732_v8  ;;  %v660_v8 = vld [vmem:[%s7307_s4 + $0x430] sm:$0xff] }
 0x1f1   : > { %4232 = vmatprep.mubr.bf16.mxu1 %v5782_v57  ;;  %4116 = vmatprep.subr.bf16.mxu0 %v4747_v9  ;;  %v4762_v57 = vcombine.low %v564_v10, %v572_v11  ;;  %v668_v9 = vld [vmem:[%s7307_s4 + $0x470] sm:$0xff]  ;;  %v661_v10 = vld [vmem:[%s7307_s4 + $0x438] sm:$0xff] }
 0x1f2   : > { %4202 = vmatprep.subr.bf16.mxu1 %v4749_v12  ;;  %v669_v11 = vld [vmem:[%s7307_s4 + $0x478] sm:$0xff]  ;;  %v4842_v12 = vcombine.low %v644_v6, %v652_v7  ;;  %v4859_v14 = vcombine.high %v660_v8, %v668_v9  ;;  %v4858_v26 = vcombine.low %v660_v8, %v668_v9 }
 0x1f3   : > { %4117 = vmatpush1.bf16.msra.mxu0 %v4746_v16  ;;  %v4861_v16 = vcombine.high %v661_v10, %v669_v11  ;;  %v4860_v27 = vcombine.low %v661_v10, %v669_v11  ;;  %v749_v6 = vld [vmem:[%s7307_s4 + $0x6f8] sm:$0xff] }
 0x1f4   : > { %4203 = vmatpush1.bf16.msra.mxu1 %v4748_v17  ;;  %4118 = vmatprep.subr.bf16.mxu0 %v4763_v18  ;;  %v676_v17 = vld [vmem:[%s7307_s4 + $0x4b0] sm:$0xff]  ;;  %v765_v8 = vld [vmem:[%s7307_s4 + $0x778] sm:$0xff] }
 0x1f5   : > { %4204 = vmatprep.subr.bf16.mxu1 %v4765_v22  ;;  %v684_v18 = vld [vmem:[%s7307_s4 + $0x4f0] sm:$0xff]  ;;  %v677_v22 = vld [vmem:[%s7307_s4 + $0x4b8] sm:$0xff] }
 0x1f6   : > { %v4875_v30 = vcombine.high %v676_v17, %v684_v18  ;;  %v4874_v40 = vcombine.low %v676_v17, %v684_v18  ;;  %v4876_v43 = vcombine.low %v677_v22, %v685_v23  ;;  %v781_v17 = vld [vmem:[%s7307_s4 + $0x7f8] sm:$0xff] }
 0x1f7   : > { %4119 = vmatpush1.bf16.msra.mxu0 %v4762_v57  ;;  %v4877_v57 = vcombine.high %v677_v22, %v685_v23 }
 0x1f8   : > { %4205 = vmatpush1.bf16.msra.mxu1 %v4764_v31  ;;  %4120 = vmatprep.subr.bf16.mxu0 %v4779_v32  ;;  %v692_v31 = vld [vmem:[%s7307_s4 + $0x530] sm:$0xff] }
 0x1f9   : > { %4206 = vmatprep.subr.bf16.mxu1 %v4781_v36  ;;  %v700_v32 = vld [vmem:[%s7307_s4 + $0x570] sm:$0xff]  ;;  %v693_v36 = vld [vmem:[%s7307_s4 + $0x538] sm:$0xff] }
 0x1fa   : > { %v4891_v44 = vcombine.high %v692_v31, %v700_v32  ;;  %v4890_v51 = vcombine.low %v692_v31, %v700_v32  ;;  %v4892_v52 = vcombine.low %v693_v36, %v701_v37  ;;  %v797_v31 = vld [vmem:[%s7307_s4 + $0x878] sm:$0xff] }
 0x1fb   : > { %4121 = vmatpush1.bf16.msra.mxu0 %v4778_v46  ;;  %v4893_v46 = vcombine.high %v693_v36, %v701_v37 }
 0x1fc   : > { %4207 = vmatpush1.bf16.msra.mxu1 %v4780_v47  ;;  %4122 = vmatprep.subr.bf16.mxu0 %v4795_v48  ;;  %v708_v47 = vld [vmem:[%s7307_s4 + $0x5b0] sm:$0xff] }
 0x1fd   : > { %4208 = vmatprep.subr.bf16.mxu1 %v4797_v49  ;;  %v716_v48 = vld [vmem:[%s7307_s4 + $0x5f0] sm:$0xff]  ;;  %v709_v49 = vld [vmem:[%s7307_s4 + $0x5b8] sm:$0xff] }
 0x1fe   : > { %v4907_v53 = vcombine.high %v708_v47, %v716_v48  ;;  %v4906_v62 = vcombine.low %v708_v47, %v716_v48  ;;  %v4908_v63 = vcombine.low %v709_v49, %v717_v50  ;;  %v805_v47 = vld [vmem:[%s7307_s4 + $0x8b8] sm:$0xff] }
 0x1ff   : > { %4123 = vmatpush1.bf16.msra.mxu0 %v4794_v54  ;;  %v4909_v54 = vcombine.high %v709_v49, %v717_v50  ;;  %v813_v48 = vld [vmem:[%s7307_s4 + $0x8f8] sm:$0xff] }
 0x200   : > { %4209 = vmatpush1.bf16.msra.mxu1 %v4796_v55  ;;  %4124 = vmatprep.subr.bf16.mxu0 %v4811_v59  ;;  %v724_v55 = vld [vmem:[%s7307_s4 + $0x630] sm:$0xff] }
 0x201   : > { %4210 = vmatprep.subr.bf16.mxu1 %v4813_v60  ;;  %v732_v59 = vld [vmem:[%s7307_s4 + $0x670] sm:$0xff]  ;;  %v725_v60 = vld [vmem:[%s7307_s4 + $0x638] sm:$0xff] }
 0x202   : > { %v4923_v0 = vcombine.high %v724_v55, %v732_v59  ;;  %v4922_v7 = vcombine.low %v724_v55, %v732_v59  ;;  %v4924_v15 = vcombine.low %v725_v60, %v733_v61  ;;  %v829_v55 = vld [vmem:[%s7307_s4 + $0x978] sm:$0xff] }
 0x203   : > { %4125 = vmatpush1.bf16.msra.mxu0 %v4810_v1  ;;  %v4925_v1 = vcombine.high %v725_v60, %v733_v61  ;;  %v5004_v60 = vcombine.low %v805_v47, %v813_v48 }
 0x204   : > { %4211 = vmatpush1.bf16.msra.mxu1 %v4812_v3  ;;  %4126 = vmatprep.subr.bf16.mxu0 %v4827_v4  ;;  %v740_v3 = vld [vmem:[%s7307_s4 + $0x6b0] sm:$0xff] }
 0x205   : > { %4212 = vmatprep.subr.bf16.mxu1 %v4829_v5  ;;  %v748_v4 = vld [vmem:[%s7307_s4 + $0x6f0] sm:$0xff]  ;;  %v741_v5 = vld [vmem:[%s7307_s4 + $0x6b8] sm:$0xff] }
 0x206   : > { %v4939_v19 = vcombine.high %v740_v3, %v748_v4  ;;  %v4938_v9 = vcombine.low %v740_v3, %v748_v4  ;;  %v4940_v10 = vcombine.low %v741_v5, %v749_v6 }
 0x207   : > { %4127 = vmatpush1.bf16.msra.mxu0 %v4826_v20  ;;  %v4941_v20 = vcombine.high %v741_v5, %v749_v6  ;;  %v852_v6 = vld [vmem:[%s7307_s4 + $0xa30] sm:$0xff] }
 0x208   : > { %4213 = vmatpush1.bf16.msra.mxu1 %v4828_v21  ;;  %4128 = vmatprep.subr.bf16.mxu0 %v4843_v24  ;;  %v756_v21 = vld [vmem:[%s7307_s4 + $0x730] sm:$0xff] }
 0x209   : > { %4214 = vmatprep.subr.bf16.mxu1 %v4845_v25  ;;  %v764_v24 = vld [vmem:[%s7307_s4 + $0x770] sm:$0xff]  ;;  %v757_v25 = vld [vmem:[%s7307_s4 + $0x738] sm:$0xff] }
 0x20a   : > { %v4955_v11 = vcombine.high %v756_v21, %v764_v24  ;;  %v4954_v18 = vcombine.low %v756_v21, %v764_v24  ;;  %v4956_v22 = vcombine.low %v757_v25, %v765_v8 }
 0x20b   : > { %4129 = vmatpush1.bf16.msra.mxu0 %v4842_v12  ;;  %v4957_v12 = vcombine.high %v757_v25, %v765_v8  ;;  %v868_v8 = vld [vmem:[%s7307_s4 + $0xab0] sm:$0xff] }
 0x20c   : > { %4215 = vmatpush1.bf16.msra.mxu1 %v4844_v13  ;;  %4130 = vmatprep.subr.bf16.mxu0 %v4859_v14  ;;  %v772_v13 = vld [vmem:[%s7307_s4 + $0x7b0] sm:$0xff] }
 0x20d   : > { %4216 = vmatprep.subr.bf16.mxu1 %v4861_v16  ;;  %v780_v14 = vld [vmem:[%s7307_s4 + $0x7f0] sm:$0xff]  ;;  %v773_v16 = vld [vmem:[%s7307_s4 + $0x7b8] sm:$0xff] }
 0x20e   : > { %v4971_v23 = vcombine.high %v772_v13, %v780_v14  ;;  %v4970_v32 = vcombine.low %v772_v13, %v780_v14  ;;  %v4972_v36 = vcombine.low %v773_v16, %v781_v17 }
 0x20f   : > { %4131 = vmatpush1.bf16.msra.mxu0 %v4858_v26  ;;  %v4973_v26 = vcombine.high %v773_v16, %v781_v17  ;;  %v884_v17 = vld [vmem:[%s7307_s4 + $0xb30] sm:$0xff] }
 0x210   : > { %4217 = vmatpush1.bf16.msra.mxu1 %v4860_v27  ;;  %4132 = vmatprep.subr.bf16.mxu0 %v4875_v30  ;;  %v788_v27 = vld [vmem:[%s7307_s4 + $0x830] sm:$0xff] }
 0x211   : > { %4218 = vmatprep.subr.bf16.mxu1 %v4877_v57  ;;  %v796_v30 = vld [vmem:[%s7307_s4 + $0x870] sm:$0xff]  ;;  %v789_v57 = vld [vmem:[%s7307_s4 + $0x838] sm:$0xff] }
 0x212   : > { %v4987_v37 = vcombine.high %v788_v27, %v796_v30  ;;  %v4988_v49 = vcombine.low %v789_v57, %v797_v31 }
 0x213   : > { %4133 = vmatpush1.bf16.msra.mxu0 %v4874_v40  ;;  %v4989_v40 = vcombine.high %v789_v57, %v797_v31  ;;  %v497_v31 = vld [vmem:[%s5506_s18 + $0x38] sm:$0xff] }
 0x214   : > { %4219 = vmatpush1.bf16.msra.mxu1 %v4876_v43  ;;  %4134 = vmatprep.subr.bf16.mxu0 %v4891_v44  ;;  %v804_v43 = vld [vmem:[%s7307_s4 + $0x8b0] sm:$0xff] }
 0x215   : > { %4220 = vmatprep.subr.bf16.mxu1 %v4893_v46  ;;  %v812_v44 = vld [vmem:[%s7307_s4 + $0x8f0] sm:$0xff]  ;;  %v4986_v46 = vcombine.low %v788_v27, %v796_v30  ;;  %v495_v30 = vld [vmem:[%s5506_s18 + $0x28] sm:$0xff] }
 0x216   : > { %v5003_v50 = vcombine.high %v804_v43, %v812_v44  ;;  %v5002_v59 = vcombine.low %v804_v43, %v812_v44  ;;  %v496_v27 = vld [vmem:[%s5506_s18 + $0x30] sm:$0xff]  ;;  %v510_v44 = vld [vmem:[%s5506_s18 + $0xa0] sm:$0xff] }
 0x217   : > { %4135 = vmatpush1.bf16.msra.mxu0 %v4890_v51  ;;  %v820_v51 = vld [vmem:[%s7307_s4 + $0x930] sm:$0xff] }
 0x218   : > { %4221 = vmatpush1.bf16.msra.mxu1 %v4892_v52  ;;  %4136 = vmatprep.subr.bf16.mxu0 %v4907_v53  ;;  %v828_v52 = vld [vmem:[%s7307_s4 + $0x970] sm:$0xff]  ;;  %v5005_v53 = vcombine.high %v805_v47, %v813_v48  ;;  %v901_v47 = vld [vmem:[%s7307_s4 + $0xbb8] sm:$0xff] }
 0x219   : > { %4222 = vmatprep.subr.bf16.mxu1 %v4909_v54  ;;  %v821_v54 = vld [vmem:[%s7307_s4 + $0x938] sm:$0xff]  ;;  %v5019_v61 = vcombine.high %v820_v51, %v828_v52 }
 0x21a   : > { %v5020_v3 = vcombine.low %v821_v54, %v829_v55  ;;  %v909_v48 = vld [vmem:[%s7307_s4 + $0xbf8] sm:$0xff] }
 0x21b   : > { %4137 = vmatpush1.bf16.msra.mxu0 %v4906_v62  ;;  %v5021_v62 = vcombine.high %v821_v54, %v829_v55 }
 0x21c   : > { %4223 = vmatpush1.bf16.msra.mxu1 %v4908_v63  ;;  %4138 = vmatprep.subr.bf16.mxu0 %v4923_v0  ;;  %v836_v63 = vld [vmem:[%s7307_s4 + $0x9b0] sm:$0xff] }
 0x21d   : > { %4224 = vmatprep.subr.bf16.mxu1 %v4925_v1  ;;  %v844_v0 = vld [vmem:[%s7307_s4 + $0x9f0] sm:$0xff]  ;;  %v845_v1 = vld [vmem:[%s7307_s4 + $0x9f8] sm:$0xff] }
 0x21e   : > { %v5035_v4 = vcombine.high %v836_v63, %v844_v0 }
 0x21f   : > { %4139 = vmatpush1.bf16.msra.mxu0 %v4922_v7  ;;  %v860_v7 = vld [vmem:[%s7307_s4 + $0xa70] sm:$0xff] }
 0x220   : > { %4225 = vmatpush1.bf16.msra.mxu1 %v4924_v15  ;;  %4140 = vmatprep.subr.bf16.mxu0 %v4939_v19  ;;  %v853_v15 = vld [vmem:[%s7307_s4 + $0xa38] sm:$0xff]  ;;  %v5051_v24 = vcombine.high %v852_v6, %v860_v7 }
 0x221   : > { %4226 = vmatprep.subr.bf16.mxu1 %v4941_v20  ;;  %v861_v19 = vld [vmem:[%s7307_s4 + $0xa78] sm:$0xff]  ;;  %v5034_v20 = vcombine.low %v836_v63, %v844_v0 }
 0x222   : > { %v5053_v25 = vcombine.high %v853_v15, %v861_v19  ;;  %v5052_v13 = vcombine.low %v853_v15, %v861_v19 }
 0x223   : > { %4141 = vmatpush1.bf16.msra.mxu0 %v4938_v9  ;;  %v876_v9 = vld [vmem:[%s7307_s4 + $0xaf0] sm:$0xff] }
 0x224   : > { %4227 = vmatpush1.bf16.msra.mxu1 %v4940_v10  ;;  %4142 = vmatprep.subr.bf16.mxu0 %v4955_v11  ;;  %v869_v10 = vld [vmem:[%s7307_s4 + $0xab8] sm:$0xff]  ;;  %v5067_v14 = vcombine.high %v868_v8, %v876_v9  ;;  %v5066_v57 = vcombine.low %v868_v8, %v876_v9 }
 0x225   : > { %4228 = vmatprep.subr.bf16.mxu1 %v4957_v12  ;;  %v877_v11 = vld [vmem:[%s7307_s4 + $0xaf8] sm:$0xff]  ;;  %v5050_v12 = vcombine.low %v852_v6, %v860_v7 }
 0x226   : > { %v5069_v16 = vcombine.high %v869_v10, %v877_v11 }
 0x227   : > { %4143 = vmatpush1.bf16.msra.mxu0 %v4954_v18  ;;  %v892_v18 = vld [vmem:[%s7307_s4 + $0xb70] sm:$0xff] }
 0x228   : > { %4229 = vmatpush1.bf16.msra.mxu1 %v4956_v22  ;;  %4144 = vmatprep.subr.bf16.mxu0 %v4971_v23  ;;  %v885_v22 = vld [vmem:[%s7307_s4 + $0xb38] sm:$0xff]  ;;  %v5082_v54 = vcombine.low %v884_v17, %v892_v18 }
 0x229   : > { %4230 = vmatprep.subr.bf16.mxu1 %v4973_v26  ;;  %v893_v23 = vld [vmem:[%s7307_s4 + $0xb78] sm:$0xff]  ;;  %v494_v26 = vld [vmem:[%s5506_s18 + $0x20] sm:$0xff] }
 0x22a   : > { %v5084_v63 = vcombine.low %v885_v22, %v893_v23 }
 0x22b   : > { %4145 = vmatpush1.bf16.msra.mxu0 %v4970_v32  ;;  %v5068_v32 = vcombine.low %v869_v10, %v877_v11  ;;  %v917_v10 = vld [vmem:[%s7307_s4 + $0xc38] sm:$0xff] }
 0x22c   : > { %4231 = vmatpush1.bf16.msra.mxu1 %v4972_v36  ;;  %4157 = vmatprep.subr.bf16.mxu0 %v4987_v37  ;;  %v5083_v36 = vcombine.high %v884_v17, %v892_v18  ;;  %v7060_v37 = vld [vmem:[%s7307_s4 + $0xbb0] sm:$0xff]  ;;  %v925_v11 = vld [vmem:[%s7307_s4 + $0xc78] sm:$0xff] }
 0x22d   : > { %4243 = vmatprep.subr.bf16.mxu1 %v4989_v40  ;;  %v7065_v40 = vld [vmem:[%s7307_s4 + $0xbf0] sm:$0xff] }
 0x22e   : > { %4147 = vmatmul.mubr.bf16.vlgmr.msra.gmra.mrb[12].mxu0 %v5780_v56  ;;  %v5099_v0 = vcombine.high %v7060_v37, %v7065_v40 }
 0x22f   : > { %4233 = vmatmul.mubr.bf16.vlgmr.msra.gmra.mrb[12].mxu1 %v5780_v56  ;;  %4158 = vmatpush1.bf16.msra.mxu0 %v4986_v46  ;;  %v837_v56 = vld [vmem:[%s7307_s4 + $0x9b8] sm:$0xff]  ;;  %v5085_v46 = vcombine.high %v885_v22, %v893_v23  ;;  %v5117_v22 = vcombine.high %v917_v10, %v925_v11  ;;  %v932_v23 = vld [vmem:[%s7307_s4 + $0xcb0] sm:$0xff] }
 0x230   : > { %4189 = vmatprep.mubr.bf16.mxu0 %v5801_v2  ;;  %4244 = vmatpush1.bf16.msra.mxu1 %v4988_v49  ;;  %v5037_v5 = vcombine.high %v837_v56, %v845_v1  ;;  %v5036_v21 = vcombine.low %v837_v56, %v845_v1 }
 0x231   : > { %4275 = vmatprep.mubr.bf16.mxu1 %v5801_v2  ;;  %4159 = vmatprep.subr.bf16.mxu0 %v5003_v50  ;;  %v5018_v2 = vcombine.low %v820_v51, %v828_v52  ;;  %v512_v52 = vld [vmem:[%s5506_s18 + $0xb0] sm:$0xff] }
 0x232   : > { %4245 = vmatprep.subr.bf16.mxu1 %v5005_v53  ;;  %v511_v53 = vld [vmem:[%s5506_s18 + $0xa8] sm:$0xff] }
 0x233   : > { %4160 = vmatpush1.bf16.msra.mxu0 %v5002_v59 }
 0x234   : > { %4246 = vmatpush1.bf16.msra.mxu1 %v5004_v60  ;;  %4161 = vmatprep.subr.bf16.mxu0 %v5019_v61 }
 0x235   : > { %4247 = vmatprep.subr.bf16.mxu1 %v5021_v62  ;;  %v513_v62 = vld [vmem:[%s5506_s18 + $0xb8] sm:$0xff] }
 0x237   : > { %4162 = vmatpush1.bf16.msra.mxu0 %v5018_v2 }
 0x238   : > { %4248 = vmatpush1.bf16.msra.mxu1 %v5020_v3  ;;  %4163 = vmatprep.subr.bf16.mxu0 %v5035_v4 }
 0x239   : > { %4249 = vmatprep.subr.bf16.mxu1 %v5037_v5  ;;  %v5101_v5 = vcombine.high %v901_v47, %v909_v48 }
 0x23b   : > { %4164 = vmatpush1.bf16.msra.mxu0 %v5034_v20 }
 0x23c   : > { %4250 = vmatpush1.bf16.msra.mxu1 %v5036_v21  ;;  %4165 = vmatprep.subr.bf16.mxu0 %v5051_v24  ;;  %v916_v21 = vld [vmem:[%s7307_s4 + $0xc30] sm:$0xff] }
 0x23d   : > { %4251 = vmatprep.subr.bf16.mxu1 %v5053_v25  ;;  %v924_v24 = vld [vmem:[%s7307_s4 + $0xc70] sm:$0xff] }
 0x23e   : > { %v5115_v17 = vcombine.high %v916_v21, %v924_v24 }
 0x23f   : > { %4166 = vmatpush1.bf16.msra.mxu0 %v5050_v12 }
 0x240   : > { %4252 = vmatpush1.bf16.msra.mxu1 %v5052_v13  ;;  %4167 = vmatprep.subr.bf16.mxu0 %v5067_v14  ;;  %v5098_v13 = vcombine.low %v7060_v37, %v7065_v40  ;;  %v7108_v40 = vld [vmem:[%s7307_s4 + $0xd30] sm:$0xff] }
 0x241   : > { %v3847_v43 = vpop.f32.mrb[4].mxu0  ;;  %4253 = vmatprep.subr.bf16.mxu1 %v5069_v16  ;;  %v5100_v16 = vcombine.low %v901_v47, %v909_v48  ;;  %v7123_v47 = vld [vmem:[%s7307_s4 + $0xd78] sm:$0xff]  ;;  %v475_v48 = vld [vmem:[#allocation3 + $0x8] sm:$0xff] }
 0x242   : > { %v4290_v49 = vadd.f32 %v3847_v43, %v494_v26  ;;  %v3933_v50 = vpop.f32.mrb[4].mxu1  ;;  %v3849_v51 = vpop.f32.mrb[5].mxu0  ;;  %v940_v26 = vld [vmem:[%s7307_s4 + $0xcf0] sm:$0xff] }
 0x243   : > { %v4292_v55 = vadd.f32 %v3933_v50, %v496_v27  ;;  %v4291_v59 = vadd.f32 %v3849_v51, %v495_v30  ;;  %v3935_v60 = vpop.f32.mrb[5].mxu1  ;;  %v3851_v61 = vpop.f32.mrb[6].mxu0  ;;  %4168 = vmatpush1.bf16.msra.mxu0 %v5066_v57  ;;  %v933_v27 = vld [vmem:[%s7307_s4 + $0xcb8] sm:$0xff]  ;;  %v5114_v57 = vcombine.low %v916_v21, %v924_v24  ;;  %v7113_v43 = vld [vmem:[%s7307_s4 + $0xd70] sm:$0xff]  ;;  %v478_v50 = vld [vmem:[#allocation3 + $0x20] sm:$0xff]  ;;  %v5130_v51 = vcombine.low %v932_v23, %v940_v26 }
 0x244   : > { %v4350_v56 = vmul.f32 0.5, %v4290_v49  ;;  %v4293_v1 = vadd.f32 %v3935_v60, %v497_v31  ;;  %v4306_v2 = vadd.f32 %v3851_v61, %v510_v44  ;;  %v3937_v3 = vpop.f32.mrb[6].mxu1  ;;  %4254 = vmatpush1.bf16.msra.mxu1 %v5068_v32  ;;  %v3853_v4 = vpop.f32.mrb[7].mxu0  ;;  %4169 = vmatprep.subr.bf16.mxu0 %v5083_v36  ;;  %v941_v30 = vld [vmem:[%s7307_s4 + $0xcf8] sm:$0xff]  ;;  %v5116_v31 = vcombine.low %v917_v10, %v925_v11  ;;  %v474_v36 = vld [vmem:[#allocation3] sm:$0xff]  ;;  %v476_v44 = vld [vmem:[#allocation3 + $0x10] sm:$0xff] }
 0x245   : > { %v4352_v6 = vmul.f32 0.5, %v4292_v55  ;;  %v4351_v7 = vmul.f32 0.5, %v4291_v59  ;;  %v4308_v15 = vadd.f32 %v3937_v3, %v512_v52  ;;  %v4307_v19 = vadd.f32 %v3853_v4, %v511_v53  ;;  %v3939_v20 = vpop.f32.mrb[7].mxu1  ;;  %4255 = vmatprep.subr.bf16.mxu1 %v5085_v46  ;;  %v7118_v46 = vld [vmem:[%s7307_s4 + $0xd38] sm:$0xff]  ;;  %v480_v53 = vld [vmem:[#allocation3 + $0x30] sm:$0xff] }
 0x246   : > { %5308 = vtanh.f32 %v4350_v56  ;;  %v4353_v25 = vmul.f32 0.5, %v4293_v1  ;;  %v4354_v8 = vmul.f32 0.5, %v4306_v2  ;;  %v4309_v9 = vadd.f32 %v3939_v20, %v513_v62  ;;  %v477_v49 = vld [vmem:[#allocation3 + $0x18] sm:$0xff]  ;;  %v7139_v56 = vld [vmem:[%s7307_s4 + $0xdf0] sm:$0xff] }
 0x247   : > { %5310 = vtanh.f32 %v4352_v6  ;;  %v4356_v12 = vmul.f32 0.5, %v4308_v15  ;;  %4170 = vmatpush1.bf16.msra.mxu0 %v5082_v54  ;;  %v4355_v14 = vmul.f32 0.5, %v4307_v19  ;;  %v5131_v32 = vcombine.high %v932_v23, %v940_v26  ;;  %v965_v6 = vld [vmem:[%s7307_s4 + $0xdb8] sm:$0xff] }
 0x248   : > { %5312 = vtanh.f32 %v4351_v7  ;;  %4256 = vmatpush1.bf16.msra.mxu1 %v5084_v63  ;;  %4171 = vmatprep.subr.bf16.mxu0 %v5099_v0  ;;  %v4357_v18 = vmul.f32 0.5, %v4309_v9  ;;  %v5133_v37 = vcombine.high %v933_v27, %v941_v30  ;;  %v5132_v54 = vcombine.low %v933_v27, %v941_v30  ;;  %v7134_v0 = vld [vmem:[%s7307_s4 + $0xdb0] sm:$0xff]  ;;  %v973_v7 = vld [vmem:[%s7307_s4 + $0xdf8] sm:$0xff]  ;;  %v479_v30 = vld [vmem:[#allocation3 + $0x28] sm:$0xff] }
 0x249   : > { %5314 = vtanh.f32 %v4353_v25  ;;  %4257 = vmatprep.subr.bf16.mxu1 %v5101_v5  ;;  %v5147_v55 = vcombine.high %v7108_v40, %v7113_v43  ;;  %v482_v60 = vmul.f32 %v474_v36, %v5757_v35  ;;  %v484_v62 = vmul.f32 %v476_v44, %v5757_v35  ;;  %v481_v44 = vld [vmem:[#allocation3 + $0x38] sm:$0xff] }
 0x24a   : > { %5316 = vtanh.f32 %v4354_v8  ;;  %v5149_v63 = vcombine.high %v7118_v46, %v7123_v47  ;;  %v483_v3 = vmul.f32 %v475_v48, %v5757_v35  ;;  %v485_v4 = vmul.f32 %v477_v49, %v5757_v35 }
 0x24b   : > { %5318 = vtanh.f32 %v4356_v12  ;;  %4172 = vmatpush1.bf16.msra.mxu0 %v5098_v13  ;;  %v486_v5 = vmul.f32 %v478_v50, %v5761_v45  ;;  %v488_v21 = vmul.f32 %v480_v53, %v5761_v45  ;;  %v5146_v24 = vcombine.low %v7108_v40, %v7113_v43 }
 0x24c   : > { %5320 = vtanh.f32 %v4355_v14  ;;  %4258 = vmatpush1.bf16.msra.mxu1 %v5100_v16  ;;  %4173 = vmatprep.subr.bf16.mxu0 %v5115_v17  ;;  %v5148_v9 = vcombine.low %v7118_v46, %v7123_v47  ;;  %v5163_v10 = vcombine.high %v7134_v0, %v7139_v56  ;;  %v5165_v16 = vcombine.high %v965_v6, %v973_v7  ;;  %v980_v17 = vld [vmem:[%s7307_s4 + $0xe30] sm:$0xff] }
 0x24d   : > { %5322 = vtanh.f32 %v4357_v18  ;;  %4259 = vmatprep.subr.bf16.mxu1 %v5117_v22  ;;  %v988_v18 = vld [vmem:[%s7307_s4 + $0xe70] sm:$0xff]  ;;  %v5164_v46 = vcombine.low %v965_v6, %v973_v7  ;;  %v1013_v7 = vld [vmem:[%s7307_s4 + $0xf38] sm:$0xff] }
 0x24e   : > { %v5179_v50 = vcombine.high %v980_v17, %v988_v18  ;;  %v1020_v6 = vld [vmem:[%s7307_s4 + $0xf70] sm:$0xff] }
 0x24f   : > { %4174 = vmatpush1.bf16.msra.mxu0 %v5114_v57  ;;  %v5162_v57 = vcombine.low %v7134_v0, %v7139_v56  ;;  %v1005_v0 = vld [vmem:[%s7307_s4 + $0xef8] sm:$0xff] }
 0x250   : > { %v5309_v52 = vpop.eup %5308  ;;  %4260 = vmatpush1.bf16.msra.mxu1 %v5116_v31  ;;  %4175 = vmatprep.subr.bf16.mxu0 %v5131_v32  ;;  %v981_v31 = vld [vmem:[%s7307_s4 + $0xe38] sm:$0xff] }
 0x251   : > { %v5311_v59 = vpop.eup %5310  ;;  %v4366_v61 = vmul.f32 0.5, %v5309_v52  ;;  %4261 = vmatprep.subr.bf16.mxu1 %v5133_v37  ;;  %v989_v32 = vld [vmem:[%s7307_s4 + $0xe78] sm:$0xff]  ;;  %v487_v52 = vmul.f32 %v479_v30, %v5761_v45 }
 0x252   : > { %v5313_v1 = vpop.eup %5312  ;;  %v4368_v2 = vmul.f32 0.5, %v5311_v59  ;;  %v1004_v59 = vld [vmem:[%s7307_s4 + $0xef0] sm:$0xff]  ;;  %v493_v30 = vld [vmem:[%s5506_s18 + $0x18] sm:$0xff] }
 0x253   : > { %v5315_v15 = vpop.eup %5314  ;;  %v4374_v19 = vadd.f32 0.5, %v4366_v61  ;;  %v4367_v20 = vmul.f32 0.5, %v5313_v1  ;;  %4176 = vmatpush1.bf16.msra.mxu0 %v5130_v51  ;;  %v489_v61 = vmul.f32 %v481_v44, %v5761_v45  ;;  %v5178_v1 = vcombine.low %v980_v17, %v988_v18  ;;  %v490_v18 = vld [vmem:[%s5506_s18] sm:$0xff] }
 0x254   : > { %v5317_v35 = vpop.eup %5316  ;;  %v4376_v25 = vadd.f32 0.5, %v4368_v2  ;;  %v4369_v8 = vmul.f32 0.5, %v5315_v15  ;;  %4262 = vmatpush1.bf16.msra.mxu1 %v5132_v54  ;;  %4177 = vmatprep.subr.bf16.mxu0 %v5147_v55  ;;  %v5181_v54 = vcombine.high %v981_v31, %v989_v32  ;;  %v996_v55 = vld [vmem:[%s7307_s4 + $0xeb0] sm:$0xff]  ;;  %v1021_v15 = vld [vmem:[%s7307_s4 + $0xf78] sm:$0xff] }
 0x255   : > { %v5319_v11 = vpop.eup %5318  ;;  %v7157_v12 = vmul.f32 %v4374_v19, %v482_v60  ;;  %v4375_v13 = vadd.f32 0.5, %v4367_v20  ;;  %v4370_v14 = vmul.f32 0.5, %v5317_v35  ;;  %4263 = vmatprep.subr.bf16.mxu1 %v5149_v63  ;;  %v997_v63 = vld [vmem:[%s7307_s4 + $0xeb8] sm:$0xff]  ;;  %v5194_v19 = vcombine.low %v996_v55, %v1004_v59  ;;  %v1028_v35 = vld [vmem:[%s7307_s4 + $0xfb0] sm:$0xff] }
 0x256   : > { %v5321_v22 = vpop.eup %5320  ;;  %v7165_v23 = vmul.f32 %v4376_v25, %v484_v62  ;;  %v4377_v26 = vadd.f32 0.5, %v4369_v8  ;;  %v4372_v27 = vmul.f32 0.5, %v5319_v11  ;;  %v5197_v45 = vcombine.high %v997_v63, %v1005_v0  ;;  %v1036_v25 = vld [vmem:[%s7307_s4 + $0xff0] sm:$0xff]  ;;  %v1029_v8 = vld [vmem:[%s7307_s4 + $0xfb8] sm:$0xff] }
 0x257   : > { %v5323_v36 = vpop.eup %5322  ;;  %v7175_v37 = vmul.f32 %v4375_v13, %v483_v3  ;;  %v4378_v40 = vadd.f32 0.5, %v4370_v14  ;;  %v4371_v43 = vmul.f32 0.5, %v5321_v22  ;;  %4178 = vmatpush1.bf16.msra.mxu0 %v5146_v24  ;;  %v5180_v3 = vcombine.low %v981_v31, %v989_v32  ;;  %v492_v22 = vld [vmem:[%s5506_s18 + $0x10] sm:$0xff]  ;;  %v506_v31 = vld [vmem:[%s5506_s18 + $0x80] sm:$0xff] }
 0x258   : > { %v7177_v47 = vmul.f32 %v4377_v26, %v485_v4  ;;  %v4380_v48 = vadd.f32 0.5, %v4372_v27  ;;  %v4373_v49 = vmul.f32 0.5, %v5323_v36  ;;  %4264 = vmatpush1.bf16.msra.mxu1 %v5148_v9  ;;  %4179 = vmatprep.subr.bf16.mxu0 %v5163_v10  ;;  %v5195_v4 = vcombine.high %v996_v55, %v1004_v59  ;;  %v1037_v9 = vld [vmem:[%s7307_s4 + $0xff8] sm:$0xff]  ;;  %v491_v26 = vld [vmem:[%s5506_s18 + $0x8] sm:$0xff]  ;;  %v508_v36 = vld [vmem:[%s5506_s18 + $0x90] sm:$0xff] }
 0x259   : > { %v7179_v51 = vmul.f32 %v4378_v40, %v486_v5  ;;  %v4379_v53 = vadd.f32 0.5, %v4371_v43  ;;  %4265 = vmatprep.subr.bf16.mxu1 %v5165_v16  ;;  %v1012_v5 = vld [vmem:[%s7307_s4 + $0xf30] sm:$0xff]  ;;  %v5196_v20 = vcombine.low %v997_v63, %v1005_v0  ;;  %v5213_v24 = vcombine.high %v1013_v7, %v1021_v15  ;;  %v507_v43 = vld [vmem:[%s5506_s18 + $0x88] sm:$0xff]  ;;  %v501_v59 = vld [vmem:[%s5506_s18 + $0x58] sm:$0xff] }
 0x25a   : > { %v7188_v60 = vmul.f32 %v4380_v48, %v488_v21  ;;  %v4381_v62 = vadd.f32 0.5, %v4373_v49  ;;  %v5211_v21 = vcombine.high %v1012_v5, %v1020_v6  ;;  %v5210_v10 = vcombine.low %v1012_v5, %v1020_v6  ;;  %v499_v55 = vld [vmem:[%s5506_s18 + $0x48] sm:$0xff]  ;;  %v516_v0 = vld [vmem:[%s5506_s18 + $0xd0] sm:$0xff] }
 0x25b   : > { %v7197_v56 = vmul.f32 %v4379_v53, %v487_v52  ;;  %4180 = vmatpush1.bf16.msra.mxu0 %v5162_v57  ;;  %v5212_v11 = vcombine.low %v1013_v7, %v1021_v15  ;;  %v5227_v13 = vcombine.high %v1028_v35, %v1036_v25  ;;  %v5229_v14 = vcombine.high %v1029_v8, %v1037_v9  ;;  %v515_v5 = vld [vmem:[%s5506_s18 + $0xc8] sm:$0xff] }
 0x25c   : > { %v7199_v2 = vmul.f32 %v4381_v62, %v489_v61  ;;  %4266 = vmatpush1.bf16.msra.mxu1 %v5164_v46  ;;  %4181 = vmatprep.subr.bf16.mxu0 %v5179_v50  ;;  %v5226_v16 = vcombine.low %v1028_v35, %v1036_v25  ;;  %v5228_v17 = vcombine.low %v1029_v8, %v1037_v9  ;;  %v514_v61 = vld [vmem:[%s5506_s18 + $0xc0] sm:$0xff] }
 0x25d   : > { %4267 = vmatprep.subr.bf16.mxu1 %v5181_v54  ;;  %v4286_v27 = vadd.f32 %v6645_v28, %v490_v18  ;;  %v4288_v57 = vadd.f32 %v6647_v29, %v492_v22  ;;  %v4287_v32 = vadd.f32 %v6655_v33, %v491_v26  ;;  %v4289_v40 = vadd.f32 %v6657_v34, %v493_v30  ;;  %v498_v54 = vld [vmem:[%s5506_s18 + $0x40] sm:$0xff] }
 0x25e   : > { %v4302_v46 = vadd.f32 %v6665_v38, %v506_v31  ;;  %v4304_v49 = vadd.f32 %v6667_v39, %v508_v36  ;;  %v4303_v29 = vadd.f32 %v6669_v41, %v507_v43  ;;  %v500_v39 = vld [vmem:[%s5506_s18 + $0x50] sm:$0xff] }
 0x25f   : > { %4182 = vmatpush1.bf16.msra.mxu0 %v5178_v1  ;;  %v4318_v44 = vmul.f32 0.5, %v4286_v27  ;;  %v4320_v48 = vmul.f32 0.5, %v4288_v57  ;;  %v4319_v28 = vmul.f32 0.5, %v4287_v32  ;;  %v4321_v50 = vmul.f32 0.5, %v4289_v40 }
 0x260   : > { %4268 = vmatpush1.bf16.msra.mxu1 %v5180_v3  ;;  %4183 = vmatprep.subr.bf16.mxu0 %v5195_v4  ;;  %v4322_v34 = vmul.f32 0.5, %v4302_v46  ;;  %v4324_v52 = vmul.f32 0.5, %v4304_v49  ;;  %v4323_v38 = vmul.f32 0.5, %v4303_v29 }
 0x261   : > { %4269 = vmatprep.subr.bf16.mxu1 %v5197_v45  ;;  %5324 = vtanh.f32 %v4318_v44 }
 0x262   : > { %5326 = vtanh.f32 %v4320_v48 }
 0x263   : > { %4184 = vmatpush1.bf16.msra.mxu0 %v5194_v19  ;;  %5328 = vtanh.f32 %v4319_v28 }
 0x264   : > { %4270 = vmatpush1.bf16.msra.mxu1 %v5196_v20  ;;  %4185 = vmatprep.subr.bf16.mxu0 %v5211_v21  ;;  %5330 = vtanh.f32 %v4321_v50  ;;  %v517_v20 = vld [vmem:[%s5506_s18 + $0xd8] sm:$0xff] }
 0x265   : > { %4271 = vmatprep.subr.bf16.mxu1 %v5213_v24  ;;  %5332 = vtanh.f32 %v4322_v34 }
 0x266   : > { %5334 = vtanh.f32 %v4324_v52 }
 0x267   : > { %4186 = vmatpush1.bf16.msra.mxu0 %v5210_v10  ;;  %5336 = vtanh.f32 %v4323_v38 }
 0x268   : > { %4272 = vmatpush1.bf16.msra.mxu1 %v5212_v11  ;;  %4187 = vmatprep.subr.bf16.mxu0 %v5227_v13 }
 0x269   : > { %4273 = vmatprep.subr.bf16.mxu1 %v5229_v14 }
 0x26b   : > { %4188 = vmatpush1.bf16.msra.mxu0 %v5226_v16  ;;  %v5325_v35 = vpop.eup %5324 }
 0x26c   : > { %4274 = vmatpush1.bf16.msra.mxu1 %v5228_v17  ;;  %v5327_v8 = vpop.eup %5326  ;;  %v4334_v13 = vmul.f32 0.5, %v5325_v35 }
 0x26d   : > { %v5329_v10 = vpop.eup %5328  ;;  %v4336_v16 = vmul.f32 0.5, %v5327_v8 }
 0x26e   : > { %4190 = vmatmul.mubr.bf16.vlgmr.msra.gmra.mrb[12].mxu0 %v5784_v58  ;;  %v5331_v11 = vpop.eup %5330  ;;  %v4335_v18 = vmul.f32 0.5, %v5329_v10  ;;  %v4342_v30 = vadd.f32 0.5, %v4334_v13 }
 0x26f   : > { %4276 = vmatmul.mubr.bf16.vlgmr.msra.gmra.mrb[12].mxu1 %v5784_v58  ;;  %v509_v58 = vld [vmem:[%s5506_s18 + $0x98] sm:$0xff]  ;;  %v5333_v14 = vpop.eup %5332  ;;  %v4337_v26 = vmul.f32 0.5, %v5331_v11  ;;  %v4344_v32 = vadd.f32 0.5, %v4336_v16 }
 0x270   : > { %v4305_v33 = vadd.f32 %v6671_v42, %v509_v58  ;;  %v5335_v17 = vpop.eup %5334  ;;  %v4338_v57 = vmul.f32 0.5, %v5333_v14  ;;  %v4343_v43 = vadd.f32 0.5, %v4335_v18 }
 0x271   : > { %v5337_v22 = vpop.eup %5336  ;;  %v4340_v36 = vmul.f32 0.5, %v5335_v17  ;;  %v4345_v48 = vadd.f32 0.5, %v4337_v26 }
 0x272   : > { %v4325_v53 = vmul.f32 0.5, %v4305_v33  ;;  %v4339_v44 = vmul.f32 0.5, %v5337_v22  ;;  %v4346_v50 = vadd.f32 0.5, %v4338_v57 }
 0x273   : > { %v4348_v38 = vadd.f32 0.5, %v4340_v36 }
 0x274   : > { %5338 = vtanh.f32 %v4325_v53 }
 0x27e   : > { %v5339_v27 = vpop.eup %5338 }
 0x27f   : > { %v4341_v49 = vmul.f32 0.5, %v5339_v27 }
 0x2c1   : > { %v4019_v41 = vpop.f32.mrb[8].mxu0 }
 0x2c2   : > { %v4294_v42 = vadd.f32 %v4019_v41, %v498_v54  ;;  %v4105_v62 = vpop.f32.mrb[8].mxu1  ;;  %v4021_v63 = vpop.f32.mrb[9].mxu0 }
 0x2c3   : > { %v4296_v1 = vadd.f32 %v4105_v62, %v500_v39  ;;  %v4295_v3 = vadd.f32 %v4021_v63, %v499_v55  ;;  %v4107_v4 = vpop.f32.mrb[9].mxu1  ;;  %v4023_v45 = vpop.f32.mrb[10].mxu0  ;;  %v4347_v55 = vadd.f32 0.5, %v4339_v44 }
 0x2c4   : > { %5340 = vtanh.f32 %v4294_v42  ;;  %v4297_v6 = vadd.f32 %v4107_v4, %v501_v59  ;;  %v4310_v7 = vadd.f32 %v4023_v45, %v514_v61  ;;  %v4109_v15 = vpop.f32.mrb[10].mxu1  ;;  %v4025_v19 = vpop.f32.mrb[11].mxu0  ;;  %v4349_v42 = vadd.f32 0.5, %v4341_v49  ;;  %v503_v4 = vld [vmem:[%s5506_s18 + $0x68] sm:$0xff] }
 0x2c5   : > { %5342 = vtanh.f32 %v4296_v1  ;;  %v4312_v21 = vadd.f32 %v4109_v15, %v516_v0  ;;  %v4111_v24 = vpop.f32.mrb[11].mxu1  ;;  %v4311_v25 = vadd.f32 %v4025_v19, %v515_v5  ;;  %v505_v5 = vld [vmem:[%s5506_s18 + $0x78] sm:$0xff]  ;;  %v520_v19 = vld [vmem:[%s5506_s18 + $0xf0] sm:$0xff] }
 0x2c6   : > { %5344 = vtanh.f32 %v4295_v3  ;;  %v4313_v9 = vadd.f32 %v4111_v24, %v517_v20  ;;  %v504_v3 = vld [vmem:[%s5506_s18 + $0x70] sm:$0xff] }
 0x2c7   : > { %5346 = vtanh.f32 %v4297_v6  ;;  %v518_v6 = vld [vmem:[%s5506_s18 + $0xe0] sm:$0xff] }
 0x2c8   : > { %5348 = vtanh.f32 %v4310_v7 }
 0x2c9   : > { %5350 = vtanh.f32 %v4312_v21 }
 0x2ca   : > { %5352 = vtanh.f32 %v4311_v25  ;;  %v521_v25 = vld [vmem:[%s5506_s18 + $0xf8] sm:$0xff] }
 0x2cb   : > { %5354 = vtanh.f32 %v4313_v9 }
 0x2ce   : > { %v5341_v31 = vpop.eup %5340 }
 0x2cf   : > { %v5343_v40 = vpop.eup %5342  ;;  %v4430_v46 = vmul.f32 %v5341_v31, %v4342_v30 }
 0x2d0   : > { %v5345_v58 = vpop.eup %5344  ;;  %v4432_v28 = vmul.f32 %v5343_v40, %v4344_v32 }
 0x2d1   : > { %v5347_v29 = vpop.eup %5346  ;;  %v4438_v33 = vadd.f32 %v4430_v46, %v7157_v12  ;;  %v4431_v34 = vmul.f32 %v5345_v58, %v4343_v43 }
 0x2d2   : > { %v5349_v52 = vpop.eup %5348  ;;  %v4440_v53 = vadd.f32 %v4432_v28, %v7165_v23  ;;  %v4433_v54 = vmul.f32 %v5347_v29, %v4345_v48 }
 0x2d3   : > { %v5351_v39 = vpop.eup %5350  ;;  %4470 = vst [vmem:[#allocation3] sm:$0xff] %v4438_v33  ;;  %4486 = vst [vmem:[%s5524_s0] sm:$0xff] %v4438_v33  ;;  %v4439_v41 = vadd.f32 %v4431_v34, %v7175_v37  ;;  %v4434_v59 = vmul.f32 %v5349_v52, %v4346_v50  ;;  %5356 = vtanh.f32 %v4438_v33 }
 0x2d4   : > { %v5353_v61 = vpop.eup %5352  ;;  %4472 = vst [vmem:[#allocation3 + $0x10] sm:$0xff] %v4440_v53  ;;  %4488 = vst [vmem:[%s5524_s0 + $0x10] sm:$0xff] %v4440_v53  ;;  %v4441_v12 = vadd.f32 %v4433_v54, %v7177_v47  ;;  %v4436_v62 = vmul.f32 %v5351_v39, %v4348_v38  ;;  %5358 = vtanh.f32 %v4440_v53 }
 0x2d5   : > { %v5355_v23 = vpop.eup %5354  ;;  %4471 = vst [vmem:[#allocation3 + $0x8] sm:$0xff] %v4439_v41  ;;  %4487 = vst [vmem:[%s5524_s0 + $0x8] sm:$0xff] %v4439_v41  ;;  %v7259_v63 = vadd.f32 %v4434_v59, %v7179_v51  ;;  %v4435_v37 = vmul.f32 %v5353_v61, %v4347_v55  ;;  %5360 = vtanh.f32 %v4439_v41 }
 0x2d6   : > { %4473 = vst [vmem:[#allocation3 + $0x18] sm:$0xff] %v4441_v12  ;;  %4489 = vst [vmem:[%s5524_s0 + $0x18] sm:$0xff] %v4441_v12  ;;  %v4444_v0 = vadd.f32 %v4436_v62, %v7188_v60  ;;  %v4437_v1 = vmul.f32 %v5355_v23, %v4349_v42  ;;  %v502_v60 = vld [vmem:[%s5506_s18 + $0x60] sm:$0xff]  ;;  %5362 = vtanh.f32 %v4441_v12 }
 0x2d7   : > { %4474 = vst [vmem:[#allocation3 + $0x20] sm:$0xff] %v7259_v63  ;;  %4490 = vst [vmem:[%s5524_s0 + $0x20] sm:$0xff] %v7259_v63  ;;  %v4443_v47 = vadd.f32 %v4435_v37, %v7197_v56 }
 0x2d8   : > { %4476 = vst [vmem:[#allocation3 + $0x30] sm:$0xff] %v4444_v0  ;;  %4492 = vst [vmem:[%s5524_s0 + $0x30] sm:$0xff] %v4444_v0  ;;  %v4445_v51 = vadd.f32 %v4437_v1, %v7199_v2  ;;  %v519_v2 = vld [vmem:[%s5506_s18 + $0xe8] sm:$0xff] }
 0x2d9   : > { %4475 = vst [vmem:[#allocation3 + $0x28] sm:$0xff] %v4443_v47  ;;  %4491 = vst [vmem:[%s5524_s0 + $0x28] sm:$0xff] %v4443_v47 }
 0x2da   : > { %4477 = vst [vmem:[#allocation3 + $0x38] sm:$0xff] %v4445_v51  ;;  %4493 = vst [vmem:[%s5524_s0 + $0x38] sm:$0xff] %v4445_v51 }
 0x2dd   : > { %v5357_v36 = vpop.eup %5356 }
 0x2de   : > { %v5359_v40 = vpop.eup %5358 }
 0x2df   : > { %v5361_v43 = vpop.eup %5360 }
 0x2e0   : > { %v5363_v44 = vpop.eup %5362 }
 0x341   : > { %v4191_v45 = vpop.f32.mrb[12].mxu0 }
 0x342   : > { %v4298_v7 = vadd.f32 %v4191_v45, %v502_v60  ;;  %v4277_v56 = vpop.f32.mrb[12].mxu1  ;;  %v4193_v15 = vpop.f32.mrb[13].mxu0 }
 0x343   : > { %v4300_v20 = vadd.f32 %v4277_v56, %v504_v3  ;;  %v4299_v21 = vadd.f32 %v4193_v15, %v503_v4  ;;  %v4279_v24 = vpop.f32.mrb[13].mxu1  ;;  %v4195_v35 = vpop.f32.mrb[14].mxu0 }
 0x344   : > { %v4390_v8 = vmul.f32 0.5, %v4298_v7  ;;  %v4301_v9 = vadd.f32 %v4279_v24, %v505_v5  ;;  %v4314_v10 = vadd.f32 %v4195_v35, %v518_v6  ;;  %v4281_v11 = vpop.f32.mrb[14].mxu1  ;;  %v4197_v13 = vpop.f32.mrb[15].mxu0 }
 0x345   : > { %v4392_v14 = vmul.f32 0.5, %v4300_v20  ;;  %v4391_v16 = vmul.f32 0.5, %v4299_v21  ;;  %v4316_v17 = vadd.f32 %v4281_v11, %v520_v19  ;;  %v4315_v18 = vadd.f32 %v4197_v13, %v519_v2  ;;  %v4283_v22 = vpop.f32.mrb[15].mxu1 }
 0x346   : > { %5364 = vtanh.f32 %v4390_v8  ;;  %v4393_v26 = vmul.f32 0.5, %v4301_v9  ;;  %v4394_v27 = vmul.f32 0.5, %v4314_v10  ;;  %v4317_v30 = vadd.f32 %v4283_v22, %v521_v25 }
 0x347   : > { %5366 = vtanh.f32 %v4392_v14  ;;  %v4396_v57 = vmul.f32 0.5, %v4316_v17  ;;  %v4395_v31 = vmul.f32 0.5, %v4315_v18 }
 0x348   : > { %5368 = vtanh.f32 %v4391_v16  ;;  %v4397_v32 = vmul.f32 0.5, %v4317_v30 }
 0x349   : > { %5370 = vtanh.f32 %v4393_v26 }
 0x34a   : > { %5372 = vtanh.f32 %v4394_v27 }
 0x34b   : > { %5374 = vtanh.f32 %v4396_v57 }
 0x34c   : > { %5376 = vtanh.f32 %v4395_v31 }
 0x34d   : > { %5378 = vtanh.f32 %v4397_v32 }
 0x34e   : > { %5380 = vtanh.f32 %v7259_v63 }
 0x34f   : > { %5382 = vtanh.f32 %v4444_v0 }
 0x350   : > { %v5365_v46 = vpop.eup %5364  ;;  %5384 = vtanh.f32 %v4443_v47 }
 0x351   : > { %v5367_v58 = vpop.eup %5366  ;;  %v4406_v48 = vmul.f32 0.5, %v5365_v46  ;;  %5386 = vtanh.f32 %v4445_v51 }
 0x352   : > { %v5369_v49 = vpop.eup %5368  ;;  %v4408_v28 = vmul.f32 0.5, %v5367_v58 }
 0x353   : > { %v5371_v29 = vpop.eup %5370  ;;  %v4414_v50 = vadd.f32 0.5, %v4406_v48  ;;  %v4407_v33 = vmul.f32 0.5, %v5369_v49 }
 0x354   : > { %v5373_v34 = vpop.eup %5372  ;;  %v4416_v52 = vadd.f32 0.5, %v4408_v28  ;;  %v4409_v38 = vmul.f32 0.5, %v5371_v29 }
 0x355   : > { %v5375_v53 = vpop.eup %5374  ;;  %v4454_v54 = vmul.f32 %v5357_v36, %v4414_v50  ;;  %v4415_v39 = vadd.f32 0.5, %v4407_v33  ;;  %v4410_v55 = vmul.f32 0.5, %v5373_v34 }
 0x356   : > { %v5377_v41 = vpop.eup %5376  ;;  %v4456_v59 = vmul.f32 %v5359_v40, %v4416_v52  ;;  %v4417_v61 = vadd.f32 0.5, %v4409_v38  ;;  %v4412_v42 = vmul.f32 0.5, %v5375_v53 }
 0x357   : > { %v5379_v12 = vpop.eup %5378  ;;  %4462 = vst [vmem:[#allocation2] sm:$0xff] %v4454_v54  ;;  %4478 = vst [vmem:[%s5519_s16] sm:$0xff] %v4454_v54  ;;  %v4455_v62 = vmul.f32 %v5361_v43, %v4415_v39  ;;  %v4418_v23 = vadd.f32 0.5, %v4410_v55  ;;  %v4411_v63 = vmul.f32 0.5, %v5377_v41 }
 0x358   : > { %v5381_v37 = vpop.eup %5380  ;;  %4464 = vst [vmem:[#allocation2 + $0x10] sm:$0xff] %v4456_v59  ;;  %4480 = vst [vmem:[%s5519_s16 + $0x10] sm:$0xff] %v4456_v59  ;;  %v4457_v0 = vmul.f32 %v5363_v44, %v4417_v61  ;;  %v4420_v1 = vadd.f32 0.5, %v4412_v42  ;;  %v4413_v47 = vmul.f32 0.5, %v5379_v12 }
 0x359   : > { %v5383_v51 = vpop.eup %5382  ;;  %4463 = vst [vmem:[#allocation2 + $0x8] sm:$0xff] %v4455_v62  ;;  %4479 = vst [vmem:[%s5519_s16 + $0x8] sm:$0xff] %v4455_v62  ;;  %v4458_v60 = vmul.f32 %v5381_v37, %v4418_v23  ;;  %v4419_v3 = vadd.f32 0.5, %v4411_v63 }
 0x35a   : > { %v5385_v4 = vpop.eup %5384  ;;  %4465 = vst [vmem:[#allocation2 + $0x18] sm:$0xff] %v4457_v0  ;;  %4481 = vst [vmem:[%s5519_s16 + $0x18] sm:$0xff] %v4457_v0  ;;  %v4460_v45 = vmul.f32 %v5383_v51, %v4420_v1  ;;  %v4421_v5 = vadd.f32 0.5, %v4413_v47 }
 0x35b   : > { %v5387_v6 = vpop.eup %5386  ;;  %4466 = vst [vmem:[#allocation2 + $0x20] sm:$0xff] %v4458_v60  ;;  %4482 = vst [vmem:[%s5519_s16 + $0x20] sm:$0xff] %v4458_v60  ;;  %v4459_v7 = vmul.f32 %v5385_v4, %v4419_v3 }
 0x35c   : > { %4468 = vst [vmem:[#allocation2 + $0x30] sm:$0xff] %v4460_v45  ;;  %4484 = vst [vmem:[%s5519_s16 + $0x30] sm:$0xff] %v4460_v45  ;;  %v4461_v56 = vmul.f32 %v5387_v6, %v4421_v5 }
 0x35d   : > { %4467 = vst [vmem:[#allocation2 + $0x28] sm:$0xff] %v4459_v7  ;;  %4483 = vst [vmem:[%s5519_s16 + $0x28] sm:$0xff] %v4459_v7 }
 0x35e   : > { %4469 = vst [vmem:[#allocation2 + $0x38] sm:$0xff] %v4461_v56  ;;  %4485 = vst [vmem:[%s5519_s16 + $0x38] sm:$0xff] %v4461_v56 }
 0x35f PF: > { %s17_s25 = sadd.s32 1, %s5426_s25   ;;  %s7314_s0 = sld [smem:[#allocation4_spill]] }
 0x360   : > { %p14_p8 = scmp.ge.s32.totalorder %s17_s25, 10   ;;  %s7315_s18 = sld [smem:[#allocation5_spill]] }
 0x361   : > { %s7316_s21 = smov %s5418_s23  ;;  %s7317_s22 = smov %s5422_s24 }
 0x362   :  { %16 = sbr.rel (!%p14_p8) target bundleno = 3 (0x3), region = 95 }
 0x365   : > { %s7318_s23 = smov %s7314_s0 }
 0x366   : > { %s7319_s24 = smov %s7315_s18 }

</bundles_post_ra>
